<compile_context>
chip_gen: v5e
topology: v5e:2x2
jax: 0.10.0
libtpu: 0.0.40
codegen_flags: <defaults>
</compile_context>

<pallas_src>
import jax
import jax.numpy as jnp
from jax.experimental import pallas as pl
from jax.experimental.pallas import tpu as pltpu

EPS = 1e-5          # BatchNorm1d default eps
NEG_SLOPE = 0.01    # nn.LeakyReLU default negative_slope


def _round_up(x, m):
    return (x + m - 1) // m * m


# ------------------------------- Pallas kernel --------------------------------
def _make_net_kernel(n_res):
    """Kernel over one independent batch (one grid step).

    x_ref     : (B, P_in)              padded input (f32)
    w_in_ref  : (P_in, P_h)            initial Linear weight, (in,out), bf16
    w_trk_ref : (max(4*n_res,1), P_h, P_h)  per block [fc, fc2, glu_a, glu_b], bf16
    w_out_ref : (P_h, P_out)           final Linear weight, bf16
    v_in_ref  : (8, P_in)              rows: [bn_in gamma, bn_in beta], f32
    v_h_ref   : (R, P_h)               row 0: initial bias; per block 8 rows
                                       [g1, be1, b1, g2, be2, b2, bg_a, bg_b]
    v_out_ref : (8, P_out)             row 0: final bias, f32
    o_ref     : (B, P_out)             lane-dense output (f32)
    """

    def net_kernel(x_ref, w_in_ref, w_trk_ref, w_out_ref,
                   v_in_ref, v_h_ref, v_out_ref, o_ref):

        def bn(h, gamma, beta):
            # Fused training-mode BatchNorm1d: one pass for mean & E[x^2],
            # gamma*rsqrt folded into a single per-column scale.
            mean = jnp.mean(h, axis=0, keepdims=True)
            ex2 = jnp.mean(h * h, axis=0, keepdims=True)
            var = jnp.maximum(ex2 - mean * mean, 0.0)
            scale = gamma * jax.lax.rsqrt(var + EPS)
            shift = beta - mean * scale
            return h * scale + shift

        def lrelu(h):
            return jnp.maximum(h, NEG_SLOPE * h)

        def mm(h, w):
            # bf16 MXU matmul, f32 accumulation. Padded lanes stay exactly 0.
            return jnp.dot(h.astype(jnp.bfloat16), w,
                           preferred_element_type=jnp.float32)

        x = x_ref[...]

        # initial_layer: BatchNorm1d -> Linear, then LeakyReLU (Net.forward)
        h = bn(x, v_in_ref[0:1, :], v_in_ref[1:2, :])
        out = lrelu(mm(h, w_in_ref[...]) + v_h_ref[0:1, :])

        # trunk: n_res ResBlocks, each followed by LeakyReLU (Net.forward).
        # Unrolled Python loop: fine for n_res <= 4 (keeps LLO visibility).
        for r in range(n_res):
            wb = 4 * r
            vb = 1 + 8 * r
            identity = out
            h = bn(out, v_h_ref[vb:vb + 1, :], v_h_ref[vb + 1:vb + 2, :])
            h = lrelu(mm(h, w_trk_ref[wb]) + v_h_ref[vb + 2:vb + 3, :])
            h = bn(h, v_h_ref[vb + 3:vb + 4, :], v_h_ref[vb + 4:vb + 5, :])
            h = mm(h, w_trk_ref[wb + 1]) + v_h_ref[vb + 5:vb + 6, :]
            # GLU shortcut as two aligned matmuls (no lane split in-vreg):
            idb = identity.astype(jnp.bfloat16)
            a = jnp.dot(idb, w_trk_ref[wb + 2],
                        preferred_element_type=jnp.float32) + v_h_ref[vb + 6:vb + 7, :]
            g = jnp.dot(idb, w_trk_ref[wb + 3],
                        preferred_element_type=jnp.float32) + v_h_ref[vb + 7:vb + 8, :]
            out = lrelu(h + a * jax.nn.sigmoid(g))

        # final fc — write the full lane-dense (B, P_out) block; the wrapper
        # slices the first dim_out columns.
        o_ref[...] = mm(out, w_out_ref[...]) + v_out_ref[0:1, :]

    return net_kernel


# ------------------------------ parameter init --------------------------------
def init_params(key, dim_input, dim_hidden, dim_out, n_res):
    """Torch-layout params: Xavier-normal Linear weights (out,in), zero biases,
    BN gamma=1 / beta=0."""
    def xavier(k, shape):
        fan_out, fan_in = shape
        std = (2.0 / (fan_in + fan_out)) ** 0.5
        return (std * jax.random.normal(k, shape)).astype(jnp.float32)

    n_linear = 1 + 3 * n_res + 1
    keys = iter(jax.random.split(key, n_linear))
    ones = lambda d: jnp.ones((d,), jnp.float32)
    zeros = lambda d: jnp.zeros((d,), jnp.float32)

    params = []
    # initial_layer: BN(dim_input) gamma/beta, Linear(dim_input -> dim_hidden)
    params += [ones(dim_input), zeros(dim_input),
               xavier(next(keys), (dim_hidden, dim_input)), zeros(dim_hidden)]
    # ResBlocks
    for _ in range(n_res):
        params += [ones(dim_hidden), zeros(dim_hidden),                              # bn
                   xavier(next(keys), (dim_hidden, dim_hidden)), zeros(dim_hidden),  # fc
                   ones(dim_hidden), zeros(dim_hidden),                              # bn2
                   xavier(next(keys), (dim_hidden, dim_hidden)), zeros(dim_hidden),  # fc2
                   xavier(next(keys), (2 * dim_hidden, dim_hidden)),                 # GLU.fc
                   zeros(2 * dim_hidden)]
    # final fc
    params += [xavier(next(keys), (dim_out, dim_hidden)), zeros(dim_out)]
    return params


# ------------------------- host-side packing (layout) -------------------------
def pack_params(params, dim_input, dim_hidden, dim_out, n_res):
    """Pre-transpose weights to (in, out), pad each matmul's dims independently
    to 128-lane multiples, cast weights to bf16, and pack 1-D params into
    8-sublane-aligned 2-D slabs.  Padded rows/cols are zero so numerics are
    unchanged (padded lanes stay exactly 0 through the whole network)."""
    P_in = _round_up(dim_input, 128)
    P_h = _round_up(dim_hidden, 128)
    P_out = _round_up(dim_out, 128)

    def padmat(w, rows, cols):  # torch (out,in) -> transposed, zero-padded, bf16
        wt = jnp.asarray(w, jnp.float32).T
        m = jnp.zeros((rows, cols), jnp.float32).at[:wt.shape[0], :wt.shape[1]].set(wt)
        return m.astype(jnp.bfloat16)

    def padvec(v, cols):
        v = jnp.ravel(jnp.asarray(v, jnp.float32))
        return jnp.zeros((cols,), jnp.float32).at[:v.shape[0]].set(v)

    def stack_rows(rows, cols):
        n = _round_up(len(rows), 8)
        m = jnp.zeros((n, cols), jnp.float32)
        return m.at[:len(rows), :].set(jnp.stack(rows, axis=0))

    it = iter(params)
    g0, be0, w0, b0 = (next(it) for _ in range(4))
    w_in = padmat(w0, P_in, P_h)
    v_in_rows = [padvec(g0, P_in), padvec(be0, P_in)]
    trunk_mats = []
    v_h_rows = [padvec(b0, P_h)]
    for _ in range(n_res):
        g1, be1, w1, b1, g2, be2, w2, b2, wg, bg = (next(it) for _ in range(10))
        bgf = jnp.ravel(bg)
        trunk_mats += [padmat(w1, P_h, P_h), padmat(w2, P_h, P_h),
                       padmat(wg[:dim_hidden, :], P_h, P_h),   # GLU "value" half
                       padmat(wg[dim_hidden:, :], P_h, P_h)]   # GLU "gate" half
        v_h_rows += [padvec(g1, P_h), padvec(be1, P_h), padvec(b1, P_h),
                     padvec(g2, P_h), padvec(be2, P_h), padvec(b2, P_h),
                     padvec(bgf[:dim_hidden], P_h), padvec(bgf[dim_hidden:], P_h)]
    wf, bf = next(it), next(it)
    w_out = padmat(wf, P_h, P_out)

    if trunk_mats:
        w_trk = jnp.stack(trunk_mats, axis=0)
    else:  # keep a dummy slab so the operand list is static
        w_trk = jnp.zeros((1, P_h, P_h), jnp.bfloat16)

    v_in = stack_rows(v_in_rows, P_in)
    v_h = stack_rows(v_h_rows, P_h)
    v_out = stack_rows([padvec(bf, P_out)], P_out)
    return w_in, w_trk, w_out, v_in, v_h, v_out


# --------------------------------- wrapper -------------------------------------
def net_forward(x, packed, *, n_res, dim_out):
    """x: (G, B, dim_input) — G independent batches (each a full BN batch)."""
    G, B, dim_input = x.shape
    w_in, w_trk, w_out, v_in, v_h, v_out = packed
    P_in, P_h = w_in.shape
    P_out = w_out.shape[1]

    # pad input to P_in lanes on the host (padded cols are zero; the matching
    # weight rows / BN gamma rows are zero, so numerics are unchanged)
    x_pad = jnp.zeros((G, B, P_in), jnp.float32).at[:, :, :dim_input].set(x)

    def full_spec(arr):
        nd = arr.ndim
        return pl.BlockSpec(arr.shape, lambda g, _nd=nd: (0,) * _nd)

    in_specs = [
        pl.BlockSpec((pl.Squeezed(), B, P_in), lambda g: (g, 0, 0)),
        full_spec(w_in), full_spec(w_trk), full_spec(w_out),
        full_spec(v_in), full_spec(v_h), full_spec(v_out),
    ]
    out_spec = pl.BlockSpec((pl.Squeezed(), B, P_out), lambda g: (g, 0, 0))

    # Scoped-VMEM sizing: resident weights/vectors + double-buffered I/O blocks
    # + live activations, with headroom.  (At large dim_hidden / n_res, stream
    # w_trk per ResBlock instead of keeping it resident.)
    need = (2 * (w_in.size + w_trk.size + w_out.size)          # bf16 weights
            + 4 * (v_in.size + v_h.size + v_out.size)          # f32 vectors
            + 2 * 4 * B * (P_in + P_out)                       # 2x-buffered I/O
            + 8 * 4 * B * max(P_in, P_h, P_out))               # live activations
    vmem_limit = int(min(max(4 * need, 32 << 20), 64 << 20))

    y = pl.pallas_call(
        _make_net_kernel(n_res),
        out_shape=jax.ShapeDtypeStruct((G, B, P_out), jnp.float32),
        grid=(G,),
        in_specs=in_specs,
        out_specs=out_spec,
        compiler_params=pltpu.CompilerParams(
            dimension_semantics=("parallel",),
            vmem_limit_bytes=vmem_limit),
    )(x_pad, w_in, w_trk, w_out, v_in, v_h, v_out)

    # lane-dense kernel output; the narrow slice is wrapper-side plumbing
    return y[:, :, :dim_out]


# ----------------------------- references --------------------------------------
def _bn_two_pass(x, gamma, beta):
    mean = jnp.mean(x, axis=0, keepdims=True)
    var = jnp.mean((x - mean) ** 2, axis=0, keepdims=True)
    return (x - mean) * jax.lax.rsqrt(var + EPS) * gamma + beta


def _bn_fused(x, gamma, beta):
    mean = jnp.mean(x, axis=0, keepdims=True)
    ex2 = jnp.mean(x * x, axis=0, keepdims=True)
    var = jnp.maximum(ex2 - mean * mean, 0.0)
    scale = gamma * jax.lax.rsqrt(var + EPS)
    return x * scale + (beta - mean * scale)


def _lrelu(x):
    return jnp.maximum(x, NEG_SLOPE * x)


def net_forward_ref_f32(x, params, *, n_res, dim_hidden):
    """Pure-f32 PyTorch-semantics reference (two-pass BN, f32 matmuls)."""
    idx = [0]

    def take(n):
        vals = params[idx[0]:idx[0] + n]
        idx[0] += n
        return vals

    def lin(h, w, b):
        return jnp.dot(h, w.T, preferred_element_type=jnp.float32) + b

    g0, be0, w0, b0 = take(4)
    out = _lrelu(lin(_bn_two_pass(x, g0, be0), w0, b0))
    for _ in range(n_res):
        g1, be1, w1, b1, g2, be2, w2, b2, wg, bg = take(10)
        identity = out
        h = _lrelu(lin(_bn_two_pass(out, g1, be1), w1, b1))
        h = lin(_bn_two_pass(h, g2, be2), w2, b2)
        y = lin(identity, wg, bg)
        glu = y[:, :dim_hidden] * jax.nn.sigmoid(y[:, dim_hidden:])
        out = _lrelu(h + glu)
    wf, bf = take(2)
    return lin(out, wf, bf)


def net_forward_mirror(x, params, *, n_res, dim_hidden):
    """Reference mirroring the kernel math (fused BN, bf16 matmul inputs with
    f32 accumulation, GLU split into two matmuls) for a tight tolerance check."""
    idx = [0]

    def take(n):
        vals = params[idx[0]:idx[0] + n]
        idx[0] += n
        return vals

    def lin(h, w, b):
        return jnp.dot(h.astype(jnp.bfloat16), w.T.astype(jnp.bfloat16),
                       preferred_element_type=jnp.float32) + b

    g0, be0, w0, b0 = take(4)
    out = _lrelu(lin(_bn_fused(x, g0, be0), w0, b0))
    for _ in range(n_res):
        g1, be1, w1, b1, g2, be2, w2, b2, wg, bg = take(10)
        identity = out
        h = _lrelu(lin(_bn_fused(out, g1, be1), w1, b1))
        h = lin(_bn_fused(h, g2, be2), w2, b2)
        a = lin(identity, wg[:dim_hidden, :], bg[:dim_hidden])
        g = lin(identity, wg[dim_hidden:, :], bg[dim_hidden:])
        out = _lrelu(h + a * jax.nn.sigmoid(g))
    wf, bf = take(2)
    return lin(out, wf, bf)


if __name__ == "__main__":
    # Small shapes consistent with the module defaults; batch sized to fill an
    # MXU row tile, with G=2 independent batches on the 'parallel' grid axis.
    G = 2               # independent BN batches (shards across v7x's 2 TCs)
    BATCH = 128         # rows per batch: multiple of 8, full MXU row tile
    DIM_INPUT = 16
    DIM_HIDDEN = 20     # dim_hidden_layers default
    DIM_OUT = 1         # dim_out default
    N_RES = 2           # n_hidden_layers default

    key = jax.random.PRNGKey(0)
    kx, kp = jax.random.split(key)
    x = jax.random.normal(kx, (G, BATCH, DIM_INPUT), dtype=jnp.float32)

    params = init_params(kp, DIM_INPUT, DIM_HIDDEN, DIM_OUT, N_RES)
    packed = pack_params(params, DIM_INPUT, DIM_HIDDEN, DIM_OUT, N_RES)

    out = jax.block_until_ready(
        net_forward(x, packed, n_res=N_RES, dim_out=DIM_OUT))
    assert out.shape == (G, BATCH, DIM_OUT)

    mirror = jnp.stack([net_forward_mirror(x[g], params, n_res=N_RES,
                                           dim_hidden=DIM_HIDDEN)
                        for g in range(G)])
    ref32 = jnp.stack([net_forward_ref_f32(x[g], params, n_res=N_RES,
                                           dim_hidden=DIM_HIDDEN)
                       for g in range(G)])

    # Tight check against the bf16-mirrored math (same ops as the kernel).
    assert jnp.allclose(out, mirror, atol=1e-3, rtol=1e-3), \
        "mismatch vs bf16-mirrored reference"
    # Sanity check against the full-f32 PyTorch-semantics reference
    # (loose tolerance accounts for the deliberate bf16 weight quantization).
    assert jnp.allclose(out, ref32, atol=1e-1, rtol=1e-1), \
        "drift vs f32 reference too large"

    print("KERNEL_OK")
</pallas_src>

<mosaic_0001>
module attributes {stable_mosaic.version = 11 : i64} {
  func.func @net_kernel(%arg0: i32, %arg1: memref<1x128x128xf32, #tpu.memory_space<vmem>>, %arg2: memref<128x128xbf16, #tpu.memory_space<vmem>>, %arg3: memref<8x128x128xbf16, #tpu.memory_space<vmem>>, %arg4: memref<128x128xbf16, #tpu.memory_space<vmem>>, %arg5: memref<8x128xf32, #tpu.memory_space<vmem>>, %arg6: memref<24x128xf32, #tpu.memory_space<vmem>>, %arg7: memref<8x128xf32, #tpu.memory_space<vmem>>, %arg8: memref<1x128x128xf32, #tpu.memory_space<vmem>>) attributes {dimension_semantics = [#tpu.dimension_semantics<parallel>], iteration_bounds = array<i64: 2>, scalar_prefetch = 0 : i64, scratch_operands = 0 : i64, tpu.core_type = #tpu.core_type<tc>, window_params = [{transform_indices = @transform_0, window_bounds = array<i64: 1, 128, 128>}, {pipeline_mode = #tpu.pipeline_mode<synchronous>, transform_indices = @transform_1, window_bounds = array<i64: 128, 128>}, {pipeline_mode = #tpu.pipeline_mode<synchronous>, transform_indices = @transform_2, window_bounds = array<i64: 8, 128, 128>}, {pipeline_mode = #tpu.pipeline_mode<synchronous>, transform_indices = @transform_3, window_bounds = array<i64: 128, 128>}, {pipeline_mode = #tpu.pipeline_mode<synchronous>, transform_indices = @transform_4, window_bounds = array<i64: 8, 128>}, {pipeline_mode = #tpu.pipeline_mode<synchronous>, transform_indices = @transform_5, window_bounds = array<i64: 24, 128>}, {pipeline_mode = #tpu.pipeline_mode<synchronous>, transform_indices = @transform_6, window_bounds = array<i64: 8, 128>}, {transform_indices = @transform_7, window_bounds = array<i64: 1, 128, 128>}]} {
    %c0 = arith.constant 0 : index
    %c0_0 = arith.constant 0 : index
    %c0_1 = arith.constant 0 : index
    %0 = vector.load %arg1[%c0, %c0_0, %c0_1] : memref<1x128x128xf32, #tpu.memory_space<vmem>>, vector<1x128x128xf32>
    %1 = vector.shape_cast %0 : vector<1x128x128xf32> to vector<128x128xf32>
    %c0_2 = arith.constant 0 : index
    %c0_3 = arith.constant 0 : index
    %2 = vector.load %arg5[%c0_2, %c0_3] : memref<8x128xf32, #tpu.memory_space<vmem>>, vector<1x128xf32>
    %c1 = arith.constant 1 : index
    %c0_4 = arith.constant 0 : index
    %3 = vector.load %arg5[%c1, %c0_4] : memref<8x128xf32, #tpu.memory_space<vmem>>, vector<1x128xf32>
    %cst = arith.constant dense<0.000000e+00> : vector<128xf32>
    %4 = vector.multi_reduction <add>, %1, %cst [0] : vector<128x128xf32> to vector<128xf32>
    %5 = vector.shape_cast %4 : vector<128xf32> to vector<1x128xf32>
    %cst_5 = arith.constant 1.280000e+02 : f32
    %6 = vector.broadcast %cst_5 : f32 to vector<1x128xf32>
    %7 = arith.divf %5, %6 : vector<1x128xf32>
    %8 = arith.mulf %1, %1 : vector<128x128xf32>
    %cst_6 = arith.constant dense<0.000000e+00> : vector<128xf32>
    %9 = vector.multi_reduction <add>, %8, %cst_6 [0] : vector<128x128xf32> to vector<128xf32>
    %10 = vector.shape_cast %9 : vector<128xf32> to vector<1x128xf32>
    %cst_7 = arith.constant 1.280000e+02 : f32
    %11 = vector.broadcast %cst_7 : f32 to vector<1x128xf32>
    %12 = arith.divf %10, %11 : vector<1x128xf32>
    %13 = arith.mulf %7, %7 : vector<1x128xf32>
    %14 = arith.subf %12, %13 : vector<1x128xf32>
    %cst_8 = arith.constant 0.000000e+00 : f32
    %15 = vector.broadcast %cst_8 : f32 to vector<1x128xf32>
    %16 = arith.maximumf %14, %15 : vector<1x128xf32>
    %cst_9 = arith.constant 9.99999974E-6 : f32
    %17 = vector.broadcast %cst_9 : f32 to vector<1x128xf32>
    %18 = arith.addf %16, %17 : vector<1x128xf32>
    %19 = math.rsqrt %18 : vector<1x128xf32>
    %20 = arith.mulf %2, %19 : vector<1x128xf32>
    %21 = arith.mulf %7, %20 : vector<1x128xf32>
    %22 = arith.subf %3, %21 : vector<1x128xf32>
    %23 = vector.broadcast %20 : vector<1x128xf32> to vector<128x128xf32>
    %24 = arith.mulf %1, %23 : vector<128x128xf32>
    %25 = vector.broadcast %22 : vector<1x128xf32> to vector<128x128xf32>
    %26 = arith.addf %24, %25 : vector<128x128xf32>
    %c0_10 = arith.constant 0 : index
    %c0_11 = arith.constant 0 : index
    %27 = vector.load %arg2[%c0_10, %c0_11] : memref<128x128xbf16, #tpu.memory_space<vmem>>, vector<128x128xbf16>
    %28 = arith.truncf %26 : vector<128x128xf32> to vector<128x128xbf16>
    %cst_12 = arith.constant dense<0.000000e+00> : vector<128x128xf32>
    %29 = tpu.matmul %28, %27, %cst_12 {dimension_numbers = #tpu.dot_dimension_numbers<[1], [0], [0], [1], [0, 0, 1, 1], [], []>} : vector<128x128xbf16>, vector<128x128xbf16>, vector<128x128xf32> -> vector<128x128xf32>
    %c0_13 = arith.constant 0 : index
    %c0_14 = arith.constant 0 : index
    %30 = vector.load %arg6[%c0_13, %c0_14] : memref<24x128xf32, #tpu.memory_space<vmem>>, vector<1x128xf32>
    %31 = vector.broadcast %30 : vector<1x128xf32> to vector<128x128xf32>
    %32 = arith.addf %29, %31 : vector<128x128xf32>
    %cst_15 = arith.constant 0.00999999977 : f32
    %33 = vector.broadcast %cst_15 : f32 to vector<128x128xf32>
    %34 = arith.mulf %33, %32 : vector<128x128xf32>
    %35 = arith.maximumf %32, %34 : vector<128x128xf32>
    %c1_16 = arith.constant 1 : index
    %c0_17 = arith.constant 0 : index
    %36 = vector.load %arg6[%c1_16, %c0_17] : memref<24x128xf32, #tpu.memory_space<vmem>>, vector<1x128xf32>
    %c2 = arith.constant 2 : index
    %c0_18 = arith.constant 0 : index
    %37 = vector.load %arg6[%c2, %c0_18] : memref<24x128xf32, #tpu.memory_space<vmem>>, vector<1x128xf32>
    %cst_19 = arith.constant dense<0.000000e+00> : vector<128xf32>
    %38 = vector.multi_reduction <add>, %35, %cst_19 [0] : vector<128x128xf32> to vector<128xf32>
    %39 = vector.shape_cast %38 : vector<128xf32> to vector<1x128xf32>
    %cst_20 = arith.constant 1.280000e+02 : f32
    %40 = vector.broadcast %cst_20 : f32 to vector<1x128xf32>
    %41 = arith.divf %39, %40 : vector<1x128xf32>
    %42 = arith.mulf %35, %35 : vector<128x128xf32>
    %cst_21 = arith.constant dense<0.000000e+00> : vector<128xf32>
    %43 = vector.multi_reduction <add>, %42, %cst_21 [0] : vector<128x128xf32> to vector<128xf32>
    %44 = vector.shape_cast %43 : vector<128xf32> to vector<1x128xf32>
    %cst_22 = arith.constant 1.280000e+02 : f32
    %45 = vector.broadcast %cst_22 : f32 to vector<1x128xf32>
    %46 = arith.divf %44, %45 : vector<1x128xf32>
    %47 = arith.mulf %41, %41 : vector<1x128xf32>
    %48 = arith.subf %46, %47 : vector<1x128xf32>
    %cst_23 = arith.constant 0.000000e+00 : f32
    %49 = vector.broadcast %cst_23 : f32 to vector<1x128xf32>
    %50 = arith.maximumf %48, %49 : vector<1x128xf32>
    %cst_24 = arith.constant 9.99999974E-6 : f32
    %51 = vector.broadcast %cst_24 : f32 to vector<1x128xf32>
    %52 = arith.addf %50, %51 : vector<1x128xf32>
    %53 = math.rsqrt %52 : vector<1x128xf32>
    %54 = arith.mulf %36, %53 : vector<1x128xf32>
    %55 = arith.mulf %41, %54 : vector<1x128xf32>
    %56 = arith.subf %37, %55 : vector<1x128xf32>
    %57 = vector.broadcast %54 : vector<1x128xf32> to vector<128x128xf32>
    %58 = arith.mulf %35, %57 : vector<128x128xf32>
    %59 = vector.broadcast %56 : vector<1x128xf32> to vector<128x128xf32>
    %60 = arith.addf %58, %59 : vector<128x128xf32>
    %c0_25 = arith.constant 0 : index
    %c0_26 = arith.constant 0 : index
    %c0_27 = arith.constant 0 : index
    %61 = vector.load %arg3[%c0_25, %c0_26, %c0_27] : memref<8x128x128xbf16, #tpu.memory_space<vmem>>, vector<1x128x128xbf16>
    %62 = vector.shape_cast %61 : vector<1x128x128xbf16> to vector<128x128xbf16>
    %63 = arith.truncf %60 : vector<128x128xf32> to vector<128x128xbf16>
    %cst_28 = arith.constant dense<0.000000e+00> : vector<128x128xf32>
    %64 = tpu.matmul %63, %62, %cst_28 {dimension_numbers = #tpu.dot_dimension_numbers<[1], [0], [0], [1], [0, 0, 1, 1], [], []>} : vector<128x128xbf16>, vector<128x128xbf16>, vector<128x128xf32> -> vector<128x128xf32>
    %c3 = arith.constant 3 : index
    %c0_29 = arith.constant 0 : index
    %65 = vector.load %arg6[%c3, %c0_29] : memref<24x128xf32, #tpu.memory_space<vmem>>, vector<1x128xf32>
    %66 = vector.broadcast %65 : vector<1x128xf32> to vector<128x128xf32>
    %67 = arith.addf %64, %66 : vector<128x128xf32>
    %cst_30 = arith.constant 0.00999999977 : f32
    %68 = vector.broadcast %cst_30 : f32 to vector<128x128xf32>
    %69 = arith.mulf %68, %67 : vector<128x128xf32>
    %70 = arith.maximumf %67, %69 : vector<128x128xf32>
    %c4 = arith.constant 4 : index
    %c0_31 = arith.constant 0 : index
    %71 = vector.load %arg6[%c4, %c0_31] : memref<24x128xf32, #tpu.memory_space<vmem>>, vector<1x128xf32>
    %c5 = arith.constant 5 : index
    %c0_32 = arith.constant 0 : index
    %72 = vector.load %arg6[%c5, %c0_32] : memref<24x128xf32, #tpu.memory_space<vmem>>, vector<1x128xf32>
    %cst_33 = arith.constant dense<0.000000e+00> : vector<128xf32>
    %73 = vector.multi_reduction <add>, %70, %cst_33 [0] : vector<128x128xf32> to vector<128xf32>
    %74 = vector.shape_cast %73 : vector<128xf32> to vector<1x128xf32>
    %cst_34 = arith.constant 1.280000e+02 : f32
    %75 = vector.broadcast %cst_34 : f32 to vector<1x128xf32>
    %76 = arith.divf %74, %75 : vector<1x128xf32>
    %77 = arith.mulf %70, %70 : vector<128x128xf32>
    %cst_35 = arith.constant dense<0.000000e+00> : vector<128xf32>
    %78 = vector.multi_reduction <add>, %77, %cst_35 [0] : vector<128x128xf32> to vector<128xf32>
    %79 = vector.shape_cast %78 : vector<128xf32> to vector<1x128xf32>
    %cst_36 = arith.constant 1.280000e+02 : f32
    %80 = vector.broadcast %cst_36 : f32 to vector<1x128xf32>
    %81 = arith.divf %79, %80 : vector<1x128xf32>
    %82 = arith.mulf %76, %76 : vector<1x128xf32>
    %83 = arith.subf %81, %82 : vector<1x128xf32>
    %cst_37 = arith.constant 0.000000e+00 : f32
    %84 = vector.broadcast %cst_37 : f32 to vector<1x128xf32>
    %85 = arith.maximumf %83, %84 : vector<1x128xf32>
    %cst_38 = arith.constant 9.99999974E-6 : f32
    %86 = vector.broadcast %cst_38 : f32 to vector<1x128xf32>
    %87 = arith.addf %85, %86 : vector<1x128xf32>
    %88 = math.rsqrt %87 : vector<1x128xf32>
    %89 = arith.mulf %71, %88 : vector<1x128xf32>
    %90 = arith.mulf %76, %89 : vector<1x128xf32>
    %91 = arith.subf %72, %90 : vector<1x128xf32>
    %92 = vector.broadcast %89 : vector<1x128xf32> to vector<128x128xf32>
    %93 = arith.mulf %70, %92 : vector<128x128xf32>
    %94 = vector.broadcast %91 : vector<1x128xf32> to vector<128x128xf32>
    %95 = arith.addf %93, %94 : vector<128x128xf32>
    %c1_39 = arith.constant 1 : index
    %c0_40 = arith.constant 0 : index
    %c0_41 = arith.constant 0 : index
    %96 = vector.load %arg3[%c1_39, %c0_40, %c0_41] : memref<8x128x128xbf16, #tpu.memory_space<vmem>>, vector<1x128x128xbf16>
    %97 = vector.shape_cast %96 : vector<1x128x128xbf16> to vector<128x128xbf16>
    %98 = arith.truncf %95 : vector<128x128xf32> to vector<128x128xbf16>
    %cst_42 = arith.constant dense<0.000000e+00> : vector<128x128xf32>
    %99 = tpu.matmul %98, %97, %cst_42 {dimension_numbers = #tpu.dot_dimension_numbers<[1], [0], [0], [1], [0, 0, 1, 1], [], []>} : vector<128x128xbf16>, vector<128x128xbf16>, vector<128x128xf32> -> vector<128x128xf32>
    %c6 = arith.constant 6 : index
    %c0_43 = arith.constant 0 : index
    %100 = vector.load %arg6[%c6, %c0_43] : memref<24x128xf32, #tpu.memory_space<vmem>>, vector<1x128xf32>
    %101 = vector.broadcast %100 : vector<1x128xf32> to vector<128x128xf32>
    %102 = arith.addf %99, %101 : vector<128x128xf32>
    %103 = arith.truncf %35 : vector<128x128xf32> to vector<128x128xbf16>
    %c2_44 = arith.constant 2 : index
    %c0_45 = arith.constant 0 : index
    %c0_46 = arith.constant 0 : index
    %104 = vector.load %arg3[%c2_44, %c0_45, %c0_46] : memref<8x128x128xbf16, #tpu.memory_space<vmem>>, vector<1x128x128xbf16>
    %105 = vector.shape_cast %104 : vector<1x128x128xbf16> to vector<128x128xbf16>
    %cst_47 = arith.constant dense<0.000000e+00> : vector<128x128xf32>
    %106 = tpu.matmul %103, %105, %cst_47 {dimension_numbers = #tpu.dot_dimension_numbers<[1], [0], [0], [1], [0, 0, 1, 1], [], []>} : vector<128x128xbf16>, vector<128x128xbf16>, vector<128x128xf32> -> vector<128x128xf32>
    %c7 = arith.constant 7 : index
    %c0_48 = arith.constant 0 : index
    %107 = vector.load %arg6[%c7, %c0_48] : memref<24x128xf32, #tpu.memory_space<vmem>>, vector<1x128xf32>
    %108 = vector.broadcast %107 : vector<1x128xf32> to vector<128x128xf32>
    %109 = arith.addf %106, %108 : vector<128x128xf32>
    %c3_49 = arith.constant 3 : index
    %c0_50 = arith.constant 0 : index
    %c0_51 = arith.constant 0 : index
    %110 = vector.load %arg3[%c3_49, %c0_50, %c0_51] : memref<8x128x128xbf16, #tpu.memory_space<vmem>>, vector<1x128x128xbf16>
    %111 = vector.shape_cast %110 : vector<1x128x128xbf16> to vector<128x128xbf16>
    %cst_52 = arith.constant dense<0.000000e+00> : vector<128x128xf32>
    %112 = tpu.matmul %103, %111, %cst_52 {dimension_numbers = #tpu.dot_dimension_numbers<[1], [0], [0], [1], [0, 0, 1, 1], [], []>} : vector<128x128xbf16>, vector<128x128xbf16>, vector<128x128xf32> -> vector<128x128xf32>
    %c8 = arith.constant 8 : index
    %c0_53 = arith.constant 0 : index
    %113 = vector.load %arg6[%c8, %c0_53] : memref<24x128xf32, #tpu.memory_space<vmem>>, vector<1x128xf32>
    %114 = vector.broadcast %113 : vector<1x128xf32> to vector<128x128xf32>
    %115 = arith.addf %112, %114 : vector<128x128xf32>
    %116 = arith.negf %115 : vector<128x128xf32>
    %117 = math.exp %116 : vector<128x128xf32>
    %cst_54 = arith.constant 1.000000e+00 : f32
    %118 = vector.broadcast %cst_54 : f32 to vector<128x128xf32>
    %119 = arith.addf %118, %117 : vector<128x128xf32>
    %120 = arith.divf %118, %119 : vector<128x128xf32>
    %121 = arith.mulf %109, %120 : vector<128x128xf32>
    %122 = arith.addf %102, %121 : vector<128x128xf32>
    %cst_55 = arith.constant 0.00999999977 : f32
    %123 = vector.broadcast %cst_55 : f32 to vector<128x128xf32>
    %124 = arith.mulf %123, %122 : vector<128x128xf32>
    %125 = arith.maximumf %122, %124 : vector<128x128xf32>
    %c9 = arith.constant 9 : index
    %c0_56 = arith.constant 0 : index
    %126 = vector.load %arg6[%c9, %c0_56] : memref<24x128xf32, #tpu.memory_space<vmem>>, vector<1x128xf32>
    %c10 = arith.constant 10 : index
    %c0_57 = arith.constant 0 : index
    %127 = vector.load %arg6[%c10, %c0_57] : memref<24x128xf32, #tpu.memory_space<vmem>>, vector<1x128xf32>
    %cst_58 = arith.constant dense<0.000000e+00> : vector<128xf32>
    %128 = vector.multi_reduction <add>, %125, %cst_58 [0] : vector<128x128xf32> to vector<128xf32>
    %129 = vector.shape_cast %128 : vector<128xf32> to vector<1x128xf32>
    %cst_59 = arith.constant 1.280000e+02 : f32
    %130 = vector.broadcast %cst_59 : f32 to vector<1x128xf32>
    %131 = arith.divf %129, %130 : vector<1x128xf32>
    %132 = arith.mulf %125, %125 : vector<128x128xf32>
    %cst_60 = arith.constant dense<0.000000e+00> : vector<128xf32>
    %133 = vector.multi_reduction <add>, %132, %cst_60 [0] : vector<128x128xf32> to vector<128xf32>
    %134 = vector.shape_cast %133 : vector<128xf32> to vector<1x128xf32>
    %cst_61 = arith.constant 1.280000e+02 : f32
    %135 = vector.broadcast %cst_61 : f32 to vector<1x128xf32>
    %136 = arith.divf %134, %135 : vector<1x128xf32>
    %137 = arith.mulf %131, %131 : vector<1x128xf32>
    %138 = arith.subf %136, %137 : vector<1x128xf32>
    %cst_62 = arith.constant 0.000000e+00 : f32
    %139 = vector.broadcast %cst_62 : f32 to vector<1x128xf32>
    %140 = arith.maximumf %138, %139 : vector<1x128xf32>
    %cst_63 = arith.constant 9.99999974E-6 : f32
    %141 = vector.broadcast %cst_63 : f32 to vector<1x128xf32>
    %142 = arith.addf %140, %141 : vector<1x128xf32>
    %143 = math.rsqrt %142 : vector<1x128xf32>
    %144 = arith.mulf %126, %143 : vector<1x128xf32>
    %145 = arith.mulf %131, %144 : vector<1x128xf32>
    %146 = arith.subf %127, %145 : vector<1x128xf32>
    %147 = vector.broadcast %144 : vector<1x128xf32> to vector<128x128xf32>
    %148 = arith.mulf %125, %147 : vector<128x128xf32>
    %149 = vector.broadcast %146 : vector<1x128xf32> to vector<128x128xf32>
    %150 = arith.addf %148, %149 : vector<128x128xf32>
    %c4_64 = arith.constant 4 : index
    %c0_65 = arith.constant 0 : index
    %c0_66 = arith.constant 0 : index
    %151 = vector.load %arg3[%c4_64, %c0_65, %c0_66] : memref<8x128x128xbf16, #tpu.memory_space<vmem>>, vector<1x128x128xbf16>
    %152 = vector.shape_cast %151 : vector<1x128x128xbf16> to vector<128x128xbf16>
    %153 = arith.truncf %150 : vector<128x128xf32> to vector<128x128xbf16>
    %cst_67 = arith.constant dense<0.000000e+00> : vector<128x128xf32>
    %154 = tpu.matmul %153, %152, %cst_67 {dimension_numbers = #tpu.dot_dimension_numbers<[1], [0], [0], [1], [0, 0, 1, 1], [], []>} : vector<128x128xbf16>, vector<128x128xbf16>, vector<128x128xf32> -> vector<128x128xf32>
    %c11 = arith.constant 11 : index
    %c0_68 = arith.constant 0 : index
    %155 = vector.load %arg6[%c11, %c0_68] : memref<24x128xf32, #tpu.memory_space<vmem>>, vector<1x128xf32>
    %156 = vector.broadcast %155 : vector<1x128xf32> to vector<128x128xf32>
    %157 = arith.addf %154, %156 : vector<128x128xf32>
    %cst_69 = arith.constant 0.00999999977 : f32
    %158 = vector.broadcast %cst_69 : f32 to vector<128x128xf32>
    %159 = arith.mulf %158, %157 : vector<128x128xf32>
    %160 = arith.maximumf %157, %159 : vector<128x128xf32>
    %c12 = arith.constant 12 : index
    %c0_70 = arith.constant 0 : index
    %161 = vector.load %arg6[%c12, %c0_70] : memref<24x128xf32, #tpu.memory_space<vmem>>, vector<1x128xf32>
    %c13 = arith.constant 13 : index
    %c0_71 = arith.constant 0 : index
    %162 = vector.load %arg6[%c13, %c0_71] : memref<24x128xf32, #tpu.memory_space<vmem>>, vector<1x128xf32>
    %cst_72 = arith.constant dense<0.000000e+00> : vector<128xf32>
    %163 = vector.multi_reduction <add>, %160, %cst_72 [0] : vector<128x128xf32> to vector<128xf32>
    %164 = vector.shape_cast %163 : vector<128xf32> to vector<1x128xf32>
    %cst_73 = arith.constant 1.280000e+02 : f32
    %165 = vector.broadcast %cst_73 : f32 to vector<1x128xf32>
    %166 = arith.divf %164, %165 : vector<1x128xf32>
    %167 = arith.mulf %160, %160 : vector<128x128xf32>
    %cst_74 = arith.constant dense<0.000000e+00> : vector<128xf32>
    %168 = vector.multi_reduction <add>, %167, %cst_74 [0] : vector<128x128xf32> to vector<128xf32>
    %169 = vector.shape_cast %168 : vector<128xf32> to vector<1x128xf32>
    %cst_75 = arith.constant 1.280000e+02 : f32
    %170 = vector.broadcast %cst_75 : f32 to vector<1x128xf32>
    %171 = arith.divf %169, %170 : vector<1x128xf32>
    %172 = arith.mulf %166, %166 : vector<1x128xf32>
    %173 = arith.subf %171, %172 : vector<1x128xf32>
    %cst_76 = arith.constant 0.000000e+00 : f32
    %174 = vector.broadcast %cst_76 : f32 to vector<1x128xf32>
    %175 = arith.maximumf %173, %174 : vector<1x128xf32>
    %cst_77 = arith.constant 9.99999974E-6 : f32
    %176 = vector.broadcast %cst_77 : f32 to vector<1x128xf32>
    %177 = arith.addf %175, %176 : vector<1x128xf32>
    %178 = math.rsqrt %177 : vector<1x128xf32>
    %179 = arith.mulf %161, %178 : vector<1x128xf32>
    %180 = arith.mulf %166, %179 : vector<1x128xf32>
    %181 = arith.subf %162, %180 : vector<1x128xf32>
    %182 = vector.broadcast %179 : vector<1x128xf32> to vector<128x128xf32>
    %183 = arith.mulf %160, %182 : vector<128x128xf32>
    %184 = vector.broadcast %181 : vector<1x128xf32> to vector<128x128xf32>
    %185 = arith.addf %183, %184 : vector<128x128xf32>
    %c5_78 = arith.constant 5 : index
    %c0_79 = arith.constant 0 : index
    %c0_80 = arith.constant 0 : index
    %186 = vector.load %arg3[%c5_78, %c0_79, %c0_80] : memref<8x128x128xbf16, #tpu.memory_space<vmem>>, vector<1x128x128xbf16>
    %187 = vector.shape_cast %186 : vector<1x128x128xbf16> to vector<128x128xbf16>
    %188 = arith.truncf %185 : vector<128x128xf32> to vector<128x128xbf16>
    %cst_81 = arith.constant dense<0.000000e+00> : vector<128x128xf32>
    %189 = tpu.matmul %188, %187, %cst_81 {dimension_numbers = #tpu.dot_dimension_numbers<[1], [0], [0], [1], [0, 0, 1, 1], [], []>} : vector<128x128xbf16>, vector<128x128xbf16>, vector<128x128xf32> -> vector<128x128xf32>
    %c14 = arith.constant 14 : index
    %c0_82 = arith.constant 0 : index
    %190 = vector.load %arg6[%c14, %c0_82] : memref<24x128xf32, #tpu.memory_space<vmem>>, vector<1x128xf32>
    %191 = vector.broadcast %190 : vector<1x128xf32> to vector<128x128xf32>
    %192 = arith.addf %189, %191 : vector<128x128xf32>
    %193 = arith.truncf %125 : vector<128x128xf32> to vector<128x128xbf16>
    %c6_83 = arith.constant 6 : index
    %c0_84 = arith.constant 0 : index
    %c0_85 = arith.constant 0 : index
    %194 = vector.load %arg3[%c6_83, %c0_84, %c0_85] : memref<8x128x128xbf16, #tpu.memory_space<vmem>>, vector<1x128x128xbf16>
    %195 = vector.shape_cast %194 : vector<1x128x128xbf16> to vector<128x128xbf16>
    %cst_86 = arith.constant dense<0.000000e+00> : vector<128x128xf32>
    %196 = tpu.matmul %193, %195, %cst_86 {dimension_numbers = #tpu.dot_dimension_numbers<[1], [0], [0], [1], [0, 0, 1, 1], [], []>} : vector<128x128xbf16>, vector<128x128xbf16>, vector<128x128xf32> -> vector<128x128xf32>
    %c15 = arith.constant 15 : index
    %c0_87 = arith.constant 0 : index
    %197 = vector.load %arg6[%c15, %c0_87] : memref<24x128xf32, #tpu.memory_space<vmem>>, vector<1x128xf32>
    %198 = vector.broadcast %197 : vector<1x128xf32> to vector<128x128xf32>
    %199 = arith.addf %196, %198 : vector<128x128xf32>
    %c7_88 = arith.constant 7 : index
    %c0_89 = arith.constant 0 : index
    %c0_90 = arith.constant 0 : index
    %200 = vector.load %arg3[%c7_88, %c0_89, %c0_90] : memref<8x128x128xbf16, #tpu.memory_space<vmem>>, vector<1x128x128xbf16>
    %201 = vector.shape_cast %200 : vector<1x128x128xbf16> to vector<128x128xbf16>
    %cst_91 = arith.constant dense<0.000000e+00> : vector<128x128xf32>
    %202 = tpu.matmul %193, %201, %cst_91 {dimension_numbers = #tpu.dot_dimension_numbers<[1], [0], [0], [1], [0, 0, 1, 1], [], []>} : vector<128x128xbf16>, vector<128x128xbf16>, vector<128x128xf32> -> vector<128x128xf32>
    %c16 = arith.constant 16 : index
    %c0_92 = arith.constant 0 : index
    %203 = vector.load %arg6[%c16, %c0_92] : memref<24x128xf32, #tpu.memory_space<vmem>>, vector<1x128xf32>
    %204 = vector.broadcast %203 : vector<1x128xf32> to vector<128x128xf32>
    %205 = arith.addf %202, %204 : vector<128x128xf32>
    %206 = arith.negf %205 : vector<128x128xf32>
    %207 = math.exp %206 : vector<128x128xf32>
    %cst_93 = arith.constant 1.000000e+00 : f32
    %208 = vector.broadcast %cst_93 : f32 to vector<128x128xf32>
    %209 = arith.addf %208, %207 : vector<128x128xf32>
    %210 = arith.divf %208, %209 : vector<128x128xf32>
    %211 = arith.mulf %199, %210 : vector<128x128xf32>
    %212 = arith.addf %192, %211 : vector<128x128xf32>
    %cst_94 = arith.constant 0.00999999977 : f32
    %213 = vector.broadcast %cst_94 : f32 to vector<128x128xf32>
    %214 = arith.mulf %213, %212 : vector<128x128xf32>
    %215 = arith.maximumf %212, %214 : vector<128x128xf32>
    %c0_95 = arith.constant 0 : index
    %c0_96 = arith.constant 0 : index
    %216 = vector.load %arg4[%c0_95, %c0_96] : memref<128x128xbf16, #tpu.memory_space<vmem>>, vector<128x128xbf16>
    %217 = arith.truncf %215 : vector<128x128xf32> to vector<128x128xbf16>
    %cst_97 = arith.constant dense<0.000000e+00> : vector<128x128xf32>
    %218 = tpu.matmul %217, %216, %cst_97 {dimension_numbers = #tpu.dot_dimension_numbers<[1], [0], [0], [1], [0, 0, 1, 1], [], []>} : vector<128x128xbf16>, vector<128x128xbf16>, vector<128x128xf32> -> vector<128x128xf32>
    %c0_98 = arith.constant 0 : index
    %c0_99 = arith.constant 0 : index
    %219 = vector.load %arg7[%c0_98, %c0_99] : memref<8x128xf32, #tpu.memory_space<vmem>>, vector<1x128xf32>
    %220 = vector.broadcast %219 : vector<1x128xf32> to vector<128x128xf32>
    %221 = arith.addf %218, %220 : vector<128x128xf32>
    %c0_100 = arith.constant 0 : index
    %c0_101 = arith.constant 0 : index
    %c0_102 = arith.constant 0 : index
    %222 = vector.load %arg8[%c0_100, %c0_101, %c0_102] : memref<1x128x128xf32, #tpu.memory_space<vmem>>, vector<1x128x128xf32>
    %223 = vector.shape_cast %222 : vector<1x128x128xf32> to vector<128x128xf32>
    %224 = vector.shape_cast %221 : vector<128x128xf32> to vector<1x128x128xf32>
    tpu.vector_store %arg8[%c0_100, %c0_101, %c0_102], %224 {strides = array<i32>} : memref<1x128x128xf32, #tpu.memory_space<vmem>>, vector<1x128x128xf32>,
    return
  }
  func.func @transform_0(%arg0: i32) -> (i32, i32, i32) {
    %c0_i32 = arith.constant 0 : i32
    %c0_i32_0 = arith.constant 0 : i32
    %c0_i32_1 = arith.constant 0 : i32
    return %arg0, %c0_i32, %c0_i32_0 : i32, i32, i32
  }
  func.func @transform_1(%arg0: i32) -> (i32, i32) {
    %c0_i32 = arith.constant 0 : i32
    %c0_i32_0 = arith.constant 0 : i32
    %c0_i32_1 = arith.constant 0 : i32
    return %c0_i32, %c0_i32_0 : i32, i32
  }
  func.func @transform_2(%arg0: i32) -> (i32, i32, i32) {
    %c0_i32 = arith.constant 0 : i32
    %c0_i32_0 = arith.constant 0 : i32
    %c0_i32_1 = arith.constant 0 : i32
    %c0_i32_2 = arith.constant 0 : i32
    return %c0_i32, %c0_i32_0, %c0_i32_1 : i32, i32, i32
  }
  func.func @transform_3(%arg0: i32) -> (i32, i32) {
    %c0_i32 = arith.constant 0 : i32
    %c0_i32_0 = arith.constant 0 : i32
    %c0_i32_1 = arith.constant 0 : i32
    return %c0_i32, %c0_i32_0 : i32, i32
  }
  func.func @transform_4(%arg0: i32) -> (i32, i32) {
    %c0_i32 = arith.constant 0 : i32
    %c0_i32_0 = arith.constant 0 : i32
    %c0_i32_1 = arith.constant 0 : i32
    return %c0_i32, %c0_i32_0 : i32, i32
  }
  func.func @transform_5(%arg0: i32) -> (i32, i32) {
    %c0_i32 = arith.constant 0 : i32
    %c0_i32_0 = arith.constant 0 : i32
    %c0_i32_1 = arith.constant 0 : i32
    return %c0_i32, %c0_i32_0 : i32, i32
  }
  func.func @transform_6(%arg0: i32) -> (i32, i32) {
    %c0_i32 = arith.constant 0 : i32
    %c0_i32_0 = arith.constant 0 : i32
    %c0_i32_1 = arith.constant 0 : i32
    return %c0_i32, %c0_i32_0 : i32, i32
  }
  func.func @transform_7(%arg0: i32) -> (i32, i32, i32) {
    %c0_i32 = arith.constant 0 : i32
    %c0_i32_0 = arith.constant 0 : i32
    %c0_i32_1 = arith.constant 0 : i32
    return %arg0, %c0_i32, %c0_i32_0 : i32, i32, i32
  }
}

</mosaic_0001>

<bundles_post_ra>
// kernel: tpu_custom_call.1
= control target key start
LH: loop header
LB: loop body
LE: loop exit
PB: predicated region body
PF: predicated region fallthrough
CT: control target
= control target key end

     0   :  { %s5875_s0 = inlined_call_operand.hbm [shape: f32[2,128,128], index: 0, kind: input, shape index: {}]   ;;  %s5876_s1 = inlined_call_operand.hbm [shape: bf16[128,128], index: 1, kind: input, shape index: {}]   ;;  %s5877_s2 = inlined_call_operand.hbm [shape: bf16[8,128,128], index: 2, kind: input, shape index: {}]   ;;  %s5878_s3 = inlined_call_operand.hbm [shape: bf16[128,128], index: 3, kind: input, shape index: {}]   ;;  %s5879_s4 = inlined_call_operand.hbm [shape: f32[8,128], index: 4, kind: input, shape index: {}]   ;;  %s5880_s5 = inlined_call_operand.hbm [shape: f32[24,128], index: 5, kind: input, shape index: {}]   ;;  %s5881_s6 = inlined_call_operand.hbm [shape: f32[8,128], index: 6, kind: input, shape index: {}]   ;;  %s5882_s7 = inlined_call_operand.hbm [shape: f32[2,128,128], index: 7, kind: output, shape index: {}]  }
   0x1   :  { %5885 = sst [smem:[#allocation20_spill]] %s5876_s1 }
   0x2   :  { %5886 = sst [smem:[#allocation21_spill]] %s5877_s2 }
   0x3   :  { %12 = vsyncpa [#allocation3], 0 }
   0x4   :  { %14 = vsyncpa [#allocation3 + $0x1], 0 }
   0x5   :  { %15 = vsyncpa [#allocation6], 0 }
   0x6   :  { %16 = vsyncpa [#allocation9], 0 }
   0x7   :  { %17 = vsyncpa [#allocation12], 0 }
   0x8   :  { %18 = vsyncpa [#allocation4], 0 }
   0x9   :  { %20 = vsyncpa [#allocation4 + $0x1], 0  ;;  %s4280_s24 = smov 0   ;;  %s4282_s25 = smov 0  }
   0xa   :  { %s4284_s26 = smov 0   ;;  %s4286_s27 = smov 0  }
   0xb LB: > { %s5887_s1 = sld [smem:[#allocation20_spill]]  ;;  %s4304_s8 = sadd.s32 4294967295, %s4225_s27   ;;  %s4225_s27 = sphi %s4286_s27, %s5946_s27   ;;  %s4221_s26 = sphi %s4284_s26, %s5945_s26   ;;  %s4217_s25 = sphi %s4282_s25, %s5944_s25   ;;  %s4213_s24 = sphi %s4280_s24, %s5943_s24  }
   0xc   : > { %p3198_p0 = scmp.ge.s32.totalorder %s4225_s27, 1  ;;  %p47_p1 = scmp.eq.s32.totalorder %s4304_s8, 0 }
   0xd   : > { %p209_p2 = scmp.lt.s32.totalorder %s4225_s27, 3  ;;  %s4227_s10 = smov [#allocation5]  }
   0xe   : > { %s222_s11 = sshll.u32 %s4227_s10, 4  ;;  %s248_s14 = sshll.u32 %s5878_s3, 4  ;;  %s223_s11 = int_to_ptr.vmem [resolvable:$true] %s222_s11  ;;  %s249_s14 = int_to_ptr.hbm [resolvable:$true] %s248_s14 }
   0xf   : > { %p4309_p3 = pnand %p3198_p0, %p209_p2  ;;  %s274_s18 = sshll.u32 %s5880_s5, 4  ;;  %s275_s18 = int_to_ptr.hbm [resolvable:$true] %s274_s18 }
  0x10   : > { %s4228_s19 = smov [#allocation8]   ;;  %s4229_s21 = smov 64  }
  0x11   : > { %s220_s30 = sshll.u32 %s5887_s1, 4  ;;  %p3701_p4 = pneg %p4309_p3  ;;  %s221_s30 = int_to_ptr.hbm [resolvable:$true] %s220_s30 }
  0x12   : > { %s250_s20 = sshll.u32 %s4228_s19, 4  ;;  %s4230_s22 = smov 4   ;;  %s251_s20 = int_to_ptr.vmem [resolvable:$true] %s250_s20 }
  0x13   : > { %p4321_p6 = pnand %p3701_p4, %p47_p1  ;;  %s4231_s23 = smov [#allocation11]  }
  0x14   : > { %s276_s28 = sshll.u32 %s4231_s23, 4  ;;  %s5890_s2 = sld [smem:[#allocation21_spill]]  ;;  %s277_s28 = int_to_ptr.vmem [resolvable:$true] %s276_s28 }
  0x15   : > { %3704 = dma.hbm_to_vmem [thread:$0]  (!%p4321_p6), %s221_s30, 1024, %s223_s11, [#allocation6], %s4229_s21, %s4229_s21, %s4230_s22  }
  0x16   : > { %3710 = dma.hbm_to_vmem [thread:$0]  (!%p4321_p6), %s249_s14, 1024, %s251_s20, [#allocation9], %s4229_s21, %s4229_s21, %s4230_s22  }
  0x17   : > { %s5883_s13 = smov 128   ;;  %s5884_s16 = smov 8  }
  0x18   : > { %3716 = dma.hbm_to_vmem [thread:$0]  (!%p4321_p6), %s275_s18, 384, %s277_s28, [#allocation12], %s5883_s13, %s5883_s13, %s5884_s16  }
  0x19   : > { %s4234_s30 = smov [#allocation7]   ;;  %s263_s19 = sshll.u32 %s5879_s4, 4  ;;  %s264_s19 = int_to_ptr.hbm [resolvable:$true] %s263_s19 }
  0x1a   : > { %s234_s12 = sshll.u32 %s5890_s2, 4  ;;  %s236_s11 = sshll.u32 %s4234_s30, 4  ;;  %s235_s12 = int_to_ptr.hbm [resolvable:$true] %s234_s12  ;;  %s237_s11 = int_to_ptr.vmem [resolvable:$true] %s236_s11 }
  0x1b   : > { %3707 = dma.hbm_to_vmem [thread:$0]  (!%p4321_p6), %s235_s12, 8192, %s237_s11, [#allocation6], %s4229_s21, %s4229_s21, %s4230_s22  }
  0x1c   : > { %s289_s18 = sshll.u32 %s5881_s6, 4  ;;  %s4235_s28 = smov [#allocation10]   ;;  %s290_s18 = int_to_ptr.hbm [resolvable:$true] %s289_s18 }
  0x1d   : > { %s265_s29 = sshll.u32 %s4235_s28, 4  ;;  %s4236_s10 = smov [#allocation13]   ;;  %s266_s29 = int_to_ptr.vmem [resolvable:$true] %s265_s29 }
  0x1e   : > { %3713 = dma.hbm_to_vmem [thread:$0]  (!%p4321_p6), %s264_s19, 128, %s266_s29, [#allocation9]  }
  0x1f   : > { %s291_s21 = sshll.u32 %s4236_s10, 4  ;;  %s3197_s22 = sadd.s32 4294967294, %s4225_s27   ;;  %s292_s21 = int_to_ptr.vmem [resolvable:$true] %s291_s21 }
  0x20   : > { %3719 = dma.hbm_to_vmem [thread:$0]  (!%p4321_p6), %s290_s18, 128, %s292_s21, [#allocation12]  }
  0x21   : > { %s4354_s12 = sadd.s32 1, %s4225_s27   ;;  %s33_s11 = sadd.s32 1, %s4221_s26 }
  0x22   : > { %s30_s30 = ssub.s32 %s4225_s27, %s4354_s12  ;;  %p40_p8 = scmp.ne.s32.totalorder %s4221_s26, %s4217_s25 }
  0x23   : > { %p31_p7 = scmp.eq.s32.totalorder %s30_s30, 0  ;;  %p41_p9 = scmp.eq.s32.totalorder %s4225_s27, 0 }
  0x24   : > { %p46_p10 = scmp.ne.s32.totalorder %s4217_s25, %s4213_s24  ;;  %p196_p13 = scmp.eq.s32.totalorder %s4304_s8, 1 }
  0x25   : > { %s4365_s14 = scalar_select %p31_p7, %s4221_s26, %s33_s11  }
  0x26   : > { %p4367_p11 = por %p41_p9, %p40_p8  ;;  %p4373_p12 = por %p47_p1, %p46_p10 }
  0x27   : > { %p202_p0 = scmp.eq.s32.totalorder %s3197_s22, 1  ;;  %p3734_p2 = scmp.lt.s32.totalorder %s4225_s27, 2 }
  0x28   : > { %s302_s19 = sand.u32 1, %s4221_s26   ;;  %p4380_p4 = por %p196_p13, %p40_p8 }
  0x29   : > { %p4384_p6 = por %p202_p0, %p46_p10  ;;  %s3206_s18 = sshll.u32 %s302_s19, 7 }
  0x2a   : > { %s3575_s28 = sshll.u32 %s4225_s27, 7  ;;  %s306_s30 = scalar_lea.vmem [#allocation2], %s3206_s18 }
  0x2b   : > { %s311_s21 = scalar_lea.hbm %s5875_s0, %s3575_s28  ;;  %s314_s11 = sshll.u32 %s306_s30, 4  ;;  %s315_s11 = int_to_ptr.vmem [resolvable:$true] %s314_s11 }
  0x2c   : > { %s312_s13 = sshll.u32 %s311_s21, 4  ;;  %p4394_p7 = pnand %p3734_p2, %p4367_p11  ;;  %s313_s13 = int_to_ptr.hbm [resolvable:$true] %s312_s13 }
  0x2d   : > { %s303_s16 = scalar_lea.sflag [#allocation3], %s302_s19  ;;  %s4117_s1 = sshra.s32 %s313_s13, 4  ;;  %s4118_s1 = int_to_ptr.hbm [resolvable:$true] %s4117_s1 }
  0x2e   : > { %s4119_s2 = scalar_lea.hbm %s4118_s1, 128  ;;  %p4121_p9 = pneg %p4394_p7 }
  0x2f   : > { %p4120_p8 = scmp.ne.s32.totalorder %s4118_s1, %s4119_s2  ;;  %s4124_s29 = scalar_lea.hbm %s5875_s0, 256 }
  0x30   : > { %p4125_p11 = scmp.lt.s32.totalorder %s4118_s1, %s5875_s0  ;;  %p4126_p0 = scmp.lt.s32.totalorder %s4124_s29, %s4119_s2 }
  0x31   : > { %p4122_p10 = pnand %p4121_p9, %p4120_p8 }
  0x32   : > { %p4127_p2 = por %p4126_p0, %p4125_p11 }
  0x33   : > { %p4123_p13 = pneg %p4122_p10 }
  0x35   : > { %p4128_p5 = pnand %p4127_p2, %p4123_p13 }
  0x37   : > { %4131 = shalt.err (!%p4128_p5)
}
  0x38   : > { %s5896_s19 = smov 8   ;;  %s5897_s21 = smov 128  }
  0x39   : > { %3723 = dma.hbm_to_vmem [thread:$0]  (!%p4394_p7), %s313_s13, 2048, %s315_s11, %s303_s16, %s5897_s21, %s5897_s21, %s5896_s19  }
  0x3a   : > { %326 = sbr.rel (%p4309_p3) target bundleno = 1692 (0x69c), region = 48  ;;  %s4414_s30 = sand.u32 (!%p4309_p3), 1, %s4217_s25  }
  0x3b   : > { %s3210_s1 = sshll.u32 (!%p4309_p3), %s4414_s30, 7  ;;  %s329_s2 = scalar_lea.sflag (!%p4309_p3), [#allocation3], %s4414_s30 }
  0x3c   : > { %s4420_s18 = scalar_lea.vmem (!%p4309_p3), [#allocation2], %s3210_s1 }
  0x3f   : > { %4192 = dma.done.wait (%p4373_p12), %s329_s2, 2048  }
  0x40   : > { %4194 = vsyncadd (%p4373_p12), %s329_s2, 4294965248 }
  0x41   : > { %4196 = dma.done.wait (%p47_p1), [#allocation6], 9216  }
  0x42   : > { %4198 = vsyncadd (%p47_p1), [#allocation6], 4294958080 }
  0x43   : > { %4200 = dma.done.wait (%p47_p1), [#allocation9], 1152  }
  0x44   : > { %4202 = vsyncadd (%p47_p1), [#allocation9], 4294966144 }
  0x45   : > { %4204 = dma.done.wait (%p47_p1), [#allocation12], 512  }
  0x46   : > { %4206 = vsyncadd (%p47_p1), [#allocation12], 4294966784  ;;  %v3583_v0 = vld [vmem:[#allocation5 + $0x38] sm:$0xff]  ;;  %v3582_v1 = vld [vmem:[#allocation5 + $0x30] sm:$0xff]  ;;  %v4237_v37 = vmov 128.0   ;;  %s5823_s9 = scalar_lea.vmem [#allocation14], %s3210_s1 }
  0x47   : > { %604 = vmatpush.bf16.msra.mxu0 %v3583_v0  ;;  %3657 = vmatpush.bf16.msra.mxu2 %v3583_v0  ;;  %v4439_v2 = vld [vmem:[%s4420_s18] sm:$0xff]  ;;  %v4442_v3 = vld [vmem:[%s4420_s18 + $0x8] sm:$0xff]  ;;  %v4445_v4 = vld [vmem:[%s4420_s18 + $0x10] sm:$0xff]  ;;  %3797 = vrcp.f32 %v4237_v37  ;;  %s3656_s13 = sshll.u32 %s4304_s8, 7  ;;  %s3064_s22 = sshll.u32 %s5823_s9, 4  ;;  %s3065_s22 = int_to_ptr.vmem [resolvable:$true] %s3064_s22 }
  0x48   : > { %v412_v5 = vadd.f32 %v4442_v3, %v4439_v2  ;;  %v4450_v6 = vld [vmem:[%s4420_s18 + $0x18] sm:$0xff]  ;;  %v441_v7 = vmul.f32 %v4439_v2, %v4439_v2  ;;  %v442_v8 = vmul.f32 %v4442_v3, %v4442_v3  ;;  %v3581_v9 = vld [vmem:[#allocation5 + $0x28] sm:$0xff]  ;;  %v4458_v11 = vld [vmem:[%s4420_s18 + $0x20] sm:$0xff]  ;;  %v443_v12 = vmul.f32 %v4445_v4, %v4445_v4  ;;  %s3063_s11 = scalar_lea.hbm %s5882_s7, %s3656_s13  ;;  %s3052_s29 = scalar_lea.sflag [#allocation4], %s4414_s30 }
  0x49   : > { %v3580_v13 = vld [vmem:[#allocation5 + $0x20] sm:$0xff]  ;;  %v4463_v14 = vld [vmem:[%s4420_s18 + $0x28] sm:$0xff]  ;;  %v4467_v16 = vld [vmem:[%s4420_s18 + $0x30] sm:$0xff]  ;;  %v444_v17 = vmul.f32 %v4450_v6, %v4450_v6  ;;  %v445_v20 = vmul.f32 %v4458_v11, %v4458_v11  ;;  %s3066_s28 = sshll.u32 %s3063_s11, 4  ;;  %s4167_s21 = scalar_lea.hbm %s5882_s7, 256  ;;  %s3067_s28 = int_to_ptr.hbm [resolvable:$true] %s3066_s28 }
  0x4a   : > { %v413_v10 = vadd.f32 %v412_v5, %v4445_v4  ;;  %v457_v18 = vadd.f32 %v442_v8, %v441_v7  ;;  %v4476_v23 = vld [vmem:[%s4420_s18 + $0x38] sm:$0xff]  ;;  %v446_v24 = vmul.f32 %v4463_v14, %v4463_v14  ;;  %v4482_v28 = vld [vmem:[%s4420_s18 + $0x40] sm:$0xff]  ;;  %v447_v29 = vmul.f32 %v4467_v16, %v4467_v16  ;;  %v4488_v32 = vld [vmem:[%s4420_s18 + $0x48] sm:$0xff]  ;;  %s4161_s10 = sshra.s32 %s3067_s28, 4  ;;  %s4162_s10 = int_to_ptr.hbm [resolvable:$true] %s4161_s10 }
  0x4b   : > { %605 = vmatpush.bf16.msra.mxu0 %v3582_v1  ;;  %3658 = vmatpush.bf16.msra.mxu2 %v3582_v1  ;;  %v3579_v26 = vld [vmem:[#allocation5 + $0x18] sm:$0xff]  ;;  %v448_v33 = vmul.f32 %v4476_v23, %v4476_v23  ;;  %v3578_v35 = vld [vmem:[#allocation5 + $0x10] sm:$0xff]  ;;  %v449_v39 = vmul.f32 %v4482_v28, %v4482_v28  ;;  %v450_v43 = vmul.f32 %v4488_v32, %v4488_v32  ;;  %v3577_v45 = vld [vmem:[#allocation5 + $0x8] sm:$0xff]  ;;  %s4163_s17 = scalar_lea.hbm %s4162_s10, 128  ;;  %p4168_p12 = scmp.lt.s32.totalorder %s4162_s10, %s5882_s7 }
  0x4c   : > { %v414_v15 = vadd.f32 %v413_v10, %v4450_v6  ;;  %v458_v21 = vadd.f32 %v457_v18, %v443_v12  ;;  %v4494_v38 = vld [vmem:[%s4420_s18 + $0x50] sm:$0xff]  ;;  %v4500_v42 = vld [vmem:[%s4420_s18 + $0x58] sm:$0xff]  ;;  %v4506_v47 = vld [vmem:[%s4420_s18 + $0x60] sm:$0xff]  ;;  %p4164_p1 = scmp.ne.s32.totalorder %s4162_s10, %s4163_s17  ;;  %p4169_p7 = scmp.lt.s32.totalorder %s4167_s21, %s4163_s17 }
  0x4d   : > { %v451_v48 = vmul.f32 %v4494_v38, %v4494_v38  ;;  %v3798_v50 = vpop.eup %3797  ;;  %v4512_v52 = vld [vmem:[%s4420_s18 + $0x68] sm:$0xff]  ;;  %v452_v53 = vmul.f32 %v4500_v42, %v4500_v42  ;;  %v3576_v55 = vld [vmem:[#allocation5] sm:$0xff]  ;;  %v4518_v57 = vld [vmem:[%s4420_s18 + $0x70] sm:$0xff]  ;;  %v453_v59 = vmul.f32 %v4506_v47, %v4506_v47 }
  0x4e   : > { %v415_v19 = vadd.f32 %v414_v15, %v4458_v11  ;;  %v459_v25 = vadd.f32 %v458_v21, %v444_v17  ;;  %v434_v58 = vmul.f32 128.0, %v3798_v50  ;;  %v4524_v62 = vld [vmem:[%s4420_s18 + $0x78] sm:$0xff]  ;;  %v454_v63 = vmul.f32 %v4512_v52, %v4512_v52  ;;  %p4165_p3 = pnand %p4164_p1, %p4380_p4  ;;  %p4170_p8 = por %p4169_p7, %p4168_p12 }
  0x4f   : > { %606 = vmatpush.bf16.msra.mxu0 %v3581_v9  ;;  %3659 = vmatpush.bf16.msra.mxu2 %v3581_v9  ;;  %v455_v7 = vmul.f32 %v4518_v57, %v4518_v57  ;;  %v456_v10 = vmul.f32 %v4524_v62, %v4524_v62  ;;  %vm438_vm0 = vweird.f32 %v3798_v50 }
  0x50   : > { %v416_v22 = vadd.f32 %v415_v19, %v4463_v14  ;;  %v460_v30 = vadd.f32 %v459_v25, %v445_v20  ;;  %v435_v5 = vsub.f32 1.0, %v434_v58  ;;  %p4166_p5 = pneg %p4165_p3 }
  0x52   : > { %v417_v27 = vadd.f32 %v416_v22, %v4467_v16  ;;  %v461_v34 = vadd.f32 %v460_v30, %v446_v24  ;;  %v436_v15 = vmul.f32 %v3798_v50, %v435_v5  ;;  %p4171_p9 = pnand %p4170_p8, %p4166_p5 }
  0x53   : > { %607 = vmatpush.bf16.msra.mxu0 %v3580_v13  ;;  %3660 = vmatpush.bf16.msra.mxu2 %v3580_v13 }
  0x54   : > { %v418_v31 = vadd.f32 %v417_v27, %v4476_v23  ;;  %v462_v40 = vadd.f32 %v461_v34, %v447_v29  ;;  %v437_v21 = vadd.f32 %v3798_v50, %v436_v15 }
  0x56   : > { %v419_v36 = vadd.f32 %v418_v31, %v4482_v28  ;;  %v463_v44 = vadd.f32 %v462_v40, %v448_v33  ;;  %v4534_v27 = vsel %vm438_vm0, %v3798_v50, %v437_v21  ;;  %v3614_v21 = vld [vmem:[#allocation7 + $0xf0] sm:$0xff] }
  0x57   : > { %608 = vmatpush.bf16.msra.mxu0 %v3579_v26  ;;  %3661 = vmatpush.bf16.msra.mxu2 %v3579_v26 }
  0x58   : > { %v420_v41 = vadd.f32 %v419_v36, %v4488_v32  ;;  %v464_v49 = vadd.f32 %v463_v44, %v449_v39 }
  0x5a   : > { %v421_v46 = vadd.f32 %v420_v41, %v4494_v38  ;;  %v465_v54 = vadd.f32 %v464_v49, %v450_v43  ;;  %v410_v49 = vld [vmem:[#allocation10] sm:$0x1] }
  0x5b   : > { %609 = vmatpush.bf16.msra.mxu0 %v3578_v35  ;;  %3662 = vmatpush.bf16.msra.mxu2 %v3578_v35 }
  0x5c   : > { %v422_v51 = vadd.f32 %v421_v46, %v4500_v42  ;;  %v466_v60 = vadd.f32 %v465_v54, %v451_v48  ;;  %v411_v54 = vld [vmem:[#allocation10 + $0x1] sm:$0x1] }
  0x5e   : > { %v423_v56 = vadd.f32 %v422_v51, %v4506_v47  ;;  %v467_v0 = vadd.f32 %v466_v60, %v452_v53 }
  0x5f   : > { %610 = vmatpush.bf16.msra.mxu0 %v3577_v45  ;;  %3663 = vmatpush.bf16.msra.mxu2 %v3577_v45 }
  0x60   : > { %v424_v61 = vadd.f32 %v423_v56, %v4512_v52  ;;  %v468_v8 = vadd.f32 %v467_v0, %v453_v59 }
  0x62   : > { %v425_v1 = vadd.f32 %v424_v61, %v4518_v57  ;;  %v469_v12 = vadd.f32 %v468_v8, %v454_v63 }
  0x63   : > { %611 = vmatpush.bf16.msra.mxu0 %v3576_v55  ;;  %3664 = vmatpush.bf16.msra.mxu2 %v3576_v55 }
  0x64   : > { %v426_v9 = vadd.f32 %v425_v1, %v4524_v62  ;;  %v470_v17 = vadd.f32 %v469_v12, %v455_v7 }
  0x66   : > { %v427_v13 = vrot.slane %v426_v9, 4  ;;  %v471_v19 = vadd.f32 %v470_v17, %v456_v10 }
  0x68   : > { %v428_v18 = vadd.f32 %v427_v13, %v426_v9  ;;  %v472_v22 = vrot.slane %v471_v19, 4 }
  0x6a   : > { %v429_v20 = vrot.slane %v428_v18, 2  ;;  %v473_v25 = vadd.f32 %v472_v22, %v471_v19 }
  0x6c   : > { %v430_v24 = vadd.f32 %v429_v20, %v428_v18  ;;  %v474_v29 = vrot.slane %v473_v25, 2  ;;  %v3615_v20 = vld [vmem:[#allocation7 + $0xf8] sm:$0xff] }
  0x6d   : > { %1381 = vmatpush.bf16.msrb.mxu0 %v3615_v20 }
  0x6e   : > { %v431_v26 = vrot.slane %v430_v24, 1  ;;  %v475_v31 = vadd.f32 %v474_v29, %v473_v25 }
  0x70   : > { %v432_v30 = vadd.f32 %v431_v26, %v430_v24  ;;  %v476_v34 = vrot.slane %v475_v31, 1 }
  0x71   : > { %1382 = vmatpush.bf16.msrb.mxu0 %v3614_v21 }
  0x72   : > { %v440_v33 = vmul.f32 %v4534_v27, %v432_v30  ;;  %v477_v35 = vadd.f32 %v476_v34, %v475_v31  ;;  %v3612_v30 = vld [vmem:[#allocation7 + $0xe0] sm:$0xff] }
  0x74   : > { %v479_v36 = vmul.f32 %v440_v33, %v440_v33  ;;  %v478_v37 = vmul.f32 %v477_v35, %v4534_v27 }
  0x76   : > { %v480_v39 = vsub.f32 %v478_v37, %v479_v36 }
  0x78   : > { %v481_v40 = vmax.f32 %v480_v39, 0.0 }
  0x7a   : > { %v482_v41 = vadd.f32 1e-05, %v481_v40 }
  0x7c   : > { %3799 = vrsqrt.f32 %v482_v41  ;;  %vm489_vm1 = vweird.f32 %v482_v41 }
  0x82   : > { %v3800_v43 = vpop.eup %3799 }
  0x83   : > { %v484_v44 = vmul.f32 %v3800_v43, %v482_v41  ;;  %vm490_vm2 = vweird.f32 %v3800_v43  ;;  %v3611_v41 = vld [vmem:[#allocation7 + $0xd8] sm:$0xff] }
  0x84   : > { %vm491_vm3 = vmor %vm489_vm1, %vm490_vm2 }
  0x85   : > { %v485_v45 = vmul.f32 %v3800_v43, %v484_v44  ;;  %v3609_v44 = vld [vmem:[#allocation7 + $0xc8] sm:$0xff] }
  0x87   : > { %v486_v46 = vmul.f32 0.5, %v485_v45 }
  0x89   : > { %v487_v48 = vsub.f32 1.5, %v486_v46 }
  0x8b   : > { %v488_v50 = vmul.f32 %v3800_v43, %v487_v48 }
  0x8d   : > { %v492_v51 = vsel %vm491_vm3, %v3800_v43, %v488_v50  ;;  %v3610_v43 = vld [vmem:[#allocation7 + $0xd0] sm:$0xff] }
  0x8e   : > { %v493_v53 = vmul.f32 %v492_v51, %v410_v49 }
  0x90   : > { %v494_v55 = vmul.f32 %v493_v53, %v440_v33  ;;  %v496_v56 = vperm.slane %v493_v53, 0 }
  0x92   : > { %v495_v58 = vsub.f32 %v411_v54, %v494_v55  ;;  %v497_v59 = vmul.f32 %v496_v56, %v4439_v2  ;;  %v498_v60 = vmul.f32 %v496_v56, %v4442_v3  ;;  %v505_v61 = vmul.f32 %v496_v56, %v4482_v28 }
  0x93   : > { %v506_v63 = vmul.f32 %v496_v56, %v4488_v32  ;;  %v499_v12 = vmul.f32 %v496_v56, %v4445_v4  ;;  %v500_v13 = vmul.f32 %v496_v56, %v4450_v6  ;;  %v507_v2 = vmul.f32 %v496_v56, %v4494_v38 }
  0x94   : > { %v513_v0 = vperm.slane %v495_v58, 0  ;;  %v508_v3 = vmul.f32 %v496_v56, %v4500_v42  ;;  %v501_v22 = vmul.f32 %v496_v56, %v4458_v11  ;;  %v502_v4 = vmul.f32 %v496_v56, %v4463_v14  ;;  %v3613_v42 = vld [vmem:[#allocation7 + $0xe8] sm:$0xff] }
  0x95   : > { %v509_v6 = vmul.f32 %v496_v56, %v4506_v47  ;;  %v510_v38 = vmul.f32 %v496_v56, %v4512_v52  ;;  %1383 = vmatpush.bf16.msrb.mxu0 %v3613_v42  ;;  %v503_v11 = vmul.f32 %v496_v56, %v4467_v16  ;;  %v504_v14 = vmul.f32 %v496_v56, %v4476_v23  ;;  %v3608_v16 = vld [vmem:[#allocation7 + $0xc0] sm:$0xff] }
  0x96   : > { %v514_v1 = vadd.f32 %v513_v0, %v497_v59  ;;  %v515_v5 = vadd.f32 %v513_v0, %v498_v60  ;;  %v522_v7 = vadd.f32 %v513_v0, %v505_v61  ;;  %v523_v8 = vadd.f32 %v513_v0, %v506_v63 }
  0x97   : > { %v516_v28 = vadd.f32 %v513_v0, %v499_v12  ;;  %v517_v15 = vadd.f32 %v513_v0, %v500_v13  ;;  %v524_v32 = vadd.f32 %v513_v0, %v507_v2  ;;  %v525_v17 = vadd.f32 %v513_v0, %v508_v3 }
  0x98   : > { %v546_v9 = vpack.c.bf16 %v515_v5, %v514_v1  ;;  %v550_v10 = vpack.c.bf16 %v523_v8, %v522_v7  ;;  %v518_v24 = vadd.f32 %v513_v0, %v501_v22  ;;  %v519_v25 = vadd.f32 %v513_v0, %v502_v4 }
  0x99   : > { %v547_v18 = vpack.c.bf16 %v517_v15, %v516_v28  ;;  %v551_v19 = vpack.c.bf16 %v525_v17, %v524_v32  ;;  %v526_v26 = vadd.f32 %v513_v0, %v509_v6  ;;  %v527_v29 = vadd.f32 %v513_v0, %v510_v38  ;;  %1384 = vmatpush.bf16.msrb.mxu0 %v3612_v30 }
  0x9a   : > { %612 = vmatmul.bf16.vlgmr.msra.gmra.mxu0 %v546_v9  ;;  %632 = vmatmul.bf16.vlgmr.msra.gmra.mxu2 %v550_v10  ;;  %v548_v31 = vpack.c.bf16 %v519_v25, %v518_v24  ;;  %v511_v47 = vmul.f32 %v496_v56, %v4518_v57  ;;  %v512_v52 = vmul.f32 %v496_v56, %v4524_v62  ;;  %v4554_v57 = vld [vmem:[#allocation11] ss:$0 sm:$0xff] }
  0x9b   : > { %v552_v33 = vpack.c.bf16 %v527_v29, %v526_v26  ;;  %v520_v34 = vadd.f32 %v513_v0, %v503_v11  ;;  %v521_v35 = vadd.f32 %v513_v0, %v504_v14 }
  0x9c   : > { %v528_v36 = vadd.f32 %v513_v0, %v511_v47  ;;  %v529_v37 = vadd.f32 %v513_v0, %v512_v52 }
  0x9d   : > { %v549_v39 = vpack.c.bf16 %v521_v35, %v520_v34  ;;  %1385 = vmatpush.bf16.msrb.mxu0 %v3611_v41 }
  0x9e   : > { %v553_v40 = vpack.c.bf16 %v529_v37, %v528_v36 }
  0xa1   : > { %1386 = vmatpush.bf16.msrb.mxu0 %v3610_v43 }
  0xa5   : > { %1387 = vmatpush.bf16.msrb.mxu0 %v3609_v44 }
  0xa9   : > { %1388 = vmatpush.bf16.msrb.mxu0 %v3608_v16 }
  0xaa   : > { %617 = vmatmul.bf16.gmra.mxu0 %v547_v18  ;;  %637 = vmatmul.bf16.gmra.mxu2 %v551_v19 }
  0xba   : > { %622 = vmatmul.bf16.gmra.mxu0 %v548_v31  ;;  %642 = vmatmul.bf16.gmra.mxu2 %v552_v33 }
  0xca   : > { %627 = vmatmul.bf16.gmra.mxu0 %v549_v39  ;;  %647 = vmatmul.bf16.gmra.mxu2 %v553_v40 }
 0x117   : > { %v613_v23 = vpop.f32.mrf.mxu0 }
 0x118   : > { %v614_v62 = vadd.f32 %v4554_v57, %v613_v23 }
 0x11a   : > { %v653_v48 = vmul.f32 0.01, %v614_v62 }
 0x11c   : > { %v4558_v51 = vmax.f32 %v614_v62, %v653_v48 }
 0x11d   : > { %v633_v45 = vpop.f32.mrf.mxu2 }
 0x11e   : > { %v709_v22 = vmul.f32 %v4558_v51, %v4558_v51  ;;  %v634_v42 = vadd.f32 %v4554_v57, %v633_v45 }
 0x11f   : > { %v615_v46 = vpop.f32.mrf.mxu0 }
 0x120   : > { %v616_v49 = vadd.f32 %v4554_v57, %v615_v46  ;;  %v661_v47 = vmul.f32 0.01, %v634_v42 }
 0x122   : > { %v654_v50 = vmul.f32 0.01, %v616_v49  ;;  %v4617_v62 = vmax.f32 %v634_v42, %v661_v47 }
 0x124   : > { %v4560_v53 = vmax.f32 %v616_v49, %v654_v50 }
 0x125   : > { %v635_v54 = vpop.f32.mrf.mxu2 }
 0x126   : > { %v4564_v55 = vpack.c.bf16 %v4560_v53, %v4558_v51  ;;  %v710_v20 = vmul.f32 %v4560_v53, %v4560_v53  ;;  %v687_v4 = vadd.f32 %v4560_v53, %v4558_v51  ;;  %v636_v29 = vadd.f32 %v4554_v57, %v635_v54 }
 0x127   : > { %v618_v56 = vpop.f32.mrf.mxu0 }
 0x128   : > { %1389 = vmatmul.bf16.vlgmr.msrb.gmra.mxu0 %v4564_v55  ;;  %v619_v58 = vadd.f32 %v4554_v57, %v618_v56  ;;  %v725_v24 = vadd.f32 %v710_v20, %v709_v22  ;;  %v662_v40 = vmul.f32 0.01, %v636_v29 }
 0x12a   : > { %v655_v61 = vmul.f32 0.01, %v619_v58  ;;  %v4623_v54 = vmax.f32 %v636_v29, %v662_v40 }
 0x12c   : > { %v4569_v1 = vmax.f32 %v619_v58, %v655_v61 }
 0x12d   : > { %v638_v59 = vpop.f32.mrf.mxu2 }
 0x12e   : > { %v711_v6 = vmul.f32 %v4569_v1, %v4569_v1  ;;  %v688_v25 = vadd.f32 %v687_v4, %v4569_v1  ;;  %v639_v52 = vadd.f32 %v4554_v57, %v638_v59  ;;  %v3591_v4 = vld [vmem:[#allocation7 + $0x38] sm:$0xff] }
 0x12f   : > { %v620_v60 = vpop.f32.mrf.mxu0  ;;  %872 = vmatpush.bf16.msra.mxu1 %v3591_v4  ;;  %3665 = vmatpush.bf16.msra.mxu3 %v3591_v4 }
 0x130   : > { %v621_v63 = vadd.f32 %v4554_v57, %v620_v60  ;;  %v726_v31 = vadd.f32 %v725_v24, %v711_v6  ;;  %v663_v45 = vmul.f32 0.01, %v639_v52 }
 0x132   : > { %v656_v0 = vmul.f32 0.01, %v621_v63 }
 0x134   : > { %v4571_v5 = vmax.f32 %v621_v63, %v656_v0  ;;  %v717_v0 = vmul.f32 %v4617_v62, %v4617_v62 }
 0x135   : > { %v640_v7 = vpop.f32.mrf.mxu2 }
 0x136   : > { %v4575_v8 = vpack.c.bf16 %v4571_v5, %v4569_v1  ;;  %v712_v26 = vmul.f32 %v4571_v5, %v4571_v5  ;;  %v689_v33 = vadd.f32 %v688_v25, %v4571_v5  ;;  %v641_v41 = vadd.f32 %v4554_v57, %v640_v7 }
 0x137   : > { %v623_v9 = vpop.f32.mrf.mxu0  ;;  %v4635_v7 = vmax.f32 %v639_v52, %v663_v45  ;;  %v4674_v45 = vpack.c.bf16 %v4623_v54, %v4617_v62 }
 0x138   : > { %1394 = vmatmul.bf16.gmra.mxu0 %v4575_v8  ;;  %v624_v10 = vadd.f32 %v4554_v57, %v623_v9  ;;  %v727_v35 = vadd.f32 %v726_v31, %v712_v26  ;;  %v664_v56 = vmul.f32 0.01, %v641_v41  ;;  %v3590_v31 = vld [vmem:[#allocation7 + $0x30] sm:$0xff] }
 0x139   : > { %v719_v22 = vmul.f32 %v4635_v7, %v4635_v7  ;;  %873 = vmatpush.bf16.msra.mxu1 %v3590_v31  ;;  %3666 = vmatpush.bf16.msra.mxu3 %v3590_v31 }
 0x13a   : > { %v657_v2 = vmul.f32 0.01, %v624_v10 }
 0x13c   : > { %v4580_v15 = vmax.f32 %v624_v10, %v657_v2 }
 0x13d   : > { %v643_v12 = vpop.f32.mrf.mxu2 }
 0x13e   : > { %v713_v11 = vmul.f32 %v4580_v15, %v4580_v15  ;;  %v690_v36 = vadd.f32 %v689_v33, %v4580_v15  ;;  %v644_v46 = vadd.f32 %v4554_v57, %v643_v12 }
 0x13f   : > { %v625_v13 = vpop.f32.mrf.mxu0 }
 0x140   : > { %v626_v3 = vadd.f32 %v4554_v57, %v625_v13  ;;  %v728_v43 = vadd.f32 %v727_v35, %v713_v11  ;;  %v665_v10 = vmul.f32 0.01, %v644_v46 }
 0x142   : > { %v658_v28 = vmul.f32 0.01, %v626_v3  ;;  %v4648_v6 = vmax.f32 %v644_v46, %v665_v10  ;;  %v3588_v46 = vld [vmem:[#allocation7 + $0x20] sm:$0xff]  ;;  %v3586_v10 = vld [vmem:[#allocation7 + $0x10] sm:$0xff] }
 0x144   : > { %v4582_v32 = vmax.f32 %v626_v3, %v658_v28  ;;  %v718_v3 = vmul.f32 %v4623_v54, %v4623_v54  ;;  %v4642_v28 = vmax.f32 %v641_v41, %v664_v56  ;;  %v721_v33 = vmul.f32 %v4648_v6, %v4648_v6 }
 0x145   : > { %v645_v17 = vpop.f32.mrf.mxu2 }
 0x146   : > { %v4586_v18 = vpack.c.bf16 %v4582_v32, %v4580_v15  ;;  %v714_v37 = vmul.f32 %v4582_v32, %v4582_v32  ;;  %v691_v44 = vadd.f32 %v690_v36, %v4582_v32  ;;  %v646_v58 = vadd.f32 %v4554_v57, %v645_v17 }
 0x147   : > { %v628_v19 = vpop.f32.mrf.mxu0  ;;  %v720_v25 = vmul.f32 %v4642_v28, %v4642_v28  ;;  %v4681_v4 = vpack.c.bf16 %v4642_v28, %v4635_v7 }
 0x148   : > { %v629_v21 = vadd.f32 %v4554_v57, %v628_v19  ;;  %1399 = vmatmul.bf16.gmra.mxu0 %v4586_v18  ;;  %v729_v48 = vadd.f32 %v728_v43, %v714_v37  ;;  %v666_v17 = vmul.f32 0.01, %v646_v58 }
 0x14a   : > { %v659_v38 = vmul.f32 0.01, %v629_v21  ;;  %v4653_v26 = vmax.f32 %v646_v58, %v666_v17  ;;  %v3585_v17 = vld [vmem:[#allocation7 + $0x8] sm:$0xff] }
 0x14c   : > { %v4606_v14 = vmax.f32 %v629_v21, %v659_v38 }
 0x14d   : > { %v648_v30 = vpop.f32.mrf.mxu2 }
 0x14e   : > { %v715_v16 = vmul.f32 %v4606_v14, %v4606_v14  ;;  %v692_v49 = vadd.f32 %v691_v44, %v4606_v14  ;;  %v649_v12 = vadd.f32 %v4554_v57, %v648_v30 }
 0x14f   : > { %v630_v34 = vpop.f32.mrf.mxu0 }
 0x150   : > { %v631_v39 = vadd.f32 %v4554_v57, %v630_v34  ;;  %v730_v59 = vadd.f32 %v729_v48, %v715_v16  ;;  %v667_v38 = vmul.f32 0.01, %v649_v12  ;;  %v722_v34 = vmul.f32 %v4653_v26, %v4653_v26 }
 0x152   : > { %v660_v23 = vmul.f32 0.01, %v631_v39  ;;  %v4658_v11 = vmax.f32 %v649_v12, %v667_v38  ;;  %v3584_v38 = vld [vmem:[#allocation7] sm:$0xff] }
 0x154   : > { %v4621_v50 = vmax.f32 %v631_v39, %v660_v23  ;;  %v3589_v39 = vld [vmem:[#allocation7 + $0x28] sm:$0xff]  ;;  %v723_v40 = vmul.f32 %v4658_v11, %v4658_v11 }
 0x155   : > { %v650_v9 = vpop.f32.mrf.mxu2  ;;  %874 = vmatpush.bf16.msra.mxu1 %v3589_v39  ;;  %3667 = vmatpush.bf16.msra.mxu3 %v3589_v39  ;;  %v686_v39 = vld [vmem:[#allocation11 + $0x2] sm:$0x1] }
 0x156   : > { %v693_v60 = vadd.f32 %v692_v49, %v4621_v50  ;;  %v716_v61 = vmul.f32 %v4621_v50, %v4621_v50  ;;  %v4631_v63 = vpack.c.bf16 %v4621_v50, %v4606_v14  ;;  %v651_v21 = vadd.f32 %v4554_v57, %v650_v9 }
 0x158   : > { %v694_v13 = vadd.f32 %v693_v60, %v4617_v62  ;;  %v731_v2 = vadd.f32 %v730_v59, %v716_v61  ;;  %1404 = vmatmul.bf16.gmra.mxu0 %v4631_v63  ;;  %v668_v30 = vmul.f32 0.01, %v651_v21  ;;  %v3587_v59 = vld [vmem:[#allocation7 + $0x18] sm:$0xff] }
 0x159   : > { %875 = vmatpush.bf16.msra.mxu1 %v3588_v46  ;;  %3668 = vmatpush.bf16.msra.mxu3 %v3588_v46 }
 0x15a   : > { %v695_v19 = vadd.f32 %v694_v13, %v4623_v54  ;;  %v732_v20 = vadd.f32 %v731_v2, %v717_v0  ;;  %v4663_v35 = vmax.f32 %v651_v21, %v668_v30 }
 0x15c   : > { %v696_v42 = vadd.f32 %v695_v19, %v4635_v7  ;;  %v733_v24 = vadd.f32 %v732_v20, %v718_v3  ;;  %v724_v16 = vmul.f32 %v4663_v35, %v4663_v35 }
 0x15d   : > { %876 = vmatpush.bf16.msra.mxu1 %v3587_v59  ;;  %3669 = vmatpush.bf16.msra.mxu3 %v3587_v59 }
 0x15e   : > { %v734_v29 = vadd.f32 %v733_v24, %v719_v22  ;;  %v697_v57 = vadd.f32 %v696_v42, %v4642_v28 }
 0x160   : > { %v698_v47 = vadd.f32 %v697_v57, %v4648_v6  ;;  %v735_v52 = vadd.f32 %v734_v29, %v720_v25  ;;  %v4686_v57 = vpack.c.bf16 %v4653_v26, %v4648_v6 }
 0x161   : > { %877 = vmatpush.bf16.msra.mxu1 %v3586_v10  ;;  %3670 = vmatpush.bf16.msra.mxu3 %v3586_v10 }
 0x162   : > { %v699_v36 = vadd.f32 %v698_v47, %v4653_v26  ;;  %v736_v37 = vadd.f32 %v735_v52, %v721_v33  ;;  %v685_v52 = vld [vmem:[#allocation11 + $0x1] sm:$0x1] }
 0x164   : > { %v700_v41 = vadd.f32 %v699_v36, %v4658_v11  ;;  %v737_v43 = vadd.f32 %v736_v37, %v722_v34 }
 0x165   : > { %878 = vmatpush.bf16.msra.mxu1 %v3585_v17  ;;  %3671 = vmatpush.bf16.msra.mxu3 %v3585_v17  ;;  %v3605_v17 = vld [vmem:[#allocation7 + $0xa8] sm:$0xff] }
 0x166   : > { %v701_v44 = vadd.f32 %v700_v41, %v4663_v35  ;;  %v738_v23 = vadd.f32 %v737_v43, %v723_v40 }
 0x168   : > { %v702_v48 = vrot.slane %v701_v44, 4  ;;  %v739_v49 = vadd.f32 %v738_v23, %v724_v16  ;;  %1409 = vmatmul.bf16.gmra.mxu0 %v4674_v45 }
 0x169   : > { %879 = vmatpush.bf16.msra.mxu1 %v3584_v38  ;;  %3672 = vmatpush.bf16.msra.mxu3 %v3584_v38 }
 0x16a   : > { %v703_v56 = vadd.f32 %v702_v48, %v701_v44  ;;  %v740_v58 = vrot.slane %v739_v49, 4  ;;  %v4691_v44 = vpack.c.bf16 %v4663_v35, %v4658_v11 }
 0x16c   : > { %v704_v60 = vrot.slane %v703_v56, 2  ;;  %v741_v61 = vadd.f32 %v740_v58, %v739_v49 }
 0x16e   : > { %v705_v0 = vadd.f32 %v704_v60, %v703_v56  ;;  %v742_v9 = vrot.slane %v741_v61, 2 }
 0x170   : > { %v706_v12 = vrot.slane %v705_v0, 1  ;;  %v743_v13 = vadd.f32 %v742_v9, %v741_v61  ;;  %v3607_v9 = vld [vmem:[#allocation7 + $0xb8] sm:$0xff] }
 0x171   : > { %1265 = vmatpush.bf16.msrb.mxu3 %v3607_v9 }
 0x172   : > { %v707_v2 = vadd.f32 %v706_v12, %v705_v0  ;;  %v744_v3 = vrot.slane %v743_v13, 1 }
 0x174   : > { %v708_v19 = vmul.f32 %v707_v2, %v4534_v27  ;;  %v745_v20 = vadd.f32 %v744_v3, %v743_v13 }
 0x176   : > { %v746_v21 = vmul.f32 %v745_v20, %v4534_v27  ;;  %v747_v22 = vmul.f32 %v708_v19, %v708_v19 }
 0x178   : > { %v748_v42 = vsub.f32 %v746_v21, %v747_v22  ;;  %1414 = vmatmul.bf16.gmra.mxu0 %v4681_v4  ;;  %v3604_v21 = vld [vmem:[#allocation7 + $0xa0] sm:$0xff] }
 0x17a   : > { %v749_v24 = vmax.f32 %v748_v42, 0.0 }
 0x17c   : > { %v750_v25 = vadd.f32 1e-05, %v749_v24 }
 0x17e   : > { %3801 = vrsqrt.f32 %v750_v25  ;;  %vm757_vm5 = vweird.f32 %v750_v25 }
 0x184   : > { %v3802_v29 = vpop.eup %3801 }
 0x185   : > { %v752_v30 = vmul.f32 %v3802_v29, %v750_v25  ;;  %vm758_vm4 = vweird.f32 %v3802_v29 }
 0x186   : > { %vm759_vm6 = vmor %vm757_vm5, %vm758_vm4 }
 0x187   : > { %v753_v31 = vmul.f32 %v3802_v29, %v752_v30 }
 0x188   : > { %1419 = vmatmul.bf16.gmra.mxu0 %v4686_v57 }
 0x189   : > { %v754_v33 = vmul.f32 0.5, %v753_v31 }
 0x18b   : > { %v755_v47 = vsub.f32 1.5, %v754_v33  ;;  %v3601_v33 = vld [vmem:[#allocation7 + $0x88] sm:$0xff] }
 0x18d   : > { %v756_v34 = vmul.f32 %v3802_v29, %v755_v47 }
 0x18f   : > { %v760_v36 = vsel %vm759_vm6, %v3802_v29, %v756_v34  ;;  %v3602_v29 = vld [vmem:[#allocation7 + $0x90] sm:$0xff] }
 0x190   : > { %v761_v37 = vmul.f32 %v760_v36, %v685_v52 }
 0x192   : > { %v762_v40 = vmul.f32 %v761_v37, %v708_v19  ;;  %v764_v41 = vperm.slane %v761_v37, 0 }
 0x194   : > { %v763_v43 = vsub.f32 %v686_v39, %v762_v40  ;;  %v765_v16 = vmul.f32 %v764_v41, %v4558_v51  ;;  %v766_v46 = vmul.f32 %v764_v41, %v4560_v53  ;;  %v773_v48 = vmul.f32 %v764_v41, %v4617_v62  ;;  %v3606_v51 = vld [vmem:[#allocation7 + $0xb0] sm:$0xff] }
 0x195   : > { %v774_v49 = vmul.f32 %v764_v41, %v4623_v54  ;;  %v767_v10 = vmul.f32 %v764_v41, %v4569_v1  ;;  %v768_v53 = vmul.f32 %v764_v41, %v4571_v5  ;;  %v775_v62 = vmul.f32 %v764_v41, %v4635_v7  ;;  %1266 = vmatpush.bf16.msrb.mxu3 %v3606_v51  ;;  %v3603_v1 = vld [vmem:[#allocation7 + $0x98] sm:$0xff] }
 0x196   : > { %v781_v23 = vperm.slane %v763_v43, 0  ;;  %v776_v54 = vmul.f32 %v764_v41, %v4642_v28  ;;  %v769_v5 = vmul.f32 %v764_v41, %v4580_v15  ;;  %v770_v7 = vmul.f32 %v764_v41, %v4582_v32  ;;  %v3600_v15 = vld [vmem:[#allocation7 + $0x80] sm:$0xff] }
 0x197   : > { %v777_v28 = vmul.f32 %v764_v41, %v4648_v6  ;;  %v778_v22 = vmul.f32 %v764_v41, %v4653_v26  ;;  %v771_v32 = vmul.f32 %v764_v41, %v4606_v14  ;;  %v772_v6 = vmul.f32 %v764_v41, %v4621_v50 }
 0x198   : > { %1424 = vmatmul.bf16.gmra.mxu0 %v4691_v44  ;;  %v782_v56 = vadd.f32 %v781_v23, %v765_v16  ;;  %v783_v58 = vadd.f32 %v781_v23, %v766_v46  ;;  %v790_v59 = vadd.f32 %v781_v23, %v773_v48  ;;  %v791_v60 = vadd.f32 %v781_v23, %v774_v49 }
 0x199   : > { %v784_v12 = vadd.f32 %v781_v23, %v767_v10  ;;  %v785_v13 = vadd.f32 %v781_v23, %v768_v53  ;;  %v792_v2 = vadd.f32 %v781_v23, %v775_v62  ;;  %v793_v3 = vadd.f32 %v781_v23, %v776_v54  ;;  %1267 = vmatpush.bf16.msrb.mxu3 %v3605_v17 }
 0x19a   : > { %v814_v61 = vpack.c.bf16 %v783_v58, %v782_v56  ;;  %v818_v0 = vpack.c.bf16 %v791_v60, %v790_v59  ;;  %v786_v38 = vadd.f32 %v781_v23, %v769_v5  ;;  %v787_v42 = vadd.f32 %v781_v23, %v770_v7 }
 0x19b   : > { %v815_v19 = vpack.c.bf16 %v785_v13, %v784_v12  ;;  %v819_v20 = vpack.c.bf16 %v793_v3, %v792_v2  ;;  %v794_v24 = vadd.f32 %v781_v23, %v777_v28  ;;  %v795_v25 = vadd.f32 %v781_v23, %v778_v22 }
 0x19c   : > { %880 = vmatmul.bf16.vlgmr.msra.gmra.mxu1 %v814_v61  ;;  %900 = vmatmul.bf16.vlgmr.msra.gmra.mxu3 %v818_v0  ;;  %v816_v30 = vpack.c.bf16 %v787_v42, %v786_v38  ;;  %v779_v26 = vmul.f32 %v764_v41, %v4658_v11  ;;  %v780_v47 = vmul.f32 %v764_v41, %v4663_v35 }
 0x19d   : > { %1268 = vmatpush.bf16.msrb.mxu3 %v3604_v21  ;;  %v820_v31 = vpack.c.bf16 %v795_v25, %v794_v24  ;;  %v788_v52 = vadd.f32 %v781_v23, %v771_v32  ;;  %v789_v34 = vadd.f32 %v781_v23, %v772_v6 }
 0x19e   : > { %v796_v36 = vadd.f32 %v781_v23, %v779_v26  ;;  %v797_v37 = vadd.f32 %v781_v23, %v780_v47 }
 0x19f   : > { %v817_v39 = vpack.c.bf16 %v789_v34, %v788_v52 }
 0x1a0   : > { %v821_v40 = vpack.c.bf16 %v797_v37, %v796_v36 }
 0x1a1   : > { %1269 = vmatpush.bf16.msrb.mxu3 %v3603_v1 }
 0x1a5   : > { %1270 = vmatpush.bf16.msrb.mxu3 %v3602_v29 }
 0x1a9   : > { %1271 = vmatpush.bf16.msrb.mxu3 %v3601_v33 }
 0x1ac   : > { %885 = vmatmul.bf16.gmra.mxu1 %v815_v19  ;;  %905 = vmatmul.bf16.gmra.mxu3 %v819_v20 }
 0x1ad   : > { %1272 = vmatpush.bf16.msrb.mxu3 %v3600_v15 }
 0x1bc   : > { %890 = vmatmul.bf16.gmra.mxu1 %v816_v30  ;;  %910 = vmatmul.bf16.gmra.mxu3 %v820_v31 }
 0x1cc   : > { %895 = vmatmul.bf16.gmra.mxu1 %v817_v39  ;;  %915 = vmatmul.bf16.gmra.mxu3 %v821_v40 }
 0x1dc   : > { %1273 = vmatmul.bf16.vlgmr.msrb.gmra.mxu3 %v4564_v55  ;;  %v4716_v55 = vld [vmem:[#allocation11 + $0x3] ss:$0 sm:$0xff] }
 0x1ec   : > { %1278 = vmatmul.bf16.gmra.mxu3 %v4575_v8 }
 0x1fc   : > { %1283 = vmatmul.bf16.gmra.mxu3 %v4586_v18 }
 0x20c   : > { %1288 = vmatmul.bf16.gmra.mxu3 %v4631_v63 }
 0x219   : > { %v881_v14 = vpop.f32.mrf.mxu1 }
 0x21a   : > { %v882_v18 = vadd.f32 %v4716_v55, %v881_v14 }
 0x21c   : > { %1293 = vmatmul.bf16.gmra.mxu3 %v4674_v45 }
 0x21f   : > { %v901_v50 = vpop.f32.mrf.mxu3 }
 0x220   : > { %v902_v21 = vadd.f32 %v4716_v55, %v901_v50 }
 0x221   : > { %v883_v11 = vpop.f32.mrf.mxu1 }
 0x222   : > { %v884_v8 = vadd.f32 %v4716_v55, %v883_v11  ;;  %v929_v29 = vmul.f32 0.01, %v902_v21 }
 0x224   : > { %v922_v49 = vmul.f32 0.01, %v884_v8  ;;  %v4766_v39 = vmax.f32 %v902_v21, %v929_v29 }
 0x226   : > { %v4724_v60 = vmax.f32 %v884_v8, %v922_v49 }
 0x227   : > { %v903_v35 = vpop.f32.mrf.mxu3 }
 0x228   : > { %v978_v62 = vmul.f32 %v4724_v60, %v4724_v60  ;;  %v904_v22 = vadd.f32 %v4716_v55, %v903_v35 }
 0x229   : > { %v886_v41 = vpop.f32.mrf.mxu1 }
 0x22a   : > { %v887_v45 = vadd.f32 %v4716_v55, %v886_v41  ;;  %v930_v26 = vmul.f32 0.01, %v904_v22 }
 0x22c   : > { %1298 = vmatmul.bf16.gmra.mxu3 %v4681_v4  ;;  %v921_v4 = vmul.f32 0.01, %v882_v18  ;;  %v923_v58 = vmul.f32 0.01, %v887_v45  ;;  %v4772_v41 = vmax.f32 %v904_v22, %v930_v26 }
 0x22e   : > { %v4727_v0 = vmax.f32 %v882_v18, %v921_v4  ;;  %v4729_v51 = vmax.f32 %v887_v45, %v923_v58  ;;  %v985_v18 = vmul.f32 %v4766_v39, %v4766_v39  ;;  %v986_v58 = vmul.f32 %v4772_v41, %v4772_v41 }
 0x22f   : > { %v906_v43 = vpop.f32.mrf.mxu3 }
 0x230   : > { %v977_v2 = vmul.f32 %v4727_v0, %v4727_v0  ;;  %v955_v3 = vadd.f32 %v4724_v60, %v4727_v0  ;;  %v979_v17 = vmul.f32 %v4729_v51, %v4729_v51  ;;  %v907_v30 = vadd.f32 %v4716_v55, %v906_v43 }
 0x231   : > { %v888_v16 = vpop.f32.mrf.mxu1 }
 0x232   : > { %v889_v56 = vadd.f32 %v4716_v55, %v888_v16  ;;  %v993_v1 = vadd.f32 %v978_v62, %v977_v2  ;;  %v956_v5 = vadd.f32 %v955_v3, %v4729_v51  ;;  %v931_v40 = vmul.f32 0.01, %v907_v30 }
 0x234   : > { %v924_v61 = vmul.f32 0.01, %v889_v56  ;;  %v994_v42 = vadd.f32 %v993_v1, %v979_v17 }
 0x236   : > { %v4733_v54 = vmax.f32 %v889_v56, %v924_v61 }
 0x237   : > { %v908_v23 = vpop.f32.mrf.mxu3 }
 0x238   : > { %v980_v7 = vmul.f32 %v4733_v54, %v4733_v54  ;;  %v957_v24 = vadd.f32 %v956_v5, %v4733_v54  ;;  %v909_v47 = vadd.f32 %v4716_v55, %v908_v23 }
 0x239   : > { %v891_v46 = vpop.f32.mrf.mxu1 }
 0x23a   : > { %v892_v59 = vadd.f32 %v4716_v55, %v891_v46  ;;  %v995_v33 = vadd.f32 %v994_v42, %v980_v7  ;;  %v932_v43 = vmul.f32 0.01, %v909_v47 }
 0x23c   : > { %1303 = vmatmul.bf16.gmra.mxu3 %v4686_v57  ;;  %v925_v10 = vmul.f32 0.01, %v892_v59 }
 0x23e   : > { %v4742_v19 = vmax.f32 %v892_v59, %v925_v10  ;;  %v4786_v59 = vmax.f32 %v909_v47, %v932_v43 }
 0x23f   : > { %v911_v63 = vpop.f32.mrf.mxu3 }
 0x240   : > { %v981_v25 = vmul.f32 %v4742_v19, %v4742_v19  ;;  %v958_v15 = vadd.f32 %v957_v24, %v4742_v19  ;;  %v912_v14 = vadd.f32 %v4716_v55, %v911_v63  ;;  %v4780_v63 = vmax.f32 %v907_v30, %v931_v40 }
 0x241   : > { %v893_v48 = vpop.f32.mrf.mxu1  ;;  %v988_v3 = vmul.f32 %v4786_v59, %v4786_v59 }
 0x242   : > { %v894_v57 = vadd.f32 %v4716_v55, %v893_v48  ;;  %v996_v52 = vadd.f32 %v995_v33, %v981_v25  ;;  %v933_v48 = vmul.f32 0.01, %v912_v14  ;;  %v3599_v33 = vld [vmem:[#allocation7 + $0x78] sm:$0xff] }
 0x243   : > { %1141 = vmatpush.bf16.msrb.mxu2 %v3599_v33 }
 0x244   : > { %v926_v12 = vmul.f32 0.01, %v894_v57  ;;  %v4792_v62 = vmax.f32 %v912_v14, %v933_v48  ;;  %v3597_v14 = vld [vmem:[#allocation7 + $0x68] sm:$0xff]  ;;  %v3595_v48 = vld [vmem:[#allocation7 + $0x58] sm:$0xff] }
 0x246   : > { %v4749_v28 = vmax.f32 %v894_v57, %v926_v12 }
 0x247   : > { %v913_v9 = vpop.f32.mrf.mxu3 }
 0x248   : > { %v982_v32 = vmul.f32 %v4749_v28, %v4749_v28  ;;  %v959_v34 = vadd.f32 %v958_v15, %v4749_v28  ;;  %v914_v16 = vadd.f32 %v4716_v55, %v913_v9 }
 0x249   : > { %v896_v53 = vpop.f32.mrf.mxu1 }
 0x24a   : > { %v897_v13 = vadd.f32 %v4716_v55, %v896_v53  ;;  %v997_v50 = vadd.f32 %v996_v52, %v982_v32  ;;  %v934_v61 = vmul.f32 0.01, %v914_v16  ;;  %v987_v53 = vmul.f32 %v4780_v63, %v4780_v63  ;;  %v3598_v52 = vld [vmem:[#allocation7 + $0x70] sm:$0xff] }
 0x24b   : > { %1142 = vmatpush.bf16.msrb.mxu2 %v3598_v52 }
 0x24c   : > { %v927_v20 = vmul.f32 0.01, %v897_v13  ;;  %1308 = vmatmul.bf16.gmra.mxu3 %v4691_v44  ;;  %v4797_v17 = vmax.f32 %v914_v16, %v934_v61 }
 0x24e   : > { %v4755_v44 = vmax.f32 %v897_v13, %v927_v20 }
 0x24f   : > { %v916_v38 = vpop.f32.mrf.mxu3  ;;  %1143 = vmatpush.bf16.msrb.mxu2 %v3597_v14 }
 0x250   : > { %v983_v36 = vmul.f32 %v4755_v44, %v4755_v44  ;;  %v960_v11 = vadd.f32 %v959_v34, %v4755_v44  ;;  %v917_v49 = vadd.f32 %v4716_v55, %v916_v38  ;;  %v990_v38 = vmul.f32 %v4797_v17, %v4797_v17 }
 0x251   : > { %v898_v31 = vpop.f32.mrf.mxu1 }
 0x252   : > { %v899_v6 = vadd.f32 %v4716_v55, %v898_v31  ;;  %v998_v23 = vadd.f32 %v997_v50, %v983_v36  ;;  %v935_v12 = vmul.f32 0.01, %v917_v49 }
 0x254   : > { %v928_v37 = vmul.f32 0.01, %v899_v6  ;;  %v4802_v5 = vmax.f32 %v917_v49, %v935_v12 }
 0x256   : > { %v4770_v35 = vmax.f32 %v899_v6, %v928_v37  ;;  %v991_v29 = vmul.f32 %v4802_v5, %v4802_v5 }
 0x257   : > { %v918_v45 = vpop.f32.mrf.mxu3 }
 0x258   : > { %v961_v46 = vadd.f32 %v960_v11, %v4770_v35  ;;  %v984_v8 = vmul.f32 %v4770_v35, %v4770_v35  ;;  %v919_v10 = vadd.f32 %v4716_v55, %v918_v45  ;;  %v989_v55 = vmul.f32 %v4792_v62, %v4792_v62 }
 0x25a   : > { %v962_v56 = vadd.f32 %v961_v46, %v4766_v39  ;;  %v999_v4 = vadd.f32 %v998_v23, %v984_v8  ;;  %v936_v21 = vmul.f32 0.01, %v919_v10  ;;  %v3596_v23 = vld [vmem:[#allocation7 + $0x60] sm:$0xff] }
 0x25b   : > { %1144 = vmatpush.bf16.msrb.mxu2 %v3596_v23 }
 0x25c   : > { %v963_v57 = vadd.f32 %v962_v56, %v4772_v41  ;;  %v1000_v9 = vadd.f32 %v999_v4, %v985_v18  ;;  %v4807_v42 = vmax.f32 %v919_v10, %v936_v21  ;;  %v3594_v4 = vld [vmem:[#allocation7 + $0x50] sm:$0xff]  ;;  %v3592_v10 = vld [vmem:[#allocation7 + $0x40] sm:$0xff] }
 0x25e   : > { %v964_v13 = vadd.f32 %v963_v57, %v4780_v63  ;;  %v1001_v2 = vadd.f32 %v1000_v9, %v986_v58  ;;  %v992_v32 = vmul.f32 %v4807_v42, %v4807_v42  ;;  %v3593_v57 = vld [vmem:[#allocation7 + $0x48] sm:$0xff] }
 0x25f   : > { %1145 = vmatpush.bf16.msrb.mxu2 %v3595_v48 }
 0x260   : > { %v1002_v20 = vadd.f32 %v1001_v2, %v987_v53  ;;  %v965_v1 = vadd.f32 %v964_v13, %v4786_v59 }
 0x262   : > { %v966_v7 = vadd.f32 %v965_v1, %v4792_v62  ;;  %v1003_v22 = vadd.f32 %v1002_v20, %v988_v3  ;;  %v953_v20 = vld [vmem:[#allocation11 + $0x4] sm:$0x1] }
 0x263   : > { %1146 = vmatpush.bf16.msrb.mxu2 %v3594_v4 }
 0x264   : > { %v967_v24 = vadd.f32 %v966_v7, %v4797_v17  ;;  %v1004_v25 = vadd.f32 %v1003_v22, %v989_v55  ;;  %v954_v7 = vld [vmem:[#allocation11 + $0x5] sm:$0x1] }
 0x266   : > { %v968_v30 = vadd.f32 %v967_v24, %v4802_v5  ;;  %v1005_v31 = vadd.f32 %v1004_v25, %v990_v38 }
 0x267   : > { %1147 = vmatpush.bf16.msrb.mxu2 %v3593_v57 }
 0x268   : > { %v969_v15 = vadd.f32 %v968_v30, %v4807_v42  ;;  %v1006_v6 = vadd.f32 %v1005_v31, %v991_v29 }
 0x26a   : > { %v970_v26 = vrot.slane %v969_v15, 4  ;;  %v1007_v47 = vadd.f32 %v1006_v6, %v992_v32 }
 0x26b   : > { %1148 = vmatpush.bf16.msrb.mxu2 %v3592_v10  ;;  %v4840_v10 = vld [vmem:[#allocation11 + $0x8] ss:$0 sm:$0xff] }
 0x26c   : > { %v971_v34 = vadd.f32 %v970_v26, %v969_v15  ;;  %v1008_v36 = vrot.slane %v1007_v47, 4 }
 0x26e   : > { %v972_v37 = vrot.slane %v971_v34, 2  ;;  %v1009_v40 = vadd.f32 %v1008_v36, %v1007_v47 }
 0x270   : > { %v973_v50 = vadd.f32 %v972_v37, %v971_v34  ;;  %v1010_v11 = vrot.slane %v1009_v40, 2 }
 0x272   : > { %v974_v43 = vrot.slane %v973_v50, 1  ;;  %v1011_v16 = vadd.f32 %v1010_v11, %v1009_v40 }
 0x274   : > { %v975_v46 = vadd.f32 %v974_v43, %v973_v50  ;;  %v1012_v8 = vrot.slane %v1011_v16, 1 }
 0x276   : > { %v976_v18 = vmul.f32 %v975_v46, %v4534_v27  ;;  %v1013_v45 = vadd.f32 %v1012_v8, %v1011_v16 }
 0x278   : > { %v1014_v49 = vmul.f32 %v1013_v45, %v4534_v27  ;;  %v1015_v56 = vmul.f32 %v976_v18, %v976_v18 }
 0x27a   : > { %v1016_v58 = vsub.f32 %v1014_v49, %v1015_v56 }
 0x27c   : > { %v1017_v61 = vmax.f32 %v1016_v58, 0.0 }
 0x27e   : > { %v1018_v9 = vadd.f32 1e-05, %v1017_v61 }
 0x280   : > { %3803 = vrsqrt.f32 %v1018_v9  ;;  %vm1025_vm8 = vweird.f32 %v1018_v9 }
 0x286   : > { %v3804_v53 = vpop.eup %3803 }
 0x287   : > { %v1020_v12 = vmul.f32 %v3804_v53, %v1018_v9  ;;  %vm1026_vm7 = vweird.f32 %v3804_v53 }
 0x288   : > { %vm1027_vm9 = vmor %vm1025_vm8, %vm1026_vm7 }
 0x289   : > { %v1021_v13 = vmul.f32 %v3804_v53, %v1020_v12  ;;  %v3637_v12 = vld [vmem:[#allocation7 + $0x1a8] sm:$0xff] }
 0x28b   : > { %v1022_v2 = vmul.f32 0.5, %v1021_v13  ;;  %v3645_v13 = vld [vmem:[#allocation7 + $0x1e8] sm:$0xff] }
 0x28d   : > { %v1023_v3 = vsub.f32 1.5, %v1022_v2 }
 0x28f   : > { %v1024_v21 = vmul.f32 %v3804_v53, %v1023_v3 }
 0x291   : > { %v1028_v1 = vsel %vm1027_vm9, %v3804_v53, %v1024_v21  ;;  %v3638_v53 = vld [vmem:[#allocation7 + $0x1b0] sm:$0xff] }
 0x292   : > { %v1029_v55 = vmul.f32 %v1028_v1, %v953_v20  ;;  %v4844_v1 = vpop.f32.mrf.mxu3 }
 0x294   : > { %v1030_v22 = vmul.f32 %v1029_v55, %v976_v18  ;;  %v1032_v38 = vperm.slane %v1029_v55, 0 }
 0x296   : > { %v1031_v24 = vsub.f32 %v954_v7, %v1030_v22  ;;  %v1033_v29 = vmul.f32 %v1032_v38, %v4727_v0  ;;  %v1034_v30 = vmul.f32 %v1032_v38, %v4724_v60  ;;  %v1041_v15 = vmul.f32 %v1032_v38, %v4766_v39 }
 0x297   : > { %v1042_v32 = vmul.f32 %v1032_v38, %v4772_v41  ;;  %v1043_v6 = vmul.f32 %v1032_v38, %v4780_v63  ;;  %v1044_v26 = vmul.f32 %v1032_v38, %v4786_v59  ;;  %v1045_v36 = vmul.f32 %v1032_v38, %v4792_v62 }
 0x298   : > { %v1049_v25 = vperm.slane %v1031_v24, 0  ;;  %v1046_v60 = vmul.f32 %v1032_v38, %v4797_v17  ;;  %v1047_v39 = vmul.f32 %v1032_v38, %v4802_v5  ;;  %v1048_v41 = vmul.f32 %v1032_v38, %v4807_v42 }
 0x299   : > { %v1035_v16 = vmul.f32 %v1032_v38, %v4729_v51  ;;  %v1036_v23 = vmul.f32 %v1032_v38, %v4733_v54  ;;  %v1037_v5 = vmul.f32 %v1032_v38, %v4742_v19  ;;  %v1038_v42 = vmul.f32 %v1032_v38, %v4749_v28  ;;  %v1390_v54 = vpop.f32.mrf.mxu0  ;;  %v3639_v19 = vld [vmem:[#allocation7 + $0x1b8] sm:$0xff] }
 0x29a   : > { %v1050_v31 = vadd.f32 %v1049_v25, %v1033_v29  ;;  %v1051_v33 = vadd.f32 %v1049_v25, %v1034_v30  ;;  %v1058_v52 = vadd.f32 %v1049_v25, %v1041_v15  ;;  %v1059_v34 = vadd.f32 %v1049_v25, %v1042_v32  ;;  %v3647_v28 = vld [vmem:[#allocation7 + $0x1f8] sm:$0xff]  ;;  %2379 = vmatpush.bf16.msra.mxu3 %v3639_v19 }
 0x29b   : > { %v1060_v37 = vadd.f32 %v1049_v25, %v1043_v6  ;;  %v1061_v40 = vadd.f32 %v1049_v25, %v1044_v26  ;;  %v1062_v14 = vadd.f32 %v1049_v25, %v1045_v36  ;;  %v1063_v63 = vadd.f32 %v1049_v25, %v1046_v60  ;;  %2495 = vmatpush.bf16.msra.mxu0 %v3647_v28  ;;  %v3635_v6 = vld [vmem:[#allocation7 + $0x198] sm:$0xff]  ;;  %v3634_v36 = vld [vmem:[#allocation7 + $0x190] sm:$0xff] }
 0x29c   : > { %v1083_v47 = vpack.c.bf16 %v1051_v33, %v1050_v31  ;;  %v1087_v0 = vpack.c.bf16 %v1059_v34, %v1058_v52  ;;  %v4828_v11 = vadd.f32 %v1049_v25, %v1047_v39  ;;  %v4830_v59 = vadd.f32 %v1049_v25, %v1048_v41  ;;  %v3636_v31 = vld [vmem:[#allocation7 + $0x1a0] sm:$0xff]  ;;  %v3643_v26 = vld [vmem:[#allocation7 + $0x1d8] sm:$0xff]  ;;  %v3633_v41 = vld [vmem:[#allocation7 + $0x188] sm:$0xff] }
 0x29d   : > { %v1088_v50 = vpack.c.bf16 %v1061_v40, %v1060_v37  ;;  %v1089_v43 = vpack.c.bf16 %v1063_v63, %v1062_v14  ;;  %v1052_v17 = vadd.f32 %v1049_v25, %v1035_v16  ;;  %v1053_v46 = vadd.f32 %v1049_v25, %v1036_v23  ;;  %v3644_v33 = vld [vmem:[#allocation7 + $0x1e0] sm:$0xff]  ;;  %v3642_v37 = vld [vmem:[#allocation7 + $0x1d0] sm:$0xff]  ;;  %v3641_v63 = vld [vmem:[#allocation7 + $0x1c8] sm:$0xff] }
 0x29e   : > { %1149 = vmatmul.bf16.vlgmr.msrb.gmra.mxu2 %v1083_v47  ;;  %v1090_v62 = vpack.c.bf16 %v4830_v59, %v4828_v11  ;;  %v1054_v18 = vadd.f32 %v1049_v25, %v1037_v5  ;;  %v1055_v45 = vadd.f32 %v1049_v25, %v1038_v42  ;;  %v1039_v49 = vmul.f32 %v1032_v38, %v4755_v44  ;;  %v3646_v44 = vld [vmem:[#allocation7 + $0x1f0] sm:$0xff]  ;;  %v3632_v23 = vld [vmem:[#allocation7 + $0x180] sm:$0xff] }
 0x29f   : > { %v1084_v8 = vpack.c.bf16 %v1053_v46, %v1052_v17  ;;  %v1040_v56 = vmul.f32 %v1032_v38, %v4770_v35  ;;  %v1391_v35 = vadd.f32 %v4840_v10, %v1390_v54  ;;  %2380 = vmatpush.bf16.msra.mxu3 %v3638_v53  ;;  %2496 = vmatpush.bf16.msra.mxu0 %v3646_v44  ;;  %v3640_v17 = vld [vmem:[#allocation7 + $0x1c0] sm:$0xff]  ;;  %v4894_v54 = vld [vmem:[#allocation11 + $0x6] ss:$0 sm:$0xff] }
 0x2a0   : > { %v1085_v48 = vpack.c.bf16 %v1055_v45, %v1054_v18  ;;  %v1056_v4 = vadd.f32 %v1049_v25, %v1039_v49  ;;  %v4886_v49 = vld [vmem:[#allocation11 + $0x7] ss:$0 sm:$0xff] }
 0x2a1   : > { %v1057_v51 = vadd.f32 %v1049_v25, %v1040_v56  ;;  %v1392_v61 = vpop.f32.mrf.mxu0  ;;  %v3378_v3 = vmul.f32 -1.442695, %v1391_v35  ;;  %v4849_v25 = vpop.f32.mrf.mxu3  ;;  %v1275_v28 = vadd.f32 %v4886_v49, %v4844_v1 }
 0x2a2   : > { %v1393_v20 = vadd.f32 %v4840_v10, %v1392_v61 }
 0x2a3   : > { %v1086_v58 = vpack.c.bf16 %v1057_v51, %v1056_v4  ;;  %2381 = vmatpush.bf16.msra.mxu3 %v3637_v12  ;;  %2497 = vmatpush.bf16.msra.mxu0 %v3645_v13  ;;  %3805 = vpow2.f32 %v3378_v3 }
 0x2a4   : > { %v3379_v21 = vmul.f32 -1.442695, %v1393_v20 }
 0x2a6   : > { %3807 = vpow2.f32 %v3379_v21 }
 0x2a7   : > { %2382 = vmatpush.bf16.msra.mxu3 %v3636_v31  ;;  %2498 = vmatpush.bf16.msra.mxu0 %v3644_v33 }
 0x2a9   : > { %v1395_v57 = vpop.f32.mrf.mxu0  ;;  %v3806_v7 = vpop.eup %3805 }
 0x2aa   : > { %v1396_v22 = vadd.f32 %v4840_v10, %v1395_v57  ;;  %v4847_v38 = vadd.f32 1.0, %v3806_v7  ;;  %v4863_v34 = vpop.f32.mrf.mxu3 }
 0x2ab   : > { %2383 = vmatpush.bf16.msra.mxu3 %v3635_v6  ;;  %2499 = vmatpush.bf16.msra.mxu0 %v3643_v26 }
 0x2ac   : > { %v3808_v24 = vpop.eup %3807  ;;  %v3380_v29 = vmul.f32 -1.442695, %v1396_v22  ;;  %3809 = vrcp.f32 %v4847_v38  ;;  %v1503_v51 = vand.u32 2147483647, %v4847_v38  ;;  %vm1499_vm11 = vweird.f32 %v4847_v38 }
 0x2ad   : > { %v4853_v15 = vadd.f32 1.0, %v3808_v24 }
 0x2ae   : > { %1154 = vmatmul.bf16.gmra.mxu2 %v1084_v8  ;;  %3811 = vpow2.f32 %v3380_v29  ;;  %vm1504_vm14 = vcmp.eq.f32.partialorder %v1503_v51, 8.507059e+37  ;;  %v1277_v29 = vadd.f32 %v4886_v49, %v4849_v25 }
 0x2af   : > { %3813 = vrcp.f32 %v4853_v15  ;;  %2384 = vmatpush.bf16.msra.mxu3 %v3634_v36  ;;  %2500 = vmatpush.bf16.msra.mxu0 %v3642_v37  ;;  %vm1514_vm15 = vweird.f32 %v4853_v15  ;;  %v1520_v13 = vand.u32 2147483648, %v4853_v15  ;;  %v1518_v20 = vand.u32 2147483647, %v4853_v15 }
 0x2b1   : > { %v1397_v9 = vpop.f32.mrf.mxu0  ;;  %vm1519_vm1 = vcmp.eq.f32.partialorder %v1518_v20, 8.507059e+37 }
 0x2b2   : > { %v1398_v30 = vadd.f32 %v4840_v10, %v1397_v9  ;;  %v4861_v52 = vpop.eup %3809  ;;  %v4879_v42 = vpop.f32.mrf.mxu3 }
 0x2b3   : > { %2385 = vmatpush.bf16.msra.mxu3 %v3633_v41  ;;  %2501 = vmatpush.bf16.msra.mxu0 %v3641_v63  ;;  %vm1500_vm10 = vweird.f32 %v4861_v52 }
 0x2b4   : > { %v3381_v47 = vmul.f32 -1.442695, %v1398_v30  ;;  %v3812_v40 = vpop.eup %3811  ;;  %vm4896_vm12 = vmor %vm1499_vm11, %vm1500_vm10 }
 0x2b5   : > { %v4867_v60 = vpop.eup %3813 }
 0x2b6   : > { %3815 = vpow2.f32 %v3381_v47  ;;  %vm1515_vm13 = vweird.f32 %v4867_v60 }
 0x2b7   : > { %2386 = vmatpush.bf16.msra.mxu3 %v3632_v23  ;;  %2502 = vmatpush.bf16.msra.mxu0 %v3640_v17  ;;  %vm4921_vm0 = vmor %vm1514_vm15, %vm1515_vm13 }
 0x2b9   : > { %v1400_v2 = vpop.f32.mrf.mxu0 }
 0x2ba   : > { %v1401_v14 = vadd.f32 %v4840_v10, %v1400_v2  ;;  %v4918_v21 = vpop.f32.mrf.mxu3 }
 0x2bc   : > { %v3816_v11 = vpop.eup %3815 }
 0x2bd   : > { %v4876_v46 = vadd.f32 1.0, %v3816_v11 }
 0x2be   : > { %1159 = vmatmul.bf16.gmra.mxu2 %v1085_v48 }
 0x2bf   : > { %vm1544_vm7 = vweird.f32 %v4876_v46 }
 0x2c1   : > { %v1402_v55 = vpop.f32.mrf.mxu0 }
 0x2c2   : > { %v1403_v16 = vadd.f32 %v4840_v10, %v1402_v55 }
 0x2c4   : > { %v3383_v18 = vmul.f32 -1.442695, %v1403_v16 }
 0x2c9   : > { %v4855_v32 = vpop.f32.mrf.mxu0 }
 0x2ca   : > { %v1406_v3 = vadd.f32 %v4840_v10, %v4855_v32 }
 0x2cc   : > { %v3384_v32 = vmul.f32 -1.442695, %v1406_v3  ;;  %v1282_v3 = vadd.f32 %v4886_v49, %v4879_v42 }
 0x2ce   : > { %1164 = vmatmul.bf16.gmra.mxu2 %v1086_v58  ;;  %v1505_v58 = vand.u32 2147483648, %v4847_v38 }
 0x2d0   : > { %v1506_v12 = vor.u32 1.1754944e-38, %v1505_v58  ;;  %v1280_v58 = vadd.f32 %v4886_v49, %v4863_v34  ;;  %v1548_v34 = vand.u32 2147483647, %v4876_v46 }
 0x2d1   : > { %v1407_v39 = vpop.f32.mrf.mxu0 }
 0x2d2   : > { %v1408_v33 = vadd.f32 %v4840_v10, %v1407_v39  ;;  %vm1549_vm9 = vcmp.eq.f32.partialorder %v1548_v34, 8.507059e+37 }
 0x2d9   : > { %v4884_v48 = vpop.f32.mrf.mxu0 }
 0x2de   : > { %1169 = vmatmul.bf16.gmra.mxu2 %v1087_v0  ;;  %v1495_v0 = vmul.f32 %v4861_v52, %v4847_v38 }
 0x2e0   : > { %v1496_v59 = vsub.f32 1.0, %v1495_v0 }
 0x2e1   : > { %v1412_v6 = vpop.f32.mrf.mxu0 }
 0x2e2   : > { %v1497_v8 = vmul.f32 %v4861_v52, %v1496_v59  ;;  %v4944_v59 = vpop.f32.mrf.mxu3 }
 0x2e4   : > { %v1498_v56 = vadd.f32 %v4861_v52, %v1497_v8 }
 0x2e6   : > { %v1502_v53 = vsel %vm4896_vm12, %v4861_v52, %v1498_v56 }
 0x2e7   : > { %v1507_v55 = vsel %vm1504_vm14, %v1506_v12, %v1502_v53 }
 0x2e8   : > { %v1734_v24 = vmul.f32 %v1507_v55, %v1275_v28 }
 0x2e9   : > { %v4962_v51 = vpop.f32.mrf.mxu0 }
 0x2ee   : > { %1174 = vmatmul.bf16.gmra.mxu2 %v1088_v50  ;;  %v4870_v50 = vadd.f32 1.0, %v3812_v40 }
 0x2f0   : > { %3817 = vrcp.f32 %v4870_v50  ;;  %vm1529_vm3 = vweird.f32 %v4870_v50  ;;  %v1533_v23 = vand.u32 2147483647, %v4870_v50 }
 0x2f2   : > { %vm1534_vm6 = vcmp.eq.f32.partialorder %v1533_v23, 8.507059e+37 }
 0x2f6   : > { %v4882_v45 = vpop.eup %3817 }
 0x2f7   : > { %v1525_v9 = vmul.f32 %v4882_v45, %v4870_v50  ;;  %vm1530_vm2 = vweird.f32 %v4882_v45 }
 0x2f8   : > { %vm4948_vm4 = vmor %vm1529_vm3, %vm1530_vm2 }
 0x2f9   : > { %v1526_v22 = vsub.f32 1.0, %v1525_v9 }
 0x2fb   : > { %v1527_v25 = vmul.f32 %v4882_v45, %v1526_v22  ;;  %v1413_v22 = vadd.f32 %v4840_v10, %v1412_v6 }
 0x2fd   : > { %v1528_v41 = vadd.f32 %v4882_v45, %v1527_v25 }
 0x2fe   : > { %1179 = vmatmul.bf16.gmra.mxu2 %v1089_v43  ;;  %v1510_v43 = vmul.f32 %v4867_v60, %v4853_v15  ;;  %v1521_v15 = vor.u32 1.1754944e-38, %v1520_v13 }
 0x300   : > { %v1511_v5 = vsub.f32 1.0, %v1510_v43 }
 0x302   : > { %v1512_v4 = vmul.f32 %v4867_v60, %v1511_v5  ;;  %v1532_v5 = vsel %vm4948_vm4, %v4882_v45, %v1528_v41  ;;  %v1411_v45 = vadd.f32 %v4840_v10, %v4884_v48 }
 0x304   : > { %v1513_v44 = vadd.f32 %v4867_v60, %v1512_v4 }
 0x306   : > { %v1517_v30 = vsel %vm4921_vm0, %v4867_v60, %v1513_v44  ;;  %v3385_v60 = vmul.f32 -1.442695, %v1408_v33 }
 0x307   : > { %v1522_v52 = vsel %vm1519_vm1, %v1521_v15, %v1517_v30  ;;  %v3387_v15 = vmul.f32 -1.442695, %v1413_v22 }
 0x308   : > { %v1735_v37 = vmul.f32 %v1522_v52, %v1277_v29 }
 0x30e   : > { %1184 = vmatmul.bf16.gmra.mxu2 %v1090_v62  ;;  %v3382_v62 = vmul.f32 -1.442695, %v1401_v14 }
 0x310   : > { %3819 = vpow2.f32 %v3382_v62  ;;  %v1535_v62 = vand.u32 2147483648, %v4870_v50 }
 0x311   : > { %3821 = vrcp.f32 %v4876_v46 }
 0x312   : > { %3823 = vpow2.f32 %v3383_v18  ;;  %v1536_v9 = vor.u32 1.1754944e-38, %v1535_v62 }
 0x314   : > { %v1537_v12 = vsel %vm1534_vm6, %v1536_v9, %v1532_v5 }
 0x315   : > { %v1736_v13 = vmul.f32 %v1537_v12, %v1280_v58 }
 0x316   : > { %v3820_v61 = vpop.eup %3819 }
 0x317   : > { %v4909_v35 = vpop.eup %3821  ;;  %v4913_v2 = vadd.f32 1.0, %v3820_v61 }
 0x318   : > { %v3824_v38 = vpop.eup %3823  ;;  %v1540_v31 = vmul.f32 %v4909_v35, %v4876_v46  ;;  %vm1545_vm5 = vweird.f32 %v4909_v35 }
 0x319   : > { %3825 = vrcp.f32 %v4913_v2  ;;  %v4934_v47 = vadd.f32 1.0, %v3824_v38  ;;  %vm1546_vm8 = vmor %vm1544_vm7, %vm1545_vm5  ;;  %v4990_v38 = vpop.f32.mrf.mxu3  ;;  %vm1559_vm11 = vweird.f32 %v4913_v2 }
 0x31a   : > { %v1541_v40 = vsub.f32 1.0, %v1540_v31  ;;  %3827 = vpow2.f32 %v3384_v32  ;;  %v1417_v32 = vpop.f32.mrf.mxu0 }
 0x31b   : > { %3829 = vrcp.f32 %v4934_v47  ;;  %vm1574_vm15 = vweird.f32 %v4934_v47 }
 0x31c   : > { %v1542_v11 = vmul.f32 %v4909_v35, %v1541_v40  ;;  %3831 = vpow2.f32 %v3385_v60  ;;  %v1563_v40 = vand.u32 2147483647, %v4913_v2 }
 0x31e   : > { %v1543_v50 = vadd.f32 %v4909_v35, %v1542_v11  ;;  %vm1564_vm14 = vcmp.eq.f32.partialorder %v1563_v40, 8.507059e+37 }
 0x31f   : > { %v4941_v63 = vpop.eup %3825 }
 0x320   : > { %v1555_v18 = vmul.f32 %v4941_v63, %v4913_v2  ;;  %v3828_v4 = vpop.eup %3827  ;;  %v1547_v20 = vsel %vm1546_vm8, %v4909_v35, %v1543_v50  ;;  %vm1560_vm10 = vweird.f32 %v4941_v63 }
 0x321   : > { %v1150_v19 = vpop.f32.mrf.mxu2  ;;  %v4970_v57 = vpop.eup %3829  ;;  %v4978_v44 = vadd.f32 1.0, %v3828_v4  ;;  %vm5004_vm12 = vmor %vm1559_vm11, %vm1560_vm10  ;;  %v1580_v4 = vand.u32 2147483648, %v4934_v47 }
 0x322   : > { %v1151_v1 = vadd.f32 %v4894_v54, %v1150_v19  ;;  %v1550_v19 = vand.u32 2147483648, %v4876_v46  ;;  %v3832_v53 = vpop.eup %3831  ;;  %v1556_v48 = vsub.f32 1.0, %v1555_v18  ;;  %v1570_v46 = vmul.f32 %v4970_v57, %v4934_v47  ;;  %v5023_v5 = vpop.f32.mrf.mxu3 }
 0x323   : > { %v4987_v7 = vadd.f32 1.0, %v3832_v53  ;;  %3833 = vrcp.f32 %v4978_v44  ;;  %vm1575_vm13 = vweird.f32 %v4970_v57  ;;  %vm1589_vm3 = vweird.f32 %v4978_v44 }
 0x324   : > { %v1750_v26 = vadd.f32 %v1734_v24, %v1151_v1  ;;  %v3386_v1 = vmul.f32 -1.442695, %v1411_v45  ;;  %v1551_v55 = vor.u32 1.1754944e-38, %v1550_v19  ;;  %v1557_v42 = vmul.f32 %v4941_v63, %v1556_v48  ;;  %vm5037_vm0 = vmor %vm1574_vm15, %vm1575_vm13  ;;  %v1420_v19 = vpop.f32.mrf.mxu0 }
 0x325   : > { %v1571_v31 = vsub.f32 1.0, %v1570_v46  ;;  %v1581_v48 = vor.u32 1.1754944e-38, %v1580_v4  ;;  %vm1604_vm6 = vweird.f32 %v4987_v7 }
 0x326   : > { %v1766_v14 = vmul.f32 0.01, %v1750_v26  ;;  %v1552_v29 = vsel %vm1549_vm9, %v1551_v55, %v1547_v20  ;;  %3835 = vpow2.f32 %v3386_v1  ;;  %v1558_v52 = vadd.f32 %v4941_v63, %v1557_v42 }
 0x327   : > { %v1737_v35 = vmul.f32 %v1552_v29, %v1282_v3  ;;  %3837 = vrcp.f32 %v4987_v7  ;;  %v1572_v25 = vmul.f32 %v4970_v57, %v1571_v31 }
 0x328   : > { %v4953_v17 = vmax.f32 %v1750_v26, %v1766_v14  ;;  %3839 = vpow2.f32 %v3387_v15  ;;  %v1562_v11 = vsel %vm5004_vm12, %v4941_v63, %v1558_v52  ;;  %v1416_v63 = vadd.f32 %v4840_v10, %v4962_v51 }
 0x329   : > { %v1152_v36 = vpop.f32.mrf.mxu2  ;;  %v1573_v16 = vadd.f32 %v4970_v57, %v1572_v25 }
 0x32a   : > { %v1153_v0 = vadd.f32 %v4894_v54, %v1152_v36  ;;  %v3388_v12 = vmul.f32 -1.442695, %v1416_v63  ;;  %v5054_v29 = vpop.f32.mrf.mxu3 }
 0x32c   : > { %v1751_v39 = vadd.f32 %v1735_v37, %v1153_v0  ;;  %v4999_v37 = vpop.eup %3833  ;;  %v1565_v0 = vand.u32 2147483648, %v4913_v2  ;;  %v1285_v2 = vadd.f32 %v4886_v49, %v4918_v21  ;;  %v1578_v21 = vand.u32 2147483647, %v4934_v47 }
 0x32d   : > { %v3836_v41 = vpop.eup %3835  ;;  %v1585_v23 = vmul.f32 %v4999_v37, %v4978_v44  ;;  %v1287_v47 = vadd.f32 %v4886_v49, %v4944_v59  ;;  %vm1590_vm2 = vweird.f32 %v4999_v37 }
 0x32e   : > { %v1767_v43 = vmul.f32 0.01, %v1751_v39  ;;  %v5016_v62 = vpop.eup %3837  ;;  %v5030_v58 = vadd.f32 1.0, %v3836_v41  ;;  %vm1579_vm1 = vcmp.eq.f32.partialorder %v1578_v21, 8.507059e+37  ;;  %vm5069_vm4 = vmor %vm1589_vm3, %vm1590_vm2 }
 0x32f   : > { %v1600_v51 = vmul.f32 %v5016_v62, %v4987_v7  ;;  %v3840_v9 = vpop.eup %3839  ;;  %v1586_v53 = vsub.f32 1.0, %v1585_v23  ;;  %vm1605_vm5 = vweird.f32 %v5016_v62 }
 0x330   : > { %v4955_v8 = vmax.f32 %v1751_v39, %v1767_v43  ;;  %3841 = vrcp.f32 %v5030_v58  ;;  %v5050_v20 = vadd.f32 1.0, %v3840_v9  ;;  %vm5091_vm8 = vmor %vm1604_vm6, %vm1605_vm5  ;;  %v1292_v9 = vadd.f32 %v4886_v49, %v5023_v5 }
 0x331   : > { %v1155_v56 = vpop.f32.mrf.mxu2  ;;  %v1601_v1 = vsub.f32 1.0, %v1600_v51  ;;  %v1587_v59 = vmul.f32 %v4999_v37, %v1586_v53  ;;  %3843 = vpow2.f32 %v3388_v12  ;;  %vm1619_vm11 = vweird.f32 %v5030_v58 }
 0x332   : > { %v2304_v61 = vpack.c.bf16 %v4955_v8, %v4953_v17  ;;  %v1156_v28 = vadd.f32 %v4894_v54, %v1155_v56  ;;  %v1566_v56 = vor.u32 1.1754944e-38, %v1565_v0  ;;  %3845 = vrcp.f32 %v5050_v20 }
 0x333   : > { %vm1634_vm15 = vweird.f32 %v5050_v20 }
 0x334   : > { %2387 = vmatmul.bf16.vlgmr.msra.gmra.mxu3 %v2304_v61  ;;  %2503 = vmatmul.bf16.vlgmr.msra.gmra.mxu0 %v2304_v61  ;;  %v1752_v24 = vadd.f32 %v1736_v13, %v1156_v28  ;;  %v1567_v61 = vsel %vm1564_vm14, %v1566_v56, %v1562_v11  ;;  %v1577_v28 = vsel %vm5037_vm0, %v4970_v57, %v1573_v16 }
 0x335   : > { %v1738_v34 = vmul.f32 %v1567_v61, %v1285_v2  ;;  %v1418_v13 = vadd.f32 %v4840_v10, %v1417_v32  ;;  %v1582_v46 = vsel %vm1579_vm1, %v1581_v48, %v1577_v28  ;;  %v1595_v32 = vand.u32 2147483648, %v4978_v44 }
 0x336   : > { %v1768_v6 = vmul.f32 0.01, %v1752_v24  ;;  %v1739_v22 = vmul.f32 %v1582_v46, %v1287_v47  ;;  %v5058_v31 = vpop.eup %3841  ;;  %v1421_v16 = vadd.f32 %v4840_v10, %v1420_v19  ;;  %v1296_v19 = vpop.f32.mrf.mxu3 }
 0x337   : > { %v3389_v57 = vmul.f32 -1.442695, %v1418_v13  ;;  %v1615_v60 = vmul.f32 %v5058_v31, %v5030_v58  ;;  %v1596_v23 = vor.u32 1.1754944e-38, %v1595_v32  ;;  %vm1620_vm10 = vweird.f32 %v5058_v31 }
 0x338   : > { %v5008_v14 = vmax.f32 %v1752_v24, %v1768_v6  ;;  %v1422_v6 = vpop.f32.mrf.mxu0  ;;  %vm5120_vm12 = vmor %vm1619_vm11, %vm1620_vm10 }
 0x339   : > { %v1157_v30 = vpop.f32.mrf.mxu2  ;;  %3847 = vpow2.f32 %v3389_v57  ;;  %v1423_v45 = vadd.f32 %v4840_v10, %v1422_v6 }
 0x33a   : > { %v1158_v33 = vadd.f32 %v4894_v54, %v1157_v30 }
 0x33b   : > { %v3391_v13 = vmul.f32 -1.442695, %v1423_v45 }
 0x33c   : > { %v1753_v26 = vadd.f32 %v1737_v35, %v1158_v33  ;;  %v1602_v35 = vmul.f32 %v5016_v62, %v1601_v1  ;;  %v1588_v33 = vadd.f32 %v4999_v37, %v1587_v59 }
 0x33e   : > { %v1769_v36 = vmul.f32 0.01, %v1753_v26  ;;  %v1603_v0 = vadd.f32 %v5016_v62, %v1602_v35  ;;  %v1592_v11 = vsel %vm5069_vm4, %v4999_v37, %v1588_v33  ;;  %v1608_v37 = vand.u32 2147483647, %v4987_v7  ;;  %v5124_v32 = vpop.f32.mrf.mxu3 }
 0x33f   : > { %v1623_v35 = vand.u32 2147483647, %v5030_v58  ;;  %v1625_v33 = vand.u32 2147483648, %v5030_v58  ;;  %v1295_v58 = vadd.f32 %v4886_v49, %v5054_v29  ;;  %v1638_v29 = vand.u32 2147483647, %v5050_v20 }
 0x340   : > { %v5010_v39 = vmax.f32 %v1753_v26, %v1769_v36  ;;  %v1593_v26 = vand.u32 2147483647, %v4978_v44  ;;  %v3844_v36 = vpop.eup %3843  ;;  %v1290_v44 = vadd.f32 %v4886_v49, %v4990_v38  ;;  %v1607_v21 = vsel %vm5091_vm8, %v5016_v62, %v1603_v0 }
 0x341   : > { %v1160_v43 = vpop.f32.mrf.mxu2  ;;  %v5084_v2 = vpop.eup %3845  ;;  %v5089_v63 = vadd.f32 1.0, %v3844_v36  ;;  %vm1609_vm9 = vcmp.eq.f32.partialorder %v1608_v37, 8.507059e+37  ;;  %vm1624_vm14 = vcmp.eq.f32.partialorder %v1623_v35, 8.507059e+37  ;;  %vm1639_vm1 = vcmp.eq.f32.partialorder %v1638_v29, 8.507059e+37 }
 0x342   : > { %v2305_v18 = vpack.c.bf16 %v5010_v39, %v5008_v14  ;;  %v1161_v50 = vadd.f32 %v4894_v54, %v1160_v43  ;;  %vm1594_vm7 = vcmp.eq.f32.partialorder %v1593_v26, 8.507059e+37  ;;  %v3848_v61 = vpop.eup %3847  ;;  %vm1635_vm13 = vweird.f32 %v5084_v2 }
 0x343   : > { %v1597_v4 = vsel %vm1594_vm7, %v1596_v23, %v1592_v11  ;;  %3849 = vrcp.f32 %v5089_v63  ;;  %v5106_v53 = vadd.f32 1.0, %v3848_v61  ;;  %vm1636_vm0 = vmor %vm1634_vm15, %vm1635_vm13  ;;  %vm1649_vm3 = vweird.f32 %v5089_v63 }
 0x344   : > { %2392 = vmatmul.bf16.gmra.mxu3 %v2305_v18  ;;  %2508 = vmatmul.bf16.gmra.mxu0 %v2305_v18  ;;  %v1754_v3 = vadd.f32 %v1738_v34, %v1161_v50  ;;  %v1610_v18 = vand.u32 2147483648, %v4987_v7  ;;  %v1616_v50 = vsub.f32 1.0, %v1615_v60  ;;  %v1740_v51 = vmul.f32 %v1597_v4, %v1290_v44 }
 0x345   : > { %v1630_v7 = vmul.f32 %v5084_v2, %v5050_v20  ;;  %v3390_v34 = vmul.f32 -1.442695, %v1421_v16  ;;  %v1626_v16 = vor.u32 1.1754944e-38, %v1625_v33  ;;  %vm1664_vm7 = vweird.f32 %v5106_v53 }
 0x346   : > { %v1770_v42 = vmul.f32 0.01, %v1754_v3  ;;  %v1611_v47 = vor.u32 1.1754944e-38, %v1610_v18  ;;  %v1617_v12 = vmul.f32 %v5058_v31, %v1616_v50  ;;  %v1297_v50 = vadd.f32 %v4886_v49, %v1296_v19 }
 0x347   : > { %v1631_v5 = vsub.f32 1.0, %v1630_v7  ;;  %3851 = vpow2.f32 %v3390_v34 }
 0x348   : > { %v5065_v52 = vmax.f32 %v1754_v3, %v1770_v42  ;;  %v1612_v62 = vsel %vm1609_vm9, %v1611_v47, %v1607_v21  ;;  %v1425_v3 = vpop.f32.mrf.mxu0  ;;  %3853 = vrcp.f32 %v5106_v53  ;;  %v1618_v59 = vadd.f32 %v5058_v31, %v1617_v12 }
 0x349   : > { %v1162_v55 = vpop.f32.mrf.mxu2  ;;  %v1741_v46 = vmul.f32 %v1612_v62, %v1292_v9  ;;  %3855 = vpow2.f32 %v3391_v13  ;;  %v1632_v57 = vmul.f32 %v5084_v2, %v1631_v5  ;;  %v1301_v62 = vpop.f32.mrf.mxu3 }
 0x34a   : > { %v1163_v24 = vadd.f32 %v4894_v54, %v1162_v55  ;;  %v1622_v40 = vsel %vm5120_vm12, %v5058_v31, %v1618_v59  ;;  %v1640_v31 = vand.u32 2147483648, %v5050_v20  ;;  %v1655_v59 = vand.u32 2147483648, %v5089_v63 }
 0x34b   : > { %v1302_v29 = vadd.f32 %v4886_v49, %v1301_v62 }
 0x34c   : > { %v1755_v30 = vadd.f32 %v1739_v22, %v1163_v24  ;;  %v5113_v24 = vpop.eup %3849  ;;  %v1641_v9 = vor.u32 1.1754944e-38, %v1640_v31 }
 0x34d   : > { %v3852_v36 = vpop.eup %3851  ;;  %v1645_v0 = vmul.f32 %v5113_v24, %v5089_v63  ;;  %vm1650_vm2 = vweird.f32 %v5113_v24 }
 0x34e   : > { %v1771_v15 = vmul.f32 0.01, %v1755_v30  ;;  %v5141_v11 = vpop.eup %3853  ;;  %v5144_v18 = vadd.f32 1.0, %v3852_v36  ;;  %vm5172_vm4 = vmor %vm1649_vm3, %vm1650_vm2 }
 0x34f   : > { %v3856_v23 = vpop.eup %3855  ;;  %v1646_v4 = vsub.f32 1.0, %v1645_v0  ;;  %v1660_v45 = vmul.f32 %v5141_v11, %v5106_v53  ;;  %vm1665_vm5 = vweird.f32 %v5141_v11 }
 0x350   : > { %v5067_v25 = vmax.f32 %v1755_v30, %v1771_v15  ;;  %v1426_v30 = vadd.f32 %v4840_v10, %v1425_v3  ;;  %v1427_v38 = vpop.f32.mrf.mxu0  ;;  %vm1666_vm8 = vmor %vm1664_vm7, %vm1665_vm5  ;;  %v1685_v62 = vand.u32 2147483648, %v5144_v18  ;;  %vm1679_vm11 = vweird.f32 %v5144_v18 }
 0x351   : > { %v1165_v41 = vpop.f32.mrf.mxu2  ;;  %v1428_v20 = vadd.f32 %v4840_v10, %v1427_v38  ;;  %v1647_v47 = vmul.f32 %v5113_v24, %v1646_v4 }
 0x352   : > { %v2306_v43 = vpack.c.bf16 %v5067_v25, %v5065_v52  ;;  %v1166_v56 = vadd.f32 %v4894_v54, %v1165_v41  ;;  %v1633_v41 = vadd.f32 %v5084_v2, %v1632_v57 }
 0x354   : > { %2397 = vmatmul.bf16.gmra.mxu3 %v2306_v43  ;;  %2513 = vmatmul.bf16.gmra.mxu0 %v2306_v43  ;;  %v1756_v28 = vadd.f32 %v1740_v51, %v1166_v56  ;;  %v3392_v43 = vmul.f32 -1.442695, %v1426_v30  ;;  %v1627_v56 = vsel %vm1624_vm14, %v1626_v16, %v1622_v40  ;;  %v1637_v61 = vsel %vm1636_vm0, %v5084_v2, %v1633_v41 }
 0x355   : > { %v1742_v21 = vmul.f32 %v1627_v56, %v1295_v58  ;;  %v5155_v51 = vadd.f32 1.0, %v3856_v23  ;;  %v1642_v34 = vsel %vm1639_vm1, %v1641_v9, %v1637_v61  ;;  %v1661_v2 = vsub.f32 1.0, %v1660_v45 }
 0x356   : > { %v1772_v55 = vmul.f32 0.01, %v1756_v28  ;;  %3857 = vpow2.f32 %v3392_v43  ;;  %v1743_v19 = vmul.f32 %v1642_v34, %v1297_v50  ;;  %v1300_v40 = vadd.f32 %v4886_v49, %v5124_v32 }
 0x357   : > { %3859 = vrcp.f32 %v5144_v18  ;;  %v1656_v58 = vor.u32 1.1754944e-38, %v1655_v59  ;;  %v1668_v41 = vand.u32 2147483647, %v5106_v53  ;;  %vm1694_vm14 = vweird.f32 %v5155_v51 }
 0x358   : > { %v5126_v6 = vmax.f32 %v1756_v28, %v1772_v55  ;;  %3861 = vrcp.f32 %v5155_v51 }
 0x359   : > { %v1167_v48 = vpop.f32.mrf.mxu2  ;;  %vm1669_vm9 = vcmp.eq.f32.partialorder %v1668_v41, 8.507059e+37 }
 0x35a   : > { %v1168_v1 = vadd.f32 %v4894_v54, %v1167_v48  ;;  %v3393_v48 = vmul.f32 -1.442695, %v1428_v20 }
 0x35c   : > { %v1757_v22 = vadd.f32 %v1741_v46, %v1168_v1  ;;  %v3858_v10 = vpop.eup %3857  ;;  %v1648_v46 = vadd.f32 %v5113_v24, %v1647_v47  ;;  %v1662_v1 = vmul.f32 %v5141_v11, %v1661_v2  ;;  %3863 = vpow2.f32 %v3393_v48 }
 0x35d   : > { %v5164_v5 = vpop.eup %3859  ;;  %v5170_v57 = vadd.f32 1.0, %v3858_v10 }
 0x35e   : > { %v1773_v42 = vmul.f32 0.01, %v1757_v22  ;;  %v5180_v33 = vpop.eup %3861  ;;  %v1652_v15 = vsel %vm5172_vm4, %v5113_v24, %v1648_v46  ;;  %v1675_v36 = vmul.f32 %v5164_v5, %v5144_v18  ;;  %v1663_v0 = vadd.f32 %v5141_v11, %v1662_v1 }
 0x35f   : > { %v1670_v24 = vand.u32 2147483648, %v5106_v53  ;;  %3865 = vrcp.f32 %v5170_v57  ;;  %v1690_v32 = vmul.f32 %v5180_v33, %v5155_v51  ;;  %vm1680_vm10 = vweird.f32 %v5164_v5 }
 0x360   : > { %v5128_v26 = vmax.f32 %v1757_v22, %v1773_v42  ;;  %v1653_v22 = vand.u32 2147483647, %v5089_v63  ;;  %v1676_v23 = vsub.f32 1.0, %v1675_v36  ;;  %vm5219_vm12 = vmor %vm1679_vm11, %vm1680_vm10  ;;  %vm1695_vm13 = vweird.f32 %v5180_v33 }
 0x361   : > { %v1170_v60 = vpop.f32.mrf.mxu2  ;;  %v1671_v53 = vor.u32 1.1754944e-38, %v1670_v24  ;;  %v1691_v4 = vsub.f32 1.0, %v1690_v32  ;;  %v1700_v36 = vand.u32 2147483648, %v5155_v51  ;;  %vm5239_vm0 = vmor %vm1694_vm14, %vm1695_vm13  ;;  %v1824_v32 = vmul.f32 %v5008_v14, %v5008_v14 }
 0x362   : > { %v2307_v44 = vpack.c.bf16 %v5128_v26, %v5126_v6  ;;  %v1171_v37 = vadd.f32 %v4894_v54, %v1170_v60  ;;  %vm1654_vm6 = vcmp.eq.f32.partialorder %v1653_v22, 8.507059e+37  ;;  %v3864_v16 = vpop.eup %3863  ;;  %v1677_v61 = vmul.f32 %v5164_v5, %v1676_v23 }
 0x363   : > { %v1657_v31 = vsel %vm1654_vm6, %v1656_v58, %v1652_v15  ;;  %v5204_v56 = vadd.f32 1.0, %v3864_v16  ;;  %v1692_v34 = vmul.f32 %v5180_v33, %v1691_v4  ;;  %v1686_v22 = vor.u32 1.1754944e-38, %v1685_v62 }
 0x364   : > { %2402 = vmatmul.bf16.gmra.mxu3 %v2307_v44  ;;  %2518 = vmatmul.bf16.gmra.mxu0 %v2307_v44  ;;  %v1758_v7 = vadd.f32 %v1742_v21, %v1171_v37  ;;  %v1304_v44 = vpop.f32.mrf.mxu3  ;;  %v1744_v38 = vmul.f32 %v1657_v31, %v1300_v40  ;;  %v1667_v37 = vsel %vm1666_vm8, %v5141_v11, %v1663_v0  ;;  %v1701_v31 = vor.u32 1.1754944e-38, %v1700_v36 }
 0x365   : > { %v1672_v50 = vsel %vm1669_vm9, %v1671_v53, %v1667_v37  ;;  %v5207_v20 = vpop.eup %3865  ;;  %3867 = vrcp.f32 %v5204_v56  ;;  %v1693_v10 = vadd.f32 %v5180_v33, %v1692_v34  ;;  %v1305_v15 = vadd.f32 %v4886_v49, %v1304_v44 }
 0x366   : > { %v1774_v13 = vmul.f32 0.01, %v1758_v7  ;;  %v1745_v9 = vmul.f32 %v1672_v50, %v1302_v29  ;;  %v1705_v2 = vmul.f32 %v5207_v20, %v5170_v57  ;;  %v1823_v0 = vmul.f32 %v4955_v8, %v4955_v8 }
 0x367   : > { %v1697_v58 = vsel %vm5239_vm0, %v5180_v33, %v1693_v10  ;;  %v1800_v33 = vadd.f32 %v4955_v8, %v4953_v17  ;;  %vm1710_vm2 = vweird.f32 %v5207_v20  ;;  %v1715_v34 = vand.u32 2147483648, %v5170_v57 }
 0x368   : > { %v5176_v30 = vmax.f32 %v1758_v7, %v1774_v13  ;;  %v1683_v13 = vand.u32 2147483647, %v5144_v18  ;;  %v1706_v59 = vsub.f32 1.0, %v1705_v2  ;;  %vm1709_vm3 = vweird.f32 %v5170_v57 }
 0x369   : > { %v1172_v28 = vpop.f32.mrf.mxu2  ;;  %v1801_v53 = vadd.f32 %v1800_v33, %v5008_v14  ;;  %v1827_v62 = vmul.f32 %v5067_v25, %v5067_v25  ;;  %vm5276_vm4 = vmor %vm1709_vm3, %vm1710_vm2  ;;  %v1730_v36 = vand.u32 2147483648, %v5204_v56  ;;  %v1829_v40 = vmul.f32 %v5128_v26, %v5128_v26 }
 0x36a   : > { %v1173_v12 = vadd.f32 %v4894_v54, %v1172_v28  ;;  %v3623_v28 = vld [vmem:[#allocation7 + $0x138] sm:$0xff]  ;;  %vm1684_vm15 = vcmp.eq.f32.partialorder %v1683_v13, 8.507059e+37  ;;  %v1707_v41 = vmul.f32 %v5207_v20, %v1706_v59  ;;  %v1716_v59 = vor.u32 1.1754944e-38, %v1715_v34 }
 0x36b   : > { %1986 = vmatpush.bf16.msrb.mxu1 %v3623_v28  ;;  %v5232_v18 = vpop.eup %3867  ;;  %v1713_v28 = vand.u32 2147483647, %v5170_v57  ;;  %vm1724_vm7 = vweird.f32 %v5204_v56  ;;  %v1728_v33 = vand.u32 2147483647, %v5204_v56 }
 0x36c   : > { %v1759_v3 = vadd.f32 %v1743_v19, %v1173_v12  ;;  %v1678_v19 = vadd.f32 %v5164_v5, %v1677_v61  ;;  %v1306_v12 = vpop.f32.mrf.mxu3  ;;  %v1720_v44 = vmul.f32 %v5232_v18, %v5204_v56  ;;  %vm1725_vm6 = vweird.f32 %v5232_v18 }
 0x36d   : > { %v1307_v16 = vadd.f32 %v4886_v49, %v1306_v12  ;;  %vm1714_vm5 = vcmp.eq.f32.partialorder %v1713_v28, 8.507059e+37  ;;  %vm1726_vm8 = vmor %vm1724_vm7, %vm1725_vm6  ;;  %vm1729_vm9 = vcmp.eq.f32.partialorder %v1728_v33, 8.507059e+37 }
 0x36e   : > { %v1775_v55 = vmul.f32 0.01, %v1759_v3  ;;  %v1721_v50 = vsub.f32 1.0, %v1720_v44 }
 0x370   : > { %v5178_v35 = vmax.f32 %v1759_v3, %v1775_v55  ;;  %v1682_v55 = vsel %vm5219_vm12, %v5164_v5, %v1678_v19  ;;  %v1698_v5 = vand.u32 2147483647, %v5155_v51  ;;  %v1822_v51 = vmul.f32 %v4953_v17, %v4953_v17 }
 0x371   : > { %v1175_v63 = vpop.f32.mrf.mxu2  ;;  %v1722_v57 = vmul.f32 %v5232_v18, %v1721_v50 }
 0x372   : > { %v2308_v60 = vpack.c.bf16 %v5178_v35, %v5176_v30  ;;  %v1176_v43 = vadd.f32 %v4894_v54, %v1175_v63  ;;  %vm1699_vm1 = vcmp.eq.f32.partialorder %v1698_v5, 8.507059e+37  ;;  %v1838_v23 = vadd.f32 %v1823_v0, %v1822_v51 }
 0x373   : > { %v1702_v29 = vsel %vm1699_vm1, %v1701_v31, %v1697_v58  ;;  %v1723_v58 = vadd.f32 %v5232_v18, %v1722_v57 }
 0x374   : > { %2407 = vmatmul.bf16.gmra.mxu3 %v2308_v60  ;;  %2523 = vmatmul.bf16.gmra.mxu0 %v2308_v60  ;;  %v1760_v21 = vadd.f32 %v1744_v38, %v1176_v43  ;;  %v1687_v60 = vsel %vm1684_vm15, %v1686_v22, %v1682_v55  ;;  %v1825_v38 = vmul.f32 %v5010_v39, %v5010_v39  ;;  %v1309_v37 = vpop.f32.mrf.mxu3 }
 0x375   : > { %v1746_v43 = vmul.f32 %v1687_v60, %v1305_v15  ;;  %v1839_v61 = vadd.f32 %v1838_v23, %v1824_v32  ;;  %v1828_v55 = vmul.f32 %v5126_v6, %v5126_v6  ;;  %v1310_v22 = vadd.f32 %v4886_v49, %v1309_v37 }
 0x376   : > { %v1776_v11 = vmul.f32 0.01, %v1760_v21 }
 0x377   : > { %v1840_v19 = vadd.f32 %v1839_v61, %v1825_v38  ;;  %v1831_v38 = vmul.f32 %v5178_v35, %v5178_v35  ;;  %v1731_v61 = vor.u32 1.1754944e-38, %v1730_v36 }
 0x378   : > { %v5225_v46 = vmax.f32 %v1760_v21, %v1776_v11  ;;  %v1708_v21 = vadd.f32 %v5207_v20, %v1707_v41  ;;  %v1802_v11 = vadd.f32 %v1801_v53, %v5010_v39  ;;  %v1830_v41 = vmul.f32 %v5176_v30, %v5176_v30 }
 0x379   : > { %v1177_v45 = vpop.f32.mrf.mxu2 }
 0x37a   : > { %v1178_v7 = vadd.f32 %v4894_v54, %v1177_v45  ;;  %v1826_v45 = vmul.f32 %v5065_v52, %v5065_v52  ;;  %v1803_v12 = vadd.f32 %v1802_v11, %v5065_v52  ;;  %v1712_v3 = vsel %vm5276_vm4, %v5207_v20, %v1708_v21 }
 0x37b   : > { %v1717_v20 = vsel %vm1714_vm5, %v1716_v59, %v1712_v3  ;;  %v1832_v50 = vmul.f32 %v5225_v46, %v5225_v46 }
 0x37c   : > { %v1761_v47 = vadd.f32 %v1745_v9, %v1178_v7  ;;  %v1747_v7 = vmul.f32 %v1702_v29, %v1307_v16  ;;  %v1841_v10 = vadd.f32 %v1840_v19, %v1826_v45  ;;  %v1748_v51 = vmul.f32 %v1717_v20, %v1310_v22  ;;  %v1311_v32 = vpop.f32.mrf.mxu3 }
 0x37d   : > { %v1312_v53 = vadd.f32 %v4886_v49, %v1311_v32  ;;  %v3621_v32 = vld [vmem:[#allocation7 + $0x128] sm:$0xff] }
 0x37e   : > { %v1777_v48 = vmul.f32 0.01, %v1761_v47 }
 0x380   : > { %v5227_v1 = vmax.f32 %v1761_v47, %v1777_v48 }
 0x381   : > { %v1180_v42 = vpop.f32.mrf.mxu2 }
 0x382   : > { %v2309_v63 = vpack.c.bf16 %v5227_v1, %v5225_v46  ;;  %v1181_v24 = vadd.f32 %v4894_v54, %v1180_v42  ;;  %v1804_v42 = vadd.f32 %v1803_v12, %v5067_v25  ;;  %v1833_v11 = vmul.f32 %v5227_v1, %v5227_v1 }
 0x384   : > { %2412 = vmatmul.bf16.gmra.mxu3 %v2309_v63  ;;  %2528 = vmatmul.bf16.gmra.mxu0 %v2309_v63  ;;  %v1762_v4 = vadd.f32 %v1746_v43, %v1181_v24  ;;  %v1842_v63 = vadd.f32 %v1841_v10, %v1827_v62  ;;  %v1805_v5 = vadd.f32 %v1804_v42, %v5126_v6 }
 0x386   : > { %v1778_v48 = vmul.f32 0.01, %v1762_v4  ;;  %v1843_v24 = vadd.f32 %v1842_v63, %v1828_v55  ;;  %v1806_v43 = vadd.f32 %v1805_v5, %v5128_v26 }
 0x388   : > { %v5293_v0 = vmax.f32 %v1762_v4, %v1778_v48  ;;  %v1844_v23 = vadd.f32 %v1843_v24, %v1829_v40  ;;  %v1807_v29 = vadd.f32 %v1806_v43, %v5176_v30  ;;  %v1727_v4 = vsel %vm1726_vm8, %v5232_v18, %v1723_v58  ;;  %v3622_v58 = vld [vmem:[#allocation7 + $0x130] sm:$0xff] }
 0x389   : > { %v1182_v9 = vpop.f32.mrf.mxu2  ;;  %1987 = vmatpush.bf16.msrb.mxu1 %v3622_v58 }
 0x38a   : > { %v1183_v47 = vadd.f32 %v4894_v54, %v1182_v9  ;;  %v1845_v21 = vadd.f32 %v1844_v23, %v1830_v41  ;;  %v1808_v56 = vadd.f32 %v1807_v29, %v5178_v35  ;;  %v1834_v19 = vmul.f32 %v5293_v0, %v5293_v0  ;;  %v3620_v23 = vld [vmem:[#allocation7 + $0x120] sm:$0xff] }
 0x38c   : > { %v1763_v13 = vadd.f32 %v1747_v7, %v1183_v47  ;;  %v1846_v9 = vadd.f32 %v1845_v21, %v1831_v38  ;;  %v1732_v7 = vsel %vm1729_vm9, %v1731_v61, %v1727_v4  ;;  %v1809_v34 = vadd.f32 %v1808_v56, %v5225_v46  ;;  %v3619_v4 = vld [vmem:[#allocation7 + $0x118] sm:$0xff]  ;;  %v3618_v56 = vld [vmem:[#allocation7 + $0x110] sm:$0xff] }
 0x38d   : > { %v1749_v47 = vmul.f32 %v1732_v7, %v1312_v53  ;;  %1988 = vmatpush.bf16.msrb.mxu1 %v3621_v32  ;;  %v3617_v7 = vld [vmem:[#allocation7 + $0x108] sm:$0xff] }
 0x38e   : > { %v1779_v15 = vmul.f32 0.01, %v1763_v13  ;;  %v1847_v49 = vadd.f32 %v1846_v9, %v1832_v50  ;;  %v1810_v18 = vadd.f32 %v1809_v34, %v5227_v1  ;;  %v3616_v34 = vld [vmem:[#allocation7 + $0x100] sm:$0xff] }
 0x390   : > { %v5295_v60 = vmax.f32 %v1763_v13, %v1779_v15  ;;  %v1848_v12 = vadd.f32 %v1847_v49, %v1833_v11  ;;  %v1811_v48 = vadd.f32 %v1810_v18, %v5293_v0 }
 0x391   : > { %v1185_v44 = vpop.f32.mrf.mxu2  ;;  %1989 = vmatpush.bf16.msrb.mxu1 %v3620_v23 }
 0x392   : > { %v1186_v16 = vadd.f32 %v4894_v54, %v1185_v44  ;;  %v2310_v31 = vpack.c.bf16 %v5295_v60, %v5293_v0  ;;  %v1835_v13 = vmul.f32 %v5295_v60, %v5295_v60  ;;  %v1849_v57 = vadd.f32 %v1848_v12, %v1834_v19  ;;  %v1798_v19 = vld [vmem:[#allocation11 + $0x9] sm:$0x1] }
 0x393   : > { %v1812_v10 = vadd.f32 %v1811_v48, %v5295_v60 }
 0x394   : > { %v1764_v37 = vadd.f32 %v1748_v51, %v1186_v16  ;;  %2417 = vmatmul.bf16.gmra.mxu3 %v2310_v31  ;;  %2533 = vmatmul.bf16.gmra.mxu0 %v2310_v31  ;;  %v1850_v59 = vadd.f32 %v1849_v57, %v1835_v13  ;;  %v1799_v13 = vld [vmem:[#allocation11 + $0xa] sm:$0x1] }
 0x395   : > { %1990 = vmatpush.bf16.msrb.mxu1 %v3619_v4 }
 0x396   : > { %v1780_v45 = vmul.f32 0.01, %v1764_v37 }
 0x398   : > { %v5321_v62 = vmax.f32 %v1764_v37, %v1780_v45 }
 0x399   : > { %v1187_v28 = vpop.f32.mrf.mxu2  ;;  %1991 = vmatpush.bf16.msrb.mxu1 %v3618_v56 }
 0x39a   : > { %v1188_v2 = vadd.f32 %v4894_v54, %v1187_v28  ;;  %v1836_v55 = vmul.f32 %v5321_v62, %v5321_v62  ;;  %v1813_v42 = vadd.f32 %v1812_v10, %v5321_v62 }
 0x39c   : > { %v1765_v3 = vadd.f32 %v1749_v47, %v1188_v2  ;;  %v1851_v54 = vadd.f32 %v1850_v59, %v1836_v55 }
 0x39d   : > { %1992 = vmatpush.bf16.msrb.mxu1 %v3617_v7 }
 0x39e   : > { %v1781_v22 = vmul.f32 0.01, %v1765_v3 }
 0x3a0   : > { %v5331_v15 = vmax.f32 %v1765_v3, %v1781_v22 }
 0x3a1   : > { %1993 = vmatpush.bf16.msrb.mxu1 %v3616_v34 }
 0x3a2   : > { %v1814_v36 = vadd.f32 %v1813_v42, %v5331_v15  ;;  %v1837_v63 = vmul.f32 %v5331_v15, %v5331_v15  ;;  %v2311_v40 = vpack.c.bf16 %v5331_v15, %v5321_v62 }
 0x3a4   : > { %v1815_v20 = vrot.slane %v1814_v36, 4  ;;  %v1852_v5 = vadd.f32 %v1851_v54, %v1837_v63  ;;  %2422 = vmatmul.bf16.gmra.mxu3 %v2311_v40  ;;  %2538 = vmatmul.bf16.gmra.mxu0 %v2311_v40 }
 0x3a6   : > { %v1816_v24 = vadd.f32 %v1815_v20, %v1814_v36  ;;  %v1853_v41 = vrot.slane %v1852_v5, 4 }
 0x3a8   : > { %v1817_v44 = vrot.slane %v1816_v24, 2  ;;  %v1854_v51 = vadd.f32 %v1853_v41, %v1852_v5 }
 0x3aa   : > { %v1818_v43 = vadd.f32 %v1817_v44, %v1816_v24  ;;  %v1855_v16 = vrot.slane %v1854_v51, 2 }
 0x3ac   : > { %v1819_v31 = vrot.slane %v1818_v43, 1  ;;  %v1856_v33 = vadd.f32 %v1855_v16, %v1854_v51 }
 0x3ae   : > { %v1820_v38 = vadd.f32 %v1819_v31, %v1818_v43  ;;  %v1857_v29 = vrot.slane %v1856_v33, 1 }
 0x3b0   : > { %v1821_v37 = vmul.f32 %v1820_v38, %v4534_v27  ;;  %v1858_v53 = vadd.f32 %v1857_v29, %v1856_v33 }
 0x3b2   : > { %v1859_v21 = vmul.f32 %v1858_v53, %v4534_v27  ;;  %v1860_v50 = vmul.f32 %v1821_v37, %v1821_v37 }
 0x3b4   : > { %v1861_v61 = vsub.f32 %v1859_v21, %v1860_v50 }
 0x3b6   : > { %v1862_v45 = vmax.f32 %v1861_v61, 0.0 }
 0x3b8   : > { %v1863_v9 = vadd.f32 1e-05, %v1862_v45 }
 0x3ba   : > { %3869 = vrsqrt.f32 %v1863_v9  ;;  %vm1870_vm11 = vweird.f32 %v1863_v9 }
 0x3c0   : > { %v3870_v11 = vpop.eup %3869 }
 0x3c1   : > { %v1865_v47 = vmul.f32 %v3870_v11, %v1863_v9  ;;  %vm1871_vm10 = vweird.f32 %v3870_v11  ;;  %v3631_v9 = vld [vmem:[#allocation7 + $0x178] sm:$0xff] }
 0x3c2   : > { %vm1872_vm12 = vmor %vm1870_vm11, %vm1871_vm10  ;;  %2255 = vmatpush.bf16.msra.mxu2 %v3631_v9 }
 0x3c3   : > { %v1866_v49 = vmul.f32 %v3870_v11, %v1865_v47  ;;  %v3629_v47 = vld [vmem:[#allocation7 + $0x168] sm:$0xff] }
 0x3c5   : > { %v1867_v28 = vmul.f32 0.5, %v1866_v49 }
 0x3c7   : > { %v1868_v18 = vsub.f32 1.5, %v1867_v28 }
 0x3c9   : > { %v1869_v2 = vmul.f32 %v3870_v11, %v1868_v18  ;;  %v3628_v18 = vld [vmem:[#allocation7 + $0x160] sm:$0xff] }
 0x3cb   : > { %v1873_v12 = vsel %vm1872_vm12, %v3870_v11, %v1869_v2  ;;  %v3630_v11 = vld [vmem:[#allocation7 + $0x170] sm:$0xff] }
 0x3cc   : > { %v1874_v48 = vmul.f32 %v1873_v12, %v1798_v19  ;;  %2256 = vmatpush.bf16.msra.mxu2 %v3630_v11  ;;  %v5356_v2 = vld [vmem:[#allocation11 + $0xb] ss:$0 sm:$0xff] }
 0x3ce   : > { %v1875_v3 = vmul.f32 %v1874_v48, %v1821_v37  ;;  %v1877_v57 = vperm.slane %v1874_v48, 0 }
 0x3d0   : > { %v1876_v10 = vsub.f32 %v1799_v13, %v1875_v3  ;;  %v1878_v22 = vmul.f32 %v1877_v57, %v4953_v17  ;;  %v1879_v59 = vmul.f32 %v1877_v57, %v4955_v8  ;;  %v1886_v63 = vmul.f32 %v1877_v57, %v5176_v30  ;;  %2257 = vmatpush.bf16.msra.mxu2 %v3629_v47 }
 0x3d1   : > { %v1887_v40 = vmul.f32 %v1877_v57, %v5178_v35  ;;  %v1880_v58 = vmul.f32 %v1877_v57, %v5008_v14  ;;  %v1888_v24 = vmul.f32 %v1877_v57, %v5225_v46  ;;  %v1881_v41 = vmul.f32 %v1877_v57, %v5010_v39 }
 0x3d2   : > { %v1894_v55 = vperm.slane %v1876_v10, 0  ;;  %v1889_v8 = vmul.f32 %v1877_v57, %v5227_v1  ;;  %v1890_v43 = vmul.f32 %v1877_v57, %v5293_v0  ;;  %v1891_v30 = vmul.f32 %v1877_v57, %v5295_v60 }
 0x3d3   : > { %v1892_v35 = vmul.f32 %v1877_v57, %v5321_v62  ;;  %v1893_v14 = vmul.f32 %v1877_v57, %v5331_v15  ;;  %v1882_v37 = vmul.f32 %v1877_v57, %v5065_v52  ;;  %v1883_v0 = vmul.f32 %v1877_v57, %v5067_v25 }
 0x3d4   : > { %v1895_v42 = vadd.f32 %v1894_v55, %v1878_v22  ;;  %v1896_v54 = vadd.f32 %v1894_v55, %v1879_v59  ;;  %v1903_v20 = vadd.f32 %v1894_v55, %v1886_v63  ;;  %v1904_v5 = vadd.f32 %v1894_v55, %v1887_v40  ;;  %2258 = vmatpush.bf16.msra.mxu2 %v3628_v18  ;;  %v3627_v59 = vld [vmem:[#allocation7 + $0x158] sm:$0xff] }
 0x3d5   : > { %v1897_v17 = vadd.f32 %v1894_v55, %v1880_v58  ;;  %v1905_v51 = vadd.f32 %v1894_v55, %v1888_v24  ;;  %v1898_v32 = vadd.f32 %v1894_v55, %v1881_v41  ;;  %v1906_v16 = vadd.f32 %v1894_v55, %v1889_v8 }
 0x3d6   : > { %v1928_v36 = vpack.c.bf16 %v1896_v54, %v1895_v42  ;;  %v1932_v44 = vpack.c.bf16 %v1904_v5, %v1903_v20  ;;  %v1907_v31 = vadd.f32 %v1894_v55, %v1890_v43  ;;  %v1908_v33 = vadd.f32 %v1894_v55, %v1891_v30 }
 0x3d7   : > { %v1909_v46 = vadd.f32 %v1894_v55, %v1892_v35  ;;  %v1933_v23 = vpack.c.bf16 %v1906_v16, %v1905_v51  ;;  %v1929_v39 = vpack.c.bf16 %v1898_v32, %v1897_v17  ;;  %v1910_v29 = vadd.f32 %v1894_v55, %v1893_v14 }
 0x3d8   : > { %1994 = vmatmul.bf16.vlgmr.msrb.gmra.mxu1 %v1928_v36  ;;  %v1934_v38 = vpack.c.bf16 %v1908_v33, %v1907_v31  ;;  %v1899_v53 = vadd.f32 %v1894_v55, %v1882_v37  ;;  %v1900_v60 = vadd.f32 %v1894_v55, %v1883_v0  ;;  %v1884_v62 = vmul.f32 %v1877_v57, %v5126_v6 }
 0x3d9   : > { %v1935_v1 = vpack.c.bf16 %v1910_v29, %v1909_v46  ;;  %v1885_v21 = vmul.f32 %v1877_v57, %v5128_v26  ;;  %2259 = vmatpush.bf16.msra.mxu2 %v3627_v59 }
 0x3da   : > { %v1930_v4 = vpack.c.bf16 %v1900_v60, %v1899_v53  ;;  %v1901_v15 = vadd.f32 %v1894_v55, %v1884_v62 }
 0x3db   : > { %v1902_v50 = vadd.f32 %v1894_v55, %v1885_v21 }
 0x3dd   : > { %v1931_v61 = vpack.c.bf16 %v1902_v50, %v1901_v15 }
 0x3e8   : > { %1999 = vmatmul.bf16.gmra.mxu1 %v1929_v39 }
 0x3f8   : > { %2004 = vmatmul.bf16.gmra.mxu1 %v1930_v4 }
 0x408   : > { %2009 = vmatmul.bf16.gmra.mxu1 %v1931_v61 }
 0x418   : > { %2014 = vmatmul.bf16.gmra.mxu1 %v1932_v44 }
 0x428   : > { %2019 = vmatmul.bf16.gmra.mxu1 %v1933_v23 }
 0x438   : > { %2024 = vmatmul.bf16.gmra.mxu1 %v1934_v38 }
 0x448   : > { %2029 = vmatmul.bf16.gmra.mxu1 %v1935_v1 }
 0x455   : > { %v1995_v56 = vpop.f32.mrf.mxu1 }
 0x456   : > { %v1996_v48 = vadd.f32 %v5356_v2, %v1995_v56 }
 0x458   : > { %v2035_v55 = vmul.f32 0.01, %v1996_v48 }
 0x45a   : > { %v5366_v40 = vmax.f32 %v1996_v48, %v2035_v55 }
 0x45c   : > { %v2091_v51 = vmul.f32 %v5366_v40, %v5366_v40 }
 0x45d   : > { %v1997_v52 = vpop.f32.mrf.mxu1 }
 0x45e   : > { %v1998_v12 = vadd.f32 %v5356_v2, %v1997_v52 }
 0x460   : > { %v2036_v3 = vmul.f32 0.01, %v1998_v12 }
 0x462   : > { %v5363_v54 = vmax.f32 %v1998_v12, %v2036_v3 }
 0x464   : > { %v2092_v24 = vmul.f32 %v5363_v54, %v5363_v54  ;;  %v2069_v43 = vadd.f32 %v5363_v54, %v5366_v40 }
 0x465   : > { %v2000_v45 = vpop.f32.mrf.mxu1 }
 0x466   : > { %v2001_v13 = vadd.f32 %v5356_v2, %v2000_v45  ;;  %v2107_v31 = vadd.f32 %v2092_v24, %v2091_v51 }
 0x468   : > { %v2037_v22 = vmul.f32 0.01, %v2001_v13 }
 0x46a   : > { %v5368_v20 = vmax.f32 %v2001_v13, %v2037_v22 }
 0x46c   : > { %v2093_v32 = vmul.f32 %v5368_v20, %v5368_v20  ;;  %v2070_v33 = vadd.f32 %v2069_v43, %v5368_v20 }
 0x46d   : > { %v2002_v25 = vpop.f32.mrf.mxu1 }
 0x46e   : > { %v2003_v57 = vadd.f32 %v5356_v2, %v2002_v25  ;;  %v2108_v39 = vadd.f32 %v2107_v31, %v2093_v32 }
 0x470   : > { %v2038_v36 = vmul.f32 0.01, %v2003_v57 }
 0x472   : > { %v5373_v41 = vmax.f32 %v2003_v57, %v2038_v36 }
 0x474   : > { %v2094_v14 = vmul.f32 %v5373_v41, %v5373_v41  ;;  %v2071_v29 = vadd.f32 %v2070_v33, %v5373_v41 }
 0x475   : > { %v2005_v7 = vpop.f32.mrf.mxu1 }
 0x476   : > { %v2006_v42 = vadd.f32 %v5356_v2, %v2005_v7  ;;  %v2109_v60 = vadd.f32 %v2108_v39, %v2094_v14 }
 0x478   : > { %v2039_v5 = vmul.f32 0.01, %v2006_v42 }
 0x47a   : > { %v5382_v30 = vmax.f32 %v2006_v42, %v2039_v5 }
 0x47c   : > { %v2095_v1 = vmul.f32 %v5382_v30, %v5382_v30  ;;  %v2072_v4 = vadd.f32 %v2071_v29, %v5382_v30 }
 0x47d   : > { %v2007_v34 = vpop.f32.mrf.mxu1 }
 0x47e   : > { %v2008_v63 = vadd.f32 %v5356_v2, %v2007_v34  ;;  %v2110_v56 = vadd.f32 %v2109_v60, %v2095_v1 }
 0x480   : > { %v2040_v44 = vmul.f32 0.01, %v2008_v63 }
 0x482   : > { %v5388_v46 = vmax.f32 %v2008_v63, %v2040_v44 }
 0x484   : > { %v2096_v62 = vmul.f32 %v5388_v46, %v5388_v46  ;;  %v2073_v52 = vadd.f32 %v2072_v4, %v5388_v46 }
 0x485   : > { %v2010_v6 = vpop.f32.mrf.mxu1 }
 0x486   : > { %v2011_v58 = vadd.f32 %v5356_v2, %v2010_v6  ;;  %v2111_v34 = vadd.f32 %v2110_v56, %v2096_v62 }
 0x488   : > { %v2041_v35 = vmul.f32 0.01, %v2011_v58 }
 0x48a   : > { %v5394_v37 = vmax.f32 %v2011_v58, %v2041_v35 }
 0x48c   : > { %v2097_v45 = vmul.f32 %v5394_v37, %v5394_v37  ;;  %v2074_v11 = vadd.f32 %v2073_v52, %v5394_v37 }
 0x48d   : > { %v2012_v26 = vpop.f32.mrf.mxu1 }
 0x48e   : > { %v2013_v17 = vadd.f32 %v5356_v2, %v2012_v26 }
 0x490   : > { %v2042_v23 = vmul.f32 0.01, %v2013_v17 }
 0x492   : > { %v5400_v21 = vmax.f32 %v2013_v17, %v2042_v23 }
 0x494   : > { %v2098_v6 = vmul.f32 %v5400_v21, %v5400_v21  ;;  %v2075_v18 = vadd.f32 %v2074_v11, %v5400_v21 }
 0x495   : > { %v2015_v49 = vpop.f32.mrf.mxu1 }
 0x496   : > { %v2016_v16 = vadd.f32 %v5356_v2, %v2015_v49 }
 0x498   : > { %v2043_v0 = vmul.f32 0.01, %v2016_v16 }
 0x49a   : > { %v5406_v25 = vmax.f32 %v2016_v16, %v2043_v0 }
 0x49c   : > { %v2076_v3 = vadd.f32 %v2075_v18, %v5406_v25 }
 0x49d   : > { %v2017_v28 = vpop.f32.mrf.mxu1 }
 0x49e   : > { %v2018_v38 = vadd.f32 %v5356_v2, %v2017_v28  ;;  %v2112_v28 = vadd.f32 %v2111_v34, %v2097_v45 }
 0x4a0   : > { %v2044_v50 = vmul.f32 0.01, %v2018_v38  ;;  %v2113_v13 = vadd.f32 %v2112_v28, %v2098_v6 }
 0x4a2   : > { %v5412_v26 = vmax.f32 %v2018_v38, %v2044_v50 }
 0x4a4   : > { %v2077_v36 = vadd.f32 %v2076_v3, %v5412_v26  ;;  %v3625_v3 = vld [vmem:[#allocation7 + $0x148] sm:$0xff] }
 0x4a5   : > { %v2020_v19 = vpop.f32.mrf.mxu1 }
 0x4a6   : > { %v2021_v53 = vadd.f32 %v5356_v2, %v2020_v19  ;;  %v2099_v19 = vmul.f32 %v5406_v25, %v5406_v25 }
 0x4a8   : > { %v2045_v9 = vmul.f32 0.01, %v2021_v53  ;;  %v2114_v42 = vadd.f32 %v2113_v13, %v2099_v19 }
 0x4aa   : > { %v5418_v12 = vmax.f32 %v2021_v53, %v2045_v9 }
 0x4ac   : > { %v2101_v63 = vmul.f32 %v5418_v12, %v5418_v12  ;;  %v2078_v44 = vadd.f32 %v2077_v36, %v5418_v12 }
 0x4ad   : > { %v2022_v10 = vpop.f32.mrf.mxu1 }
 0x4ae   : > { %v2023_v61 = vadd.f32 %v5356_v2, %v2022_v10  ;;  %v2100_v10 = vmul.f32 %v5412_v26, %v5412_v26 }
 0x4b0   : > { %v2046_v47 = vmul.f32 0.01, %v2023_v61  ;;  %v2115_v24 = vadd.f32 %v2114_v42, %v2100_v10 }
 0x4b2   : > { %v5423_v55 = vmax.f32 %v2023_v61, %v2046_v47  ;;  %v2116_v51 = vadd.f32 %v2115_v24, %v2101_v63  ;;  %v3655_v24 = vld [vmem:[#allocation8 + $0x38] sm:$0xff] }
 0x4b3   : > { %2986 = vmatpush.bf16.msra.mxu1 %v3655_v24 }
 0x4b4   : > { %v2102_v17 = vmul.f32 %v5423_v55, %v5423_v55  ;;  %v2079_v32 = vadd.f32 %v2078_v44, %v5423_v55  ;;  %v2067_v44 = vld [vmem:[#allocation11 + $0xc] sm:$0x1] }
 0x4b5   : > { %v2025_v8 = vpop.f32.mrf.mxu1 }
 0x4b6   : > { %v2026_v7 = vadd.f32 %v5356_v2, %v2025_v8  ;;  %v2117_v31 = vadd.f32 %v2116_v51, %v2102_v17 }
 0x4b8   : > { %v2047_v48 = vmul.f32 0.01, %v2026_v7 }
 0x4ba   : > { %v5429_v5 = vmax.f32 %v2026_v7, %v2047_v48  ;;  %v3626_v48 = vld [vmem:[#allocation7 + $0x150] sm:$0xff] }
 0x4bb   : > { %2260 = vmatpush.bf16.msra.mxu2 %v3626_v48  ;;  %v3652_v48 = vld [vmem:[#allocation8 + $0x20] sm:$0xff] }
 0x4bc   : > { %v2103_v43 = vmul.f32 %v5429_v5, %v5429_v5  ;;  %v2080_v33 = vadd.f32 %v2079_v32, %v5429_v5  ;;  %v2068_v32 = vld [vmem:[#allocation11 + $0xd] sm:$0x1] }
 0x4bd   : > { %v2027_v15 = vpop.f32.mrf.mxu1 }
 0x4be   : > { %v2028_v49 = vadd.f32 %v5356_v2, %v2027_v15  ;;  %v2118_v39 = vadd.f32 %v2117_v31, %v2103_v43 }
 0x4bf   : > { %2261 = vmatpush.bf16.msra.mxu2 %v3625_v3 }
 0x4c0   : > { %v2048_v22 = vmul.f32 0.01, %v2028_v49 }
 0x4c2   : > { %v5434_v8 = vmax.f32 %v2028_v49, %v2048_v22  ;;  %v3624_v22 = vld [vmem:[#allocation7 + $0x140] sm:$0xff] }
 0x4c3   : > { %2262 = vmatpush.bf16.msra.mxu2 %v3624_v22  ;;  %v3651_v22 = vld [vmem:[#allocation8 + $0x18] sm:$0xff] }
 0x4c4   : > { %v2104_v14 = vmul.f32 %v5434_v8, %v5434_v8  ;;  %v2081_v38 = vadd.f32 %v2080_v33, %v5434_v8 }
 0x4c5   : > { %v2030_v57 = vpop.f32.mrf.mxu1 }
 0x4c6   : > { %v2031_v59 = vadd.f32 %v5356_v2, %v2030_v57  ;;  %v2119_v0 = vadd.f32 %v2118_v39, %v2104_v14 }
 0x4c8   : > { %v2049_v58 = vmul.f32 0.01, %v2031_v59 }
 0x4ca   : > { %v5439_v35 = vmax.f32 %v2031_v59, %v2049_v58 }
 0x4cc   : > { %v2105_v29 = vmul.f32 %v5439_v35, %v5439_v35  ;;  %v2082_v53 = vadd.f32 %v2081_v38, %v5439_v35 }
 0x4cd   : > { %v2032_v16 = vpop.f32.mrf.mxu1 }
 0x4ce   : > { %v2033_v23 = vadd.f32 %v5356_v2, %v2032_v16  ;;  %v2120_v4 = vadd.f32 %v2119_v0, %v2105_v29 }
 0x4d0   : > { %v2050_v1 = vmul.f32 0.01, %v2033_v23 }
 0x4d2   : > { %v2066_v60 = vmax.f32 %v2033_v23, %v2050_v1 }
 0x4d4   : > { %v2083_v62 = vadd.f32 %v2082_v53, %v2066_v60  ;;  %v2106_v15 = vmul.f32 %v2066_v60, %v2066_v60 }
 0x4d6   : > { %v2084_v50 = vrot.slane %v2083_v62, 4  ;;  %v2121_v61 = vadd.f32 %v2120_v4, %v2106_v15 }
 0x4d8   : > { %v2085_v56 = vadd.f32 %v2084_v50, %v2083_v62  ;;  %v2122_v52 = vrot.slane %v2121_v61, 4 }
 0x4da   : > { %v2086_v45 = vrot.slane %v2085_v56, 2  ;;  %v2123_v2 = vadd.f32 %v2122_v52, %v2121_v61 }
 0x4dc   : > { %v2087_v9 = vadd.f32 %v2086_v45, %v2085_v56  ;;  %v2124_v7 = vrot.slane %v2123_v2, 2 }
 0x4de   : > { %v2088_v34 = vrot.slane %v2087_v9, 1  ;;  %v2125_v11 = vadd.f32 %v2124_v7, %v2123_v2 }
 0x4e0   : > { %v2089_v6 = vadd.f32 %v2088_v34, %v2087_v9  ;;  %v2126_v47 = vrot.slane %v2125_v11, 1 }
 0x4e2   : > { %v2090_v49 = vmul.f32 %v2089_v6, %v4534_v27  ;;  %v2127_v28 = vadd.f32 %v2126_v47, %v2125_v11 }
 0x4e4   : > { %v2128_v18 = vmul.f32 %v2127_v28, %v4534_v27  ;;  %v2129_v19 = vmul.f32 %v2090_v49, %v2090_v49 }
 0x4e6   : > { %v2130_v13 = vsub.f32 %v2128_v18, %v2129_v19 }
 0x4e8   : > { %v2131_v57 = vmax.f32 %v2130_v13, 0.0 }
 0x4ea   : > { %v2132_v10 = vadd.f32 1e-05, %v2131_v57 }
 0x4ec   : > { %3871 = vrsqrt.f32 %v2132_v10  ;;  %vm2139_vm14 = vweird.f32 %v2132_v10 }
 0x4f2   : > { %v3872_v59 = vpop.eup %3871 }
 0x4f3   : > { %v2134_v42 = vmul.f32 %v3872_v59, %v2132_v10  ;;  %vm2140_vm13 = vweird.f32 %v3872_v59  ;;  %v2504_v10 = vpop.f32.mrf.mxu0 }
 0x4f4   : > { %vm2141_vm15 = vmor %vm2139_vm14, %vm2140_vm13 }
 0x4f5   : > { %v2135_v36 = vmul.f32 %v3872_v59, %v2134_v42 }
 0x4f7   : > { %v2136_v63 = vmul.f32 0.5, %v2135_v36  ;;  %v5472_v36 = vld [vmem:[#allocation11 + $0x10] ss:$0 sm:$0xff] }
 0x4f9   : > { %v2137_v58 = vsub.f32 1.5, %v2136_v63  ;;  %v3649_v63 = vld [vmem:[#allocation8 + $0x8] sm:$0xff] }
 0x4fb   : > { %v2138_v27 = vmul.f32 %v3872_v59, %v2137_v58 }
 0x4fd   : > { %v2142_v17 = vsel %vm2141_vm15, %v3872_v59, %v2138_v27  ;;  %v5476_v27 = vpop.f32.mrf.mxu3 }
 0x4fe   : > { %v2143_v51 = vmul.f32 %v2142_v17, %v2067_v44 }
 0x500   : > { %v2144_v43 = vmul.f32 %v2143_v51, %v2090_v49  ;;  %v2146_v16 = vperm.slane %v2143_v51, 0 }
 0x502   : > { %v2145_v31 = vsub.f32 %v2068_v32, %v2144_v43  ;;  %v2162_v33 = vmul.f32 %v2146_v16, %v2066_v60  ;;  %v2147_v23 = vmul.f32 %v2146_v16, %v5366_v40  ;;  %v2148_v39 = vmul.f32 %v2146_v16, %v5363_v54  ;;  %v3654_v40 = vld [vmem:[#allocation8 + $0x30] sm:$0xff] }
 0x503   : > { %v2155_v1 = vmul.f32 %v2146_v16, %v5406_v25  ;;  %v2156_v0 = vmul.f32 %v2146_v16, %v5412_v26  ;;  %v2157_v53 = vmul.f32 %v2146_v16, %v5418_v12  ;;  %v2158_v4 = vmul.f32 %v2146_v16, %v5423_v55  ;;  %2987 = vmatpush.bf16.msra.mxu1 %v3654_v40 }
 0x504   : > { %v2163_v14 = vperm.slane %v2145_v31, 0  ;;  %v2159_v60 = vmul.f32 %v2146_v16, %v5429_v5  ;;  %v2160_v52 = vmul.f32 %v2146_v16, %v5434_v8  ;;  %v2161_v25 = vmul.f32 %v2146_v16, %v5439_v35  ;;  %v3653_v35 = vld [vmem:[#allocation8 + $0x28] sm:$0xff] }
 0x505   : > { %v2149_v7 = vmul.f32 %v2146_v16, %v5368_v20  ;;  %v2150_v34 = vmul.f32 %v2146_v16, %v5373_v41  ;;  %v2151_v47 = vmul.f32 %v2146_v16, %v5382_v30  ;;  %v2152_v49 = vmul.f32 %v2146_v16, %v5388_v46  ;;  %v2506_v30 = vpop.f32.mrf.mxu0  ;;  %v3650_v46 = vld [vmem:[#allocation8 + $0x10] sm:$0xff] }
 0x506   : > { %v2164_v38 = vadd.f32 %v2163_v14, %v2147_v23  ;;  %v2165_v29 = vadd.f32 %v2163_v14, %v2148_v39  ;;  %v2172_v15 = vadd.f32 %v2163_v14, %v2155_v1  ;;  %v2173_v50 = vadd.f32 %v2163_v14, %v2156_v0  ;;  %v5482_v23 = vpop.f32.mrf.mxu3  ;;  %v3648_v39 = vld [vmem:[#allocation8] sm:$0xff] }
 0x507   : > { %v2174_v61 = vadd.f32 %v2163_v14, %v2157_v53  ;;  %v2175_v56 = vadd.f32 %v2163_v14, %v2158_v4  ;;  %v2176_v45 = vadd.f32 %v2163_v14, %v2159_v60  ;;  %v5460_v2 = vadd.f32 %v2163_v14, %v2162_v33  ;;  %2988 = vmatpush.bf16.msra.mxu1 %v3653_v35 }
 0x508   : > { %v2197_v62 = vpack.c.bf16 %v2165_v29, %v2164_v38  ;;  %v2201_v54 = vpack.c.bf16 %v2173_v50, %v2172_v15  ;;  %v2177_v12 = vadd.f32 %v2163_v14, %v2160_v52  ;;  %v5462_v55 = vadd.f32 %v2163_v14, %v2161_v25 }
 0x509   : > { %v2202_v26 = vpack.c.bf16 %v2175_v56, %v2174_v61  ;;  %v2166_v11 = vadd.f32 %v2163_v14, %v2149_v7  ;;  %v2167_v8 = vadd.f32 %v2163_v14, %v2150_v34  ;;  %v2168_v28 = vadd.f32 %v2163_v14, %v2151_v47  ;;  %v5508_v47 = vld [vmem:[#allocation11 + $0xf] ss:$0 sm:$0xff] }
 0x50a   : > { %2263 = vmatmul.bf16.vlgmr.msra.gmra.mxu2 %v2197_v62  ;;  %v2203_v9 = vpack.c.bf16 %v2177_v12, %v2176_v45  ;;  %v2204_v5 = vpack.c.bf16 %v5460_v2, %v5462_v55  ;;  %v2169_v18 = vadd.f32 %v2163_v14, %v2152_v49  ;;  %v2153_v20 = vmul.f32 %v2146_v16, %v5394_v37 }
 0x50b   : > { %v2198_v6 = vpack.c.bf16 %v2167_v8, %v2166_v11  ;;  %2989 = vmatpush.bf16.msra.mxu1 %v3652_v48  ;;  %v2154_v41 = vmul.f32 %v2146_v16, %v5400_v21  ;;  %v2505_v37 = vadd.f32 %v5472_v36, %v2504_v10  ;;  %v2507_v24 = vadd.f32 %v5472_v36, %v2506_v30 }
 0x50c   : > { %v2199_v19 = vpack.c.bf16 %v2169_v18, %v2168_v28  ;;  %v2170_v13 = vadd.f32 %v2163_v14, %v2153_v20  ;;  %v5512_v18 = vld [vmem:[#allocation11 + $0xe] ss:$0 sm:$0xff] }
 0x50d   : > { %v2171_v3 = vadd.f32 %v2163_v14, %v2154_v41  ;;  %v2509_v59 = vpop.f32.mrf.mxu0  ;;  %v3522_v58 = vmul.f32 -1.442695, %v2505_v37  ;;  %v3523_v44 = vmul.f32 -1.442695, %v2507_v24 }
 0x50e   : > { %v2510_v32 = vadd.f32 %v5472_v36, %v2509_v59  ;;  %v5488_v50 = vpop.f32.mrf.mxu3 }
 0x50f   : > { %v2200_v57 = vpack.c.bf16 %v2171_v3, %v2170_v13  ;;  %2990 = vmatpush.bf16.msra.mxu1 %v3651_v22  ;;  %3873 = vpow2.f32 %v3522_v58 }
 0x510   : > { %3875 = vpow2.f32 %v3523_v44  ;;  %v3524_v31 = vmul.f32 -1.442695, %v2510_v32 }
 0x513   : > { %2991 = vmatpush.bf16.msra.mxu1 %v3650_v46  ;;  %v2389_v46 = vadd.f32 %v5508_v47, %v5476_v27 }
 0x515   : > { %v2511_v42 = vpop.f32.mrf.mxu0  ;;  %v3874_v51 = vpop.eup %3873 }
 0x516   : > { %v2592_v43 = vadd.f32 1.0, %v3874_v51  ;;  %v3876_v16 = vpop.eup %3875  ;;  %v2512_v33 = vadd.f32 %v5472_v36, %v2511_v42 }
 0x517   : > { %2992 = vmatpush.bf16.msra.mxu1 %v3649_v63  ;;  %v5480_v14 = vadd.f32 1.0, %v3876_v16 }
 0x518   : > { %3877 = vrcp.f32 %v2592_v43  ;;  %v3525_v29 = vmul.f32 -1.442695, %v2512_v33  ;;  %v2619_v7 = vand.u32 2147483648, %v2592_v43  ;;  %vm2613_vm1 = vweird.f32 %v2592_v43 }
 0x519   : > { %3879 = vpow2.f32 %v3524_v31  ;;  %v2617_v11 = vand.u32 2147483647, %v2592_v43  ;;  %v2634_v20 = vand.u32 2147483648, %v5480_v14  ;;  %vm2628_vm5 = vweird.f32 %v5480_v14 }
 0x51a   : > { %2268 = vmatmul.bf16.gmra.mxu2 %v2198_v6  ;;  %3881 = vrcp.f32 %v5480_v14  ;;  %v2620_v48 = vor.u32 1.1754944e-38, %v2619_v7  ;;  %v2632_v3 = vand.u32 2147483647, %v5480_v14 }
 0x51b   : > { %2993 = vmatpush.bf16.msra.mxu1 %v3648_v39  ;;  %3883 = vpow2.f32 %v3525_v29  ;;  %vm2618_vm4 = vcmp.eq.f32.partialorder %v2617_v11, 8.507059e+37  ;;  %v2635_v37 = vor.u32 1.1754944e-38, %v2634_v20  ;;  %v2394_v20 = vadd.f32 %v5508_v47, %v5488_v50 }
 0x51c   : > { %vm2633_vm7 = vcmp.eq.f32.partialorder %v2632_v3, 8.507059e+37 }
 0x51d   : > { %v2514_v21 = vpop.f32.mrf.mxu0 }
 0x51e   : > { %v3878_v1 = vpop.eup %3877  ;;  %v2515_v62 = vadd.f32 %v5472_v36, %v2514_v21 }
 0x51f   : > { %v3880_v0 = vpop.eup %3879  ;;  %v2609_v53 = vmul.f32 %v3878_v1, %v2592_v43  ;;  %vm2614_vm0 = vweird.f32 %v3878_v1  ;;  %v2391_v43 = vadd.f32 %v5508_v47, %v5482_v23 }
 0x520   : > { %v3882_v4 = vpop.eup %3881  ;;  %v5486_v15 = vadd.f32 1.0, %v3880_v0  ;;  %vm5502_vm2 = vmor %vm2613_vm1, %vm2614_vm0 }
 0x521   : > { %v3884_v61 = vpop.eup %3883  ;;  %v2610_v56 = vsub.f32 1.0, %v2609_v53  ;;  %v2624_v40 = vmul.f32 %v3882_v4, %v5480_v14  ;;  %vm2629_vm3 = vweird.f32 %v3882_v4 }
 0x522   : > { %3885 = vrcp.f32 %v5486_v15  ;;  %v5493_v45 = vadd.f32 1.0, %v3884_v61  ;;  %vm2630_vm6 = vmor %vm2628_vm5, %vm2629_vm3  ;;  %vm2643_vm9 = vweird.f32 %v5486_v15 }
 0x523   : > { %v2611_v25 = vmul.f32 %v3878_v1, %v2610_v56 }
 0x524   : > { %vm2658_vm13 = vweird.f32 %v5493_v45 }
 0x525   : > { %v2516_v17 = vpop.f32.mrf.mxu0  ;;  %v2612_v55 = vadd.f32 %v3878_v1, %v2611_v25 }
 0x526   : > { %v2517_v52 = vadd.f32 %v5472_v36, %v2516_v17 }
 0x527   : > { %v2616_v49 = vsel %vm5502_vm2, %v3878_v1, %v2612_v55 }
 0x528   : > { %v3527_v2 = vmul.f32 -1.442695, %v2517_v52  ;;  %v5496_v12 = vpop.eup %3885  ;;  %v2621_v10 = vsel %vm2618_vm4, %v2620_v48, %v2616_v49 }
 0x529   : > { %v2639_v35 = vmul.f32 %v5496_v12, %v5486_v15  ;;  %v2848_v58 = vmul.f32 %v2621_v10, %v2389_v46  ;;  %vm2644_vm8 = vweird.f32 %v5496_v12 }
 0x52a   : > { %2273 = vmatmul.bf16.gmra.mxu2 %v2199_v19  ;;  %vm5546_vm10 = vmor %vm2643_vm9, %vm2644_vm8 }
 0x52b   : > { %v2640_v22 = vsub.f32 1.0, %v2639_v35 }
 0x52d   : > { %v2519_v38 = vpop.f32.mrf.mxu0  ;;  %v2641_v51 = vmul.f32 %v5496_v12, %v2640_v22 }
 0x52e   : > { %v2520_v41 = vadd.f32 %v5472_v36, %v2519_v38 }
 0x52f   : > { %v2642_v29 = vadd.f32 %v5496_v12, %v2641_v51 }
 0x530   : > { %v3528_v21 = vmul.f32 -1.442695, %v2520_v41 }
 0x535   : > { %v2521_v60 = vpop.f32.mrf.mxu0 }
 0x536   : > { %v2522_v44 = vadd.f32 %v5472_v36, %v2521_v60 }
 0x538   : > { %v3529_v39 = vmul.f32 -1.442695, %v2522_v44 }
 0x53a   : > { %2278 = vmatmul.bf16.gmra.mxu2 %v2200_v57 }
 0x53d   : > { %v5500_v34 = vpop.f32.mrf.mxu0 }
 0x545   : > { %v2526_v32 = vpop.f32.mrf.mxu0 }
 0x546   : > { %v2527_v22 = vadd.f32 %v5472_v36, %v2526_v32 }
 0x54a   : > { %2283 = vmatmul.bf16.gmra.mxu2 %v2201_v54  ;;  %v3526_v54 = vmul.f32 -1.442695, %v2515_v62  ;;  %v2649_v62 = vand.u32 2147483648, %v5486_v15 }
 0x54c   : > { %3887 = vpow2.f32 %v3526_v54  ;;  %v2650_v55 = vor.u32 1.1754944e-38, %v2649_v62 }
 0x54d   : > { %3889 = vrcp.f32 %v5493_v45  ;;  %v2529_v7 = vpop.f32.mrf.mxu0 }
 0x54e   : > { %3891 = vpow2.f32 %v3527_v2 }
 0x552   : > { %v3888_v8 = vpop.eup %3887 }
 0x553   : > { %v5514_v19 = vpop.eup %3889  ;;  %v5520_v57 = vadd.f32 1.0, %v3888_v8  ;;  %v2662_v8 = vand.u32 2147483647, %v5493_v45 }
 0x554   : > { %v3892_v30 = vpop.eup %3891  ;;  %v2654_v42 = vmul.f32 %v5514_v19, %v5493_v45  ;;  %vm2659_vm11 = vweird.f32 %v5514_v19 }
 0x555   : > { %3893 = vrcp.f32 %v5520_v57  ;;  %v5532_v27 = vadd.f32 1.0, %v3892_v30  ;;  %vm2660_vm14 = vmor %vm2658_vm13, %vm2659_vm11  ;;  %vm2663_vm15 = vcmp.eq.f32.partialorder %v2662_v8, 8.507059e+37  ;;  %v2531_v51 = vpop.f32.mrf.mxu0  ;;  %vm2673_vm1 = vweird.f32 %v5520_v57 }
 0x556   : > { %v2655_v16 = vsub.f32 1.0, %v2654_v42  ;;  %3895 = vpow2.f32 %v3528_v21 }
 0x557   : > { %3897 = vrcp.f32 %v5532_v27  ;;  %v2694_v60 = vand.u32 2147483648, %v5532_v27  ;;  %vm2688_vm5 = vweird.f32 %v5532_v27 }
 0x558   : > { %v2656_v0 = vmul.f32 %v5514_v19, %v2655_v16  ;;  %3899 = vpow2.f32 %v3529_v39 }
 0x559   : > { %v2695_v8 = vor.u32 1.1754944e-38, %v2694_v60 }
 0x55a   : > { %2288 = vmatmul.bf16.gmra.mxu2 %v2202_v26  ;;  %v2625_v26 = vsub.f32 1.0, %v2624_v40  ;;  %v2646_v40 = vsel %vm5546_vm10, %v5496_v12, %v2642_v29  ;;  %v2657_v52 = vadd.f32 %v5514_v19, %v2656_v0  ;;  %v2525_v12 = vadd.f32 %v5472_v36, %v5500_v34 }
 0x55b   : > { %v5540_v1 = vpop.eup %3893 }
 0x55c   : > { %v3896_v56 = vpop.eup %3895  ;;  %v2669_v54 = vmul.f32 %v5540_v1, %v5520_v57  ;;  %v2661_v34 = vsel %vm2660_vm14, %v5514_v19, %v2657_v52  ;;  %v3530_v3 = vmul.f32 -1.442695, %v2525_v12  ;;  %vm2674_vm0 = vweird.f32 %v5540_v1 }
 0x55d   : > { %v5559_v2 = vpop.eup %3897  ;;  %v5566_v6 = vadd.f32 1.0, %v3896_v56  ;;  %vm5595_vm2 = vmor %vm2673_vm1, %vm2674_vm0 }
 0x55e   : > { %v3900_v48 = vpop.eup %3899  ;;  %v2684_v41 = vmul.f32 %v5559_v2, %v5532_v27  ;;  %vm2689_vm3 = vweird.f32 %v5559_v2 }
 0x55f   : > { %3901 = vrcp.f32 %v5566_v6  ;;  %v5579_v50 = vadd.f32 1.0, %v3900_v48  ;;  %vm2703_vm9 = vweird.f32 %v5566_v6 }
 0x560   : > { %3903 = vpow2.f32 %v3530_v3 }
 0x561   : > { %3905 = vrcp.f32 %v5579_v50  ;;  %vm2718_vm13 = vweird.f32 %v5579_v50 }
 0x565   : > { %v5589_v32 = vpop.eup %3901 }
 0x566   : > { %v2699_v0 = vmul.f32 %v5589_v32, %v5566_v6  ;;  %vm2704_vm8 = vweird.f32 %v5589_v32 }
 0x567   : > { %vm5645_vm10 = vmor %vm2703_vm9, %vm2704_vm8 }
 0x56a   : > { %2293 = vmatmul.bf16.gmra.mxu2 %v2203_v9  ;;  %v2626_v9 = vmul.f32 %v3882_v4, %v2625_v26 }
 0x56c   : > { %v2627_v28 = vadd.f32 %v3882_v4, %v2626_v9  ;;  %v2664_v9 = vand.u32 2147483648, %v5493_v45 }
 0x56e   : > { %v2631_v59 = vsel %vm2630_vm6, %v3882_v4, %v2627_v28  ;;  %v2647_v4 = vand.u32 2147483647, %v5486_v15  ;;  %v2670_v28 = vsub.f32 1.0, %v2669_v54  ;;  %v2665_v45 = vor.u32 1.1754944e-38, %v2664_v9  ;;  %vm5614_vm6 = vmor %vm2688_vm5, %vm2689_vm3 }
 0x56f   : > { %v2636_v17 = vsel %vm2633_vm7, %v2635_v37, %v2631_v59  ;;  %v2685_v59 = vsub.f32 1.0, %v2684_v41 }
 0x570   : > { %v2849_v14 = vmul.f32 %v2636_v17, %v2391_v43  ;;  %vm2648_vm12 = vcmp.eq.f32.partialorder %v2647_v4, 8.507059e+37  ;;  %v2666_v30 = vsel %vm2663_vm15, %v2665_v45, %v2661_v34  ;;  %v2671_v46 = vmul.f32 %v5540_v1, %v2670_v28 }
 0x571   : > { %v2651_v49 = vsel %vm2648_vm12, %v2650_v55, %v2646_v40 }
 0x572   : > { %v2850_v10 = vmul.f32 %v2651_v49, %v2394_v20  ;;  %v2672_v17 = vadd.f32 %v5540_v1, %v2671_v46  ;;  %v2534_v49 = vpop.f32.mrf.mxu0 }
 0x574   : > { %v2676_v29 = vsel %vm5595_vm2, %v5540_v1, %v2672_v17  ;;  %v2692_v1 = vand.u32 2147483647, %v5532_v27 }
 0x576   : > { %vm2693_vm7 = vcmp.eq.f32.partialorder %v2692_v1, 8.507059e+37 }
 0x57a   : > { %2298 = vmatmul.bf16.gmra.mxu2 %v2204_v5  ;;  %v5498_v5 = vpop.f32.mrf.mxu3 }
 0x57b   : > { %v2396_v19 = vadd.f32 %v5508_v47, %v5498_v5  ;;  %v2686_v5 = vmul.f32 %v5559_v2, %v2685_v59 }
 0x57d   : > { %v2851_v37 = vmul.f32 %v2666_v30, %v2396_v19 }
 0x582   : > { %v5528_v24 = vpop.f32.mrf.mxu3 }
 0x583   : > { %v2399_v9 = vadd.f32 %v5508_v47, %v5528_v24  ;;  %v2532_v24 = vadd.f32 %v5472_v36, %v2531_v51 }
 0x58a   : > { %v5557_v25 = vpop.f32.mrf.mxu3 }
 0x58b   : > { %v2401_v34 = vadd.f32 %v5508_v47, %v5557_v25 }
 0x58d   : > { %v2264_v13 = vpop.f32.mrf.mxu2 }
 0x58e   : > { %v2265_v63 = vadd.f32 %v5512_v18, %v2264_v13 }
 0x590   : > { %v2864_v31 = vadd.f32 %v2848_v58, %v2265_v63  ;;  %v3531_v58 = vmul.f32 -1.442695, %v2527_v22 }
 0x592   : > { %v2880_v53 = vmul.f32 0.01, %v2864_v31  ;;  %v5583_v21 = vpop.f32.mrf.mxu3  ;;  %3907 = vpow2.f32 %v3531_v58 }
 0x593   : > { %v2404_v60 = vadd.f32 %v5508_v47, %v5583_v21 }
 0x594   : > { %v2896_v15 = vmax.f32 %v2864_v31, %v2880_v53  ;;  %v2677_v31 = vand.u32 2147483647, %v5520_v57  ;;  %v2687_v53 = vadd.f32 %v5559_v2, %v2686_v5 }
 0x595   : > { %v2266_v33 = vpop.f32.mrf.mxu2 }
 0x596   : > { %v2267_v38 = vadd.f32 %v5512_v18, %v2266_v33  ;;  %v2679_v33 = vand.u32 2147483648, %v5520_v57  ;;  %vm2678_vm4 = vcmp.eq.f32.partialorder %v2677_v31, 8.507059e+37  ;;  %v2691_v12 = vsel %vm5614_vm6, %v5559_v2, %v2687_v53 }
 0x597   : > { %v2696_v48 = vsel %vm2693_vm7, %v2695_v8, %v2691_v12 }
 0x598   : > { %v2865_v23 = vadd.f32 %v2849_v14, %v2267_v38  ;;  %v3904_v38 = vpop.eup %3903  ;;  %v2680_v62 = vor.u32 1.1754944e-38, %v2679_v33  ;;  %v2853_v3 = vmul.f32 %v2696_v48, %v2401_v34 }
 0x599   : > { %v5606_v4 = vpop.eup %3905  ;;  %v5612_v40 = vadd.f32 1.0, %v3904_v38  ;;  %v2535_v38 = vadd.f32 %v5472_v36, %v2534_v49 }
 0x59a   : > { %v2881_v61 = vmul.f32 0.01, %v2865_v23  ;;  %v2681_v52 = vsel %vm2678_vm4, %v2680_v62, %v2676_v29  ;;  %v3908_v55 = vpop.eup %3907  ;;  %v2714_v27 = vmul.f32 %v5606_v4, %v5579_v50  ;;  %vm2719_vm11 = vweird.f32 %v5606_v4 }
 0x59b   : > { %v2852_v28 = vmul.f32 %v2681_v52, %v2399_v9  ;;  %3909 = vrcp.f32 %v5612_v40  ;;  %v5631_v20 = vadd.f32 1.0, %v3908_v55  ;;  %vm2720_vm14 = vmor %vm2718_vm13, %vm2719_vm11  ;;  %vm2733_vm1 = vweird.f32 %v5612_v40 }
 0x59c   : > { %v2897_v26 = vmax.f32 %v2865_v23, %v2881_v61  ;;  %v2530_v61 = vadd.f32 %v5472_v36, %v2529_v7  ;;  %v5623_v7 = vpop.f32.mrf.mxu3  ;;  %v2715_v41 = vsub.f32 1.0, %v2714_v27 }
 0x59d   : > { %v2269_v11 = vpop.f32.mrf.mxu2  ;;  %vm2748_vm5 = vweird.f32 %v5631_v20 }
 0x59e   : > { %v2928_v35 = vpack.c.bf16 %v2897_v26, %v2896_v15  ;;  %v2270_v13 = vadd.f32 %v5512_v18, %v2269_v11  ;;  %v2700_v26 = vsub.f32 1.0, %v2699_v0  ;;  %v2716_v19 = vmul.f32 %v5606_v4, %v2715_v41 }
 0x59f   : > { %v2737_v41 = vand.u32 2147483647, %v5612_v40 }
 0x5a0   : > { %2994 = vmatmul.bf16.vlgmr.msra.gmra.mxu1 %v2928_v35  ;;  %v2866_v42 = vadd.f32 %v2850_v10, %v2270_v13  ;;  %v3532_v35 = vmul.f32 -1.442695, %v2530_v61  ;;  %v2701_v2 = vmul.f32 %v5589_v32, %v2700_v26  ;;  %v3533_v10 = vmul.f32 -1.442695, %v2532_v24 }
 0x5a1   : > { %v5639_v46 = vpop.eup %3909  ;;  %vm2738_vm4 = vcmp.eq.f32.partialorder %v2737_v41, 8.507059e+37 }
 0x5a2   : > { %v2882_v43 = vmul.f32 0.01, %v2866_v42  ;;  %3911 = vpow2.f32 %v3532_v35  ;;  %v2702_v30 = vadd.f32 %v5589_v32, %v2701_v2  ;;  %v2729_v5 = vmul.f32 %v5639_v46, %v5612_v40 }
 0x5a3   : > { %3913 = vrcp.f32 %v5631_v20  ;;  %vm2734_vm0 = vweird.f32 %v5639_v46 }
 0x5a4   : > { %v2898_v23 = vmax.f32 %v2866_v42, %v2882_v43  ;;  %v2707_v42 = vand.u32 2147483647, %v5566_v6  ;;  %v5649_v58 = vpop.f32.mrf.mxu3  ;;  %3915 = vpow2.f32 %v3533_v10  ;;  %v2706_v51 = vsel %vm5645_vm10, %v5589_v32, %v2702_v30  ;;  %v2536_v43 = vpop.f32.mrf.mxu0  ;;  %vm5689_vm2 = vmor %vm2733_vm1, %vm2734_vm0 }
 0x5a5   : > { %v2271_v63 = vpop.f32.mrf.mxu2  ;;  %v2722_v32 = vand.u32 2147483647, %v5579_v50  ;;  %v2537_v15 = vadd.f32 %v5472_v36, %v2536_v43 }
 0x5a6   : > { %v2272_v44 = vadd.f32 %v5512_v18, %v2271_v63  ;;  %v2709_v63 = vand.u32 2147483648, %v5566_v6  ;;  %vm2708_vm12 = vcmp.eq.f32.partialorder %v2707_v42, 8.507059e+37 }
 0x5a7   : > { %vm2723_vm15 = vcmp.eq.f32.partialorder %v2722_v32, 8.507059e+37  ;;  %v3535_v49 = vmul.f32 -1.442695, %v2537_v15 }
 0x5a8   : > { %v2867_v16 = vadd.f32 %v2851_v37, %v2272_v44  ;;  %v3912_v17 = vpop.eup %3911  ;;  %v2710_v14 = vor.u32 1.1754944e-38, %v2709_v63  ;;  %v2754_v63 = vand.u32 2147483648, %v5631_v20 }
 0x5a9   : > { %v5658_v33 = vpop.eup %3913  ;;  %v5664_v0 = vadd.f32 1.0, %v3912_v17 }
 0x5aa   : > { %v2883_v39 = vmul.f32 0.01, %v2867_v16  ;;  %v3916_v62 = vpop.eup %3915  ;;  %vm2749_vm3 = vweird.f32 %v5658_v33  ;;  %v2755_v32 = vor.u32 1.1754944e-38, %v2754_v63 }
 0x5ab   : > { %3917 = vrcp.f32 %v5664_v0  ;;  %v5675_v21 = vadd.f32 1.0, %v3916_v62  ;;  %vm5708_vm6 = vmor %vm2748_vm5, %vm2749_vm3  ;;  %vm2763_vm9 = vweird.f32 %v5664_v0 }
 0x5ac   : > { %v2899_v57 = vmax.f32 %v2867_v16, %v2883_v39  ;;  %v2717_v16 = vadd.f32 %v5606_v4, %v2716_v19  ;;  %v2724_v39 = vand.u32 2147483648, %v5579_v50  ;;  %v3534_v50 = vmul.f32 -1.442695, %v2535_v38  ;;  %v2410_v9 = vpop.f32.mrf.mxu3 }
 0x5ad   : > { %v2274_v56 = vpop.f32.mrf.mxu2  ;;  %v2784_v41 = vand.u32 2147483648, %v5675_v21  ;;  %vm2778_vm13 = vweird.f32 %v5675_v21 }
 0x5ae   : > { %v2929_v54 = vpack.c.bf16 %v2899_v57, %v2898_v23  ;;  %v2275_v11 = vadd.f32 %v5512_v18, %v2274_v56  ;;  %v2711_v23 = vsel %vm2708_vm12, %v2710_v14, %v2706_v51  ;;  %v2730_v57 = vsub.f32 1.0, %v2729_v5 }
 0x5af   : > { %v2721_v61 = vsel %vm2720_vm14, %v5606_v4, %v2717_v16  ;;  %v2744_v56 = vmul.f32 %v5658_v33, %v5631_v20  ;;  %v2854_v52 = vmul.f32 %v2711_v23, %v2404_v60  ;;  %v2406_v4 = vadd.f32 %v5508_v47, %v5623_v7 }
 0x5b0   : > { %2999 = vmatmul.bf16.gmra.mxu1 %v2929_v54  ;;  %v2868_v13 = vadd.f32 %v2852_v28, %v2275_v11  ;;  %v2725_v54 = vor.u32 1.1754944e-38, %v2724_v39  ;;  %v2731_v55 = vmul.f32 %v5639_v46, %v2730_v57  ;;  %3919 = vpow2.f32 %v3534_v50  ;;  %v2539_v11 = vpop.f32.mrf.mxu0 }
 0x5b1   : > { %v2745_v12 = vsub.f32 1.0, %v2744_v56  ;;  %3921 = vrcp.f32 %v5675_v21  ;;  %v5683_v48 = vpop.eup %3917  ;;  %v2540_v37 = vadd.f32 %v5472_v36, %v2539_v11  ;;  %v2409_v39 = vadd.f32 %v5508_v47, %v5649_v58 }
 0x5b2   : > { %v2884_v59 = vmul.f32 0.01, %v2868_v13  ;;  %v2726_v26 = vsel %vm2723_vm15, %v2725_v54, %v2721_v61  ;;  %v2732_v24 = vadd.f32 %v5639_v46, %v2731_v55  ;;  %3923 = vpow2.f32 %v3535_v49 }
 0x5b3   : > { %v2855_v35 = vmul.f32 %v2726_v26, %v2406_v4  ;;  %v2746_v7 = vmul.f32 %v5658_v33, %v2745_v12  ;;  %v2759_v30 = vmul.f32 %v5683_v48, %v5664_v0  ;;  %vm2764_vm8 = vweird.f32 %v5683_v48 }
 0x5b4   : > { %v2900_v6 = vmax.f32 %v2868_v13, %v2884_v59  ;;  %v2739_v13 = vand.u32 2147483648, %v5612_v40  ;;  %v2413_v16 = vpop.f32.mrf.mxu3  ;;  %v2769_v12 = vand.u32 2147483648, %v5664_v0  ;;  %vm5736_vm10 = vmor %vm2763_vm9, %vm2764_vm8  ;;  %v2785_v63 = vor.u32 1.1754944e-38, %v2784_v41 }
 0x5b5   : > { %v2276_v45 = vpop.f32.mrf.mxu2  ;;  %v2747_v19 = vadd.f32 %v5658_v33, %v2746_v7 }
 0x5b6   : > { %v2277_v22 = vadd.f32 %v5512_v18, %v2276_v45  ;;  %v3920_v10 = vpop.eup %3919  ;;  %v2740_v42 = vor.u32 1.1754944e-38, %v2739_v13 }
 0x5b7   : > { %v5706_v17 = vadd.f32 1.0, %v3920_v10  ;;  %v2751_v38 = vsel %vm5708_vm6, %v5658_v33, %v2747_v19  ;;  %v2411_v33 = vadd.f32 %v5508_v47, %v2410_v9  ;;  %v2767_v9 = vand.u32 2147483647, %v5664_v0 }
 0x5b8   : > { %v2869_v25 = vadd.f32 %v2853_v3, %v2277_v22  ;;  %v2736_v22 = vsel %vm5689_vm2, %v5639_v46, %v2732_v24  ;;  %v2752_v46 = vand.u32 2147483647, %v5631_v20  ;;  %v2414_v19 = vadd.f32 %v5508_v47, %v2413_v16 }
 0x5b9   : > { %v2741_v5 = vsel %vm2738_vm4, %v2740_v42, %v2736_v22  ;;  %3925 = vrcp.f32 %v5706_v17  ;;  %vm2768_vm12 = vcmp.eq.f32.partialorder %v2767_v9, 8.507059e+37  ;;  %vm2793_vm1 = vweird.f32 %v5706_v17 }
 0x5ba   : > { %v2885_v44 = vmul.f32 0.01, %v2869_v25  ;;  %v2856_v23 = vmul.f32 %v2741_v5, %v2409_v39  ;;  %vm2753_vm7 = vcmp.eq.f32.partialorder %v2752_v46, 8.507059e+37 }
 0x5bb   : > { %v2756_v62 = vsel %vm2753_vm7, %v2755_v32, %v2751_v38  ;;  %v2799_v32 = vand.u32 2147483648, %v5706_v17 }
 0x5bc   : > { %v2901_v31 = vmax.f32 %v2869_v25, %v2885_v44  ;;  %v5700_v25 = vpop.eup %3921  ;;  %v2857_v54 = vmul.f32 %v2756_v62, %v2411_v33 }
 0x5bd   : > { %v2279_v29 = vpop.f32.mrf.mxu2  ;;  %v3924_v14 = vpop.eup %3923  ;;  %v2774_v20 = vmul.f32 %v5700_v25, %v5675_v21  ;;  %vm2779_vm11 = vweird.f32 %v5700_v25 }
 0x5be   : > { %v2930_v53 = vpack.c.bf16 %v2901_v31, %v2900_v6  ;;  %v2280_v1 = vadd.f32 %v5512_v18, %v2279_v29  ;;  %v2760_v6 = vsub.f32 1.0, %v2759_v30  ;;  %v2541_v31 = vpop.f32.mrf.mxu0  ;;  %v5723_v60 = vadd.f32 1.0, %v3924_v14  ;;  %vm2780_vm14 = vmor %vm2778_vm13, %vm2779_vm11 }
 0x5bf   : > { %v2542_v57 = vadd.f32 %v5472_v36, %v2541_v31  ;;  %v2775_v61 = vsub.f32 1.0, %v2774_v20  ;;  %v5730_v36 = vpop.eup %3925 }
 0x5c0   : > { %3004 = vmatmul.bf16.gmra.mxu1 %v2930_v53  ;;  %v2870_v27 = vadd.f32 %v2854_v52, %v2280_v1  ;;  %v3536_v53 = vmul.f32 -1.442695, %v2540_v37  ;;  %v2761_v58 = vmul.f32 %v5683_v48, %v2760_v6  ;;  %vm2794_vm0 = vweird.f32 %v5730_v36 }
 0x5c1   : > { %v3537_v50 = vmul.f32 -1.442695, %v2542_v57  ;;  %v2776_v26 = vmul.f32 %v5700_v25, %v2775_v61  ;;  %vm5773_vm2 = vmor %vm2793_vm1, %vm2794_vm0  ;;  %vm2808_vm5 = vweird.f32 %v5723_v60 }
 0x5c2   : > { %v2886_v2 = vmul.f32 0.01, %v2870_v27  ;;  %3927 = vpow2.f32 %v3536_v53  ;;  %v2762_v15 = vadd.f32 %v5683_v48, %v2761_v58 }
 0x5c3   : > { %3929 = vrcp.f32 %v5723_v60  ;;  %v2777_v24 = vadd.f32 %v5700_v25, %v2776_v26 }
 0x5c4   : > { %v2902_v59 = vmax.f32 %v2870_v27, %v2886_v2  ;;  %v2415_v27 = vpop.f32.mrf.mxu3  ;;  %3931 = vpow2.f32 %v3537_v50  ;;  %v2766_v49 = vsel %vm5736_vm10, %v5683_v48, %v2762_v15  ;;  %v2782_v48 = vand.u32 2147483647, %v5675_v21 }
 0x5c5   : > { %v2281_v8 = vpop.f32.mrf.mxu2  ;;  %v2416_v5 = vadd.f32 %v5508_v47, %v2415_v27  ;;  %v2812_v15 = vand.u32 2147483647, %v5723_v60 }
 0x5c6   : > { %v2282_v28 = vadd.f32 %v5512_v18, %v2281_v8  ;;  %vm2783_vm15 = vcmp.eq.f32.partialorder %v2782_v48, 8.507059e+37 }
 0x5c7   : > { %vm2813_vm7 = vcmp.eq.f32.partialorder %v2812_v15, 8.507059e+37 }
 0x5c8   : > { %v2871_v34 = vadd.f32 %v2855_v35, %v2282_v28  ;;  %v3928_v35 = vpop.eup %3927  ;;  %v2789_v28 = vmul.f32 %v5730_v36, %v5706_v17 }
 0x5c9   : > { %v5747_v2 = vpop.eup %3929  ;;  %v5752_v45 = vadd.f32 1.0, %v3928_v35 }
 0x5ca   : > { %v2887_v3 = vmul.f32 0.01, %v2871_v34  ;;  %v2790_v22 = vsub.f32 1.0, %v2789_v28  ;;  %v3932_v30 = vpop.eup %3931  ;;  %vm2809_vm3 = vweird.f32 %v5747_v2 }
 0x5cb   : > { %3933 = vrcp.f32 %v5752_v45  ;;  %vm2810_vm6 = vmor %vm2808_vm5, %vm2809_vm3  ;;  %vm2823_vm9 = vweird.f32 %v5752_v45 }
 0x5cc   : > { %v2903_v40 = vmax.f32 %v2871_v34, %v2887_v3  ;;  %v2770_v34 = vor.u32 1.1754944e-38, %v2769_v12  ;;  %v2791_v46 = vmul.f32 %v5730_v36, %v2790_v22 }
 0x5cd   : > { %v2284_v44 = vpop.f32.mrf.mxu2 }
 0x5ce   : > { %v2931_v51 = vpack.c.bf16 %v2903_v40, %v2902_v59  ;;  %v2285_v29 = vadd.f32 %v5512_v18, %v2284_v44  ;;  %v2771_v10 = vsel %vm2768_vm12, %v2770_v34, %v2766_v49  ;;  %v2781_v59 = vsel %vm2780_vm14, %v5700_v25, %v2777_v24  ;;  %v2418_v44 = vpop.f32.mrf.mxu3 }
 0x5cf   : > { %v2804_v40 = vmul.f32 %v5747_v2, %v5723_v60  ;;  %v2858_v37 = vmul.f32 %v2771_v10, %v2414_v19  ;;  %v2786_v21 = vsel %vm2783_vm15, %v2785_v63, %v2781_v59  ;;  %v2792_v14 = vadd.f32 %v5730_v36, %v2791_v46 }
 0x5d0   : > { %3009 = vmatmul.bf16.gmra.mxu1 %v2931_v51  ;;  %v2872_v56 = vadd.f32 %v2856_v23, %v2285_v29  ;;  %v5761_v51 = vadd.f32 1.0, %v3932_v30  ;;  %v2859_v6 = vmul.f32 %v2786_v21, %v2416_v5  ;;  %v2797_v23 = vand.u32 2147483647, %v5706_v17 }
 0x5d1   : > { %v2805_v25 = vsub.f32 1.0, %v2804_v40  ;;  %v5768_v39 = vpop.eup %3933  ;;  %v2796_v62 = vsel %vm5773_vm2, %v5730_v36, %v2792_v14  ;;  %v2814_v17 = vand.u32 2147483648, %v5723_v60  ;;  %v2829_v10 = vand.u32 2147483648, %v5752_v45 }
 0x5d2   : > { %v2888_v55 = vmul.f32 0.01, %v2872_v56  ;;  %3935 = vrcp.f32 %v5761_v51  ;;  %v2819_v58 = vmul.f32 %v5768_v39, %v5752_v45  ;;  %vm2798_vm4 = vcmp.eq.f32.partialorder %v2797_v23, 8.507059e+37 }
 0x5d3   : > { %v2806_v38 = vmul.f32 %v5747_v2, %v2805_v25  ;;  %v2815_v11 = vor.u32 1.1754944e-38, %v2814_v17  ;;  %vm2824_vm8 = vweird.f32 %v5768_v39  ;;  %v2827_v30 = vand.u32 2147483647, %v5752_v45 }
 0x5d4   : > { %v2904_v0 = vmax.f32 %v2872_v56, %v2888_v55  ;;  %v2820_v55 = vsub.f32 1.0, %v2819_v58  ;;  %vm5803_vm10 = vmor %vm2823_vm9, %vm2824_vm8  ;;  %v2844_v21 = vand.u32 2147483648, %v5761_v51  ;;  %vm2838_vm13 = vweird.f32 %v5761_v51 }
 0x5d5   : > { %v2286_v1 = vpop.f32.mrf.mxu2  ;;  %v2807_v33 = vadd.f32 %v5747_v2, %v2806_v38  ;;  %vm2828_vm12 = vcmp.eq.f32.partialorder %v2827_v30, 8.507059e+37  ;;  %v2842_v45 = vand.u32 2147483647, %v5761_v51 }
 0x5d6   : > { %v2287_v52 = vadd.f32 %v5512_v18, %v2286_v1  ;;  %v2420_v50 = vpop.f32.mrf.mxu3  ;;  %v2821_v60 = vmul.f32 %v5768_v39, %v2820_v55 }
 0x5d7   : > { %v2811_v9 = vsel %vm2810_vm6, %v5747_v2, %v2807_v33  ;;  %v2421_v49 = vadd.f32 %v5508_v47, %v2420_v50  ;;  %vm2843_vm15 = vcmp.eq.f32.partialorder %v2842_v45, 8.507059e+37 }
 0x5d8   : > { %v2873_v4 = vadd.f32 %v2857_v54, %v2287_v52  ;;  %v5785_v1 = vpop.eup %3935  ;;  %v2800_v54 = vor.u32 1.1754944e-38, %v2799_v32  ;;  %v2816_v35 = vsel %vm2813_vm7, %v2815_v11, %v2811_v9  ;;  %v2822_v41 = vadd.f32 %v5768_v39, %v2821_v60 }
 0x5d9   : > { %v2834_v12 = vmul.f32 %v5785_v1, %v5761_v51  ;;  %vm2839_vm11 = vweird.f32 %v5785_v1 }
 0x5da   : > { %v2889_v8 = vmul.f32 0.01, %v2873_v4  ;;  %v2801_v26 = vsel %vm2798_vm4, %v2800_v54, %v2796_v62  ;;  %v2826_v59 = vsel %vm5803_vm10, %v5768_v39, %v2822_v41  ;;  %vm2840_vm14 = vmor %vm2838_vm13, %vm2839_vm11 }
 0x5db   : > { %v2835_v28 = vsub.f32 1.0, %v2834_v12 }
 0x5dc   : > { %v2905_v7 = vmax.f32 %v2873_v4, %v2889_v8  ;;  %v2419_v4 = vadd.f32 %v5508_v47, %v2418_v44 }
 0x5dd   : > { %v2289_v13 = vpop.f32.mrf.mxu2 }
 0x5de   : > { %v2932_v3 = vpack.c.bf16 %v2905_v7, %v2904_v0  ;;  %v2290_v42 = vadd.f32 %v5512_v18, %v2289_v13  ;;  %v2860_v8 = vmul.f32 %v2801_v26, %v2419_v4  ;;  %v2861_v7 = vmul.f32 %v2816_v35, %v2421_v49  ;;  %v2423_v34 = vpop.f32.mrf.mxu3 }
 0x5df   : > { %v2836_v13 = vmul.f32 %v5785_v1, %v2835_v28  ;;  %v2424_v25 = vadd.f32 %v5508_v47, %v2423_v34 }
 0x5e0   : > { %3014 = vmatmul.bf16.gmra.mxu1 %v2932_v3  ;;  %v2874_v43 = vadd.f32 %v2858_v37, %v2290_v42  ;;  %v2830_v37 = vor.u32 1.1754944e-38, %v2829_v10 }
 0x5e1   : > { %v2837_v40 = vadd.f32 %v5785_v1, %v2836_v13 }
 0x5e2   : > { %v2890_v20 = vmul.f32 0.01, %v2874_v43  ;;  %v2831_v5 = vsel %vm2828_vm12, %v2830_v37, %v2826_v59 }
 0x5e3   : > { %v2862_v14 = vmul.f32 %v2831_v5, %v2424_v25 }
 0x5e4   : > { %v2906_v61 = vmax.f32 %v2874_v43, %v2890_v20  ;;  %v2841_v43 = vsel %vm2840_vm14, %v5785_v1, %v2837_v40 }
 0x5e5   : > { %v2291_v16 = vpop.f32.mrf.mxu2 }
 0x5e6   : > { %v2292_v31 = vadd.f32 %v5512_v18, %v2291_v16 }
 0x5e8   : > { %v2875_v29 = vadd.f32 %v2859_v6, %v2292_v31  ;;  %v2425_v6 = vpop.f32.mrf.mxu3  ;;  %v2845_v31 = vor.u32 1.1754944e-38, %v2844_v21 }
 0x5e9   : > { %v2426_v38 = vadd.f32 %v5508_v47, %v2425_v6 }
 0x5ea   : > { %v2891_v57 = vmul.f32 0.01, %v2875_v29  ;;  %v2846_v39 = vsel %vm2843_vm15, %v2845_v31, %v2841_v43 }
 0x5ec   : > { %v2907_v56 = vmax.f32 %v2875_v29, %v2891_v57  ;;  %v2863_v29 = vmul.f32 %v2846_v39, %v2426_v38 }
 0x5ed   : > { %v2294_v52 = vpop.f32.mrf.mxu2 }
 0x5ee   : > { %v2933_v36 = vpack.c.bf16 %v2907_v56, %v2906_v61  ;;  %v2295_v27 = vadd.f32 %v5512_v18, %v2294_v52  ;;  %v3796_v61 = vld [vmem:[#allocation13] ss:$0 sm:$0xff] }
 0x5f0   : > { %3019 = vmatmul.bf16.gmra.mxu1 %v2933_v36  ;;  %v2876_v24 = vadd.f32 %v2860_v8, %v2295_v27 }
 0x5f2   : > { %v2892_v48 = vmul.f32 0.01, %v2876_v24 }
 0x5f4   : > { %v2908_v42 = vmax.f32 %v2876_v24, %v2892_v48 }
 0x5f5   : > { %v2296_v0 = vpop.f32.mrf.mxu2 }
 0x5f6   : > { %v2297_v2 = vadd.f32 %v5512_v18, %v2296_v0 }
 0x5f8   : > { %v2877_v3 = vadd.f32 %v2861_v7, %v2297_v2 }
 0x5fa   : > { %v2893_v19 = vmul.f32 0.01, %v2877_v3 }
 0x5fc   : > { %v2909_v63 = vmax.f32 %v2877_v3, %v2893_v19 }
 0x5fd   : > { %v2299_v44 = vpop.f32.mrf.mxu2 }
 0x5fe   : > { %v2934_v46 = vpack.c.bf16 %v2909_v63, %v2908_v42  ;;  %v2300_v16 = vadd.f32 %v5512_v18, %v2299_v44 }
 0x600   : > { %3024 = vmatmul.bf16.gmra.mxu1 %v2934_v46  ;;  %v2878_v20 = vadd.f32 %v2862_v14, %v2300_v16 }
 0x602   : > { %v2894_v53 = vmul.f32 0.01, %v2878_v20 }
 0x604   : > { %v2910_v62 = vmax.f32 %v2878_v20, %v2894_v53 }
 0x605   : > { %v2301_v51 = vpop.f32.mrf.mxu2 }
 0x606   : > { %v2302_v32 = vadd.f32 %v5512_v18, %v2301_v51 }
 0x608   : > { %v2879_v23 = vadd.f32 %v2863_v29, %v2302_v32 }
 0x60a   : > { %v2895_v57 = vmul.f32 0.01, %v2879_v23 }
 0x60c   : > { %v2911_v58 = vmax.f32 %v2879_v23, %v2895_v57 }
 0x60e   : > { %v2935_v33 = vpack.c.bf16 %v2911_v58, %v2910_v62 }
 0x610   : > { %3029 = vmatmul.bf16.gmra.mxu1 %v2935_v33 }
 0x61d   : > { %v2995_v56 = vpop.f32.mrf.mxu1 }
 0x61e   : > { %v2996_v1 = vadd.f32 %v3796_v61, %v2995_v56 }
 0x620   : > { %3035 = vst [vmem:[%s5823_s9] sm:$0xff] %v2996_v1 }
 0x625   : > { %v2997_v47 = vpop.f32.mrf.mxu1 }
 0x626   : > { %v2998_v18 = vadd.f32 %v3796_v61, %v2997_v47 }
 0x628   : > { %3036 = vst [vmem:[%s5823_s9 + $0x8] sm:$0xff] %v2998_v18 }
 0x62d   : > { %v3000_v54 = vpop.f32.mrf.mxu1 }
 0x62e   : > { %v3001_v50 = vadd.f32 %v3796_v61, %v3000_v54 }
 0x630   : > { %3037 = vst [vmem:[%s5823_s9 + $0x10] sm:$0xff] %v3001_v50 }
 0x635   : > { %v3002_v17 = vpop.f32.mrf.mxu1 }
 0x636   : > { %v3003_v52 = vadd.f32 %v3796_v61, %v3002_v17 }
 0x638   : > { %3038 = vst [vmem:[%s5823_s9 + $0x18] sm:$0xff] %v3003_v52 }
 0x63d   : > { %v3005_v15 = vpop.f32.mrf.mxu1 }
 0x63e   : > { %v3006_v36 = vadd.f32 %v3796_v61, %v3005_v15 }
 0x640   : > { %3039 = vst [vmem:[%s5823_s9 + $0x20] sm:$0xff] %v3006_v36 }
 0x645   : > { %v3007_v26 = vpop.f32.mrf.mxu1 }
 0x646   : > { %v3008_v55 = vadd.f32 %v3796_v61, %v3007_v26 }
 0x648   : > { %3040 = vst [vmem:[%s5823_s9 + $0x28] sm:$0xff] %v3008_v55 }
 0x64d   : > { %v3010_v4 = vpop.f32.mrf.mxu1 }
 0x64e   : > { %v3011_v9 = vadd.f32 %v3796_v61, %v3010_v4 }
 0x650   : > { %3041 = vst [vmem:[%s5823_s9 + $0x30] sm:$0xff] %v3011_v9 }
 0x655   : > { %v3012_v12 = vpop.f32.mrf.mxu1 }
 0x656   : > { %v3013_v27 = vadd.f32 %v3796_v61, %v3012_v12 }
 0x658   : > { %3042 = vst [vmem:[%s5823_s9 + $0x38] sm:$0xff] %v3013_v27 }
 0x65d   : > { %v3015_v11 = vpop.f32.mrf.mxu1 }
 0x65e   : > { %v3016_v8 = vadd.f32 %v3796_v61, %v3015_v11 }
 0x660   : > { %3043 = vst [vmem:[%s5823_s9 + $0x40] sm:$0xff] %v3016_v8 }
 0x665   : > { %v3017_v35 = vpop.f32.mrf.mxu1 }
 0x666   : > { %v3018_v60 = vadd.f32 %v3796_v61, %v3017_v35 }
 0x668   : > { %3044 = vst [vmem:[%s5823_s9 + $0x48] sm:$0xff] %v3018_v60 }
 0x66d   : > { %v3020_v49 = vpop.f32.mrf.mxu1 }
 0x66e   : > { %v3021_v28 = vadd.f32 %v3796_v61, %v3020_v49 }
 0x670   : > { %3045 = vst [vmem:[%s5823_s9 + $0x50] sm:$0xff] %v3021_v28 }
 0x675   : > { %v3022_v24 = vpop.f32.mrf.mxu1 }
 0x676   : > { %v3023_v0 = vadd.f32 %v3796_v61, %v3022_v24 }
 0x678   : > { %3046 = vst [vmem:[%s5823_s9 + $0x58] sm:$0xff] %v3023_v0 }
 0x67d   : > { %v3025_v7 = vpop.f32.mrf.mxu1 }
 0x67e   : > { %v3026_v2 = vadd.f32 %v3796_v61, %v3025_v7 }
 0x680   : > { %3047 = vst [vmem:[%s5823_s9 + $0x60] sm:$0xff] %v3026_v2 }
 0x685   : > { %v3027_v34 = vpop.f32.mrf.mxu1 }
 0x686   : > { %v3028_v41 = vadd.f32 %v3796_v61, %v3027_v34 }
 0x688   : > { %3048 = vst [vmem:[%s5823_s9 + $0x68] sm:$0xff] %v3028_v41 }
 0x68d   : > { %v3030_v13 = vpop.f32.mrf.mxu1 }
 0x68e   : > { %v3031_v48 = vadd.f32 %v3796_v61, %v3030_v13 }
 0x690   : > { %3049 = vst [vmem:[%s5823_s9 + $0x70] sm:$0xff] %v3031_v48 }
 0x695   : > { %v3032_v3 = vpop.f32.mrf.mxu1 }
 0x696   : > { %v3033_v10 = vadd.f32 %v3796_v61, %v3032_v3 }
 0x698   : > { %3050 = vst [vmem:[%s5823_s9 + $0x78] sm:$0xff] %v3033_v10 }
 0x699   : > { %4174 = shalt.err (!%p4171_p9)
}
 0x69a   : > { %s4238_s30 = smov 128   ;;  %s4239_s18 = smov 8  }
 0x69b   : > { %3699 = dma.vmem_to_hbm [thread:$0]  (%p4380_p4), %s3065_s22, 2048, %s3067_s28, %s3052_s29, %s4238_s30, %s4238_s30, %s4239_s18  }
 0x69c PF: > { %s3081_s9 = sand.u32 1, %s4213_s24   ;;  %p5942_p10 = scmp.ge.s32.totalorder %s4225_s27, 2 }
 0x69d   : > { %s3082_s13 = scalar_lea.sflag [#allocation4], %s3081_s9 }
 0x69e   : > { %p3725_p13 = pnand %p5942_p10, %p4384_p6 }
 0x6a0   : > { %p3726_p11 = pneg %p3725_p13 }
 0x6a2   : > { %4208 = dma.done.wait (%p3726_p11), %s3082_s13, 2048  }
 0x6a3   : > { %4210 = vsyncadd (%p3726_p11), %s3082_s13, 4294965248  ;;  %p23_p0 = scmp.ge.s32.totalorder %s4354_s12, 4   ;;  %s5943_s24 = smov %s4217_s25 }
 0x6a4   : > { %s5944_s25 = smov %s4221_s26  ;;  %s5945_s26 = smov %s4365_s14 }
 0x6a5   : > { %s5946_s27 = smov %s4354_s12  ;;  %25 = sbr.rel (!%p23_p0) target bundleno = 11 (0xb), region = 124 }
 0x6aa   :  { %3088 = vsyncpa [#allocation3], 1 }
 0x6ab   :  { %3090 = vsyncpa [#allocation3 + $0x1], 1 }
 0x6ac   :  { %3091 = vsyncpa [#allocation6], 1 }
 0x6ad   :  { %3092 = vsyncpa [#allocation9], 1 }
 0x6ae   :  { %3093 = vsyncpa [#allocation12], 1 }
 0x6af   :  { %3094 = vsyncpa [#allocation4], 1 }
 0x6b0   :  { %3096 = vsyncpa [#allocation4 + $0x1], 1 }

</bundles_post_ra>
